<compile_context>
chip_gen: v6e
topology: v6e:2x2x1
jax: 0.10.0
libtpu: 0.0.40
codegen_flags: <defaults>
</compile_context>

<pallas_src>
from functools import partial

import numpy as np
import jax
import jax.numpy as jnp
from jax.experimental import pallas as pl
from jax.experimental.pallas import tpu as pltpu


def _fold_weights(w_oihw, dtype):
    """Pre-fold the 3x3 taps into per-(phase, shift) matrices.

    For output phase (a, b) in {0,1}^2, tap (kh, kw) of the conv applied to the
    2x nearest-upsampled image reads the input pixel shifted by
    ((a+kh-1)//2, (b+kw-1)//2), which only takes 2 distinct values per axis.
    Summing the weights per (phase, shift) ahead of time turns 9 MXU dots per
    phase into 4.  Returns shape (2, 2, 2, 2, C, Cout) indexed [a, b, sh, sw].
    """
    Cout, C, _, _ = w_oihw.shape
    w_hwio = jnp.transpose(w_oihw, (2, 3, 1, 0))  # (3, 3, C, Cout)
    blocks = []
    for a in range(2):
        for b in range(2):
            for sh in range(2):
                for sw in range(2):
                    acc = jnp.zeros((C, Cout), dtype=w_hwio.dtype)
                    for kh in range(3):
                        if (a + kh - 1) // 2 - (a - 1) != sh:
                            continue
                        for kw in range(3):
                            if (b + kw - 1) // 2 - (b - 1) != sw:
                                continue
                            acc = acc + w_hwio[kh, kw]
                    blocks.append(acc)
    wf = jnp.stack(blocks).reshape(2, 2, 2, 2, C, Cout)
    return wf.astype(dtype)


def _pick_tile_rows(H, W, C, Cout, itemsize):
    """Largest divisor of H whose per-step working set fits a ~48 MiB budget
    (v7x-safe: 64 MiB VMEM per TensorCore), preferring >= 2 row tiles so the
    pipeline has depth and v7x's two cores both get work."""

    def rup(x, m):
        return ((x + m - 1) // m) * m

    lane_c = rup(C, 128)
    lane_co = rup(Cout, 128)

    def est(th):
        inp = 2 * H * rup(W, 8) * lane_c * itemsize               # resident input image (2 bufs)
        out = 2 * 4 * rup(th * W, 8) * lane_co * itemsize         # output block (2 bufs)
        shf = 3 * (th + 2) * rup(W, 8) * lane_c * itemsize        # column-shifted scratch
        acc = rup(th * W, 8) * lane_co * 4                        # f32 accumulator
        wgt = 2 * 16 * rup(C, 8) * lane_co * itemsize             # folded weights (resident)
        return inp + out + shf + acc + wgt

    budget = 48 * 1024 * 1024
    divisors = [d for d in range(H, 0, -1) if H % d == 0]
    legal = [d for d in divisors if (d * W) % 8 == 0 or d == H]
    ok = [d for d in legal if est(d) <= budget] or legal[-1:]
    multi = [d for d in ok if H // d >= 2]
    return multi[0] if multi else ok[0]


def _upsample_conv_kernel(x_ref, w_ref, b_ref, o_ref, shift_ref, acc_ref,
                          *, TH, W, C, Cout):
    # x_ref     : (1, H, W, C)            full input image (resident per batch elem)
    # w_ref     : (2, 2, 2, 2, C, Cout)   folded weights [a, b, sh, sw]
    # b_ref     : (1, Cout) f32           bias
    # o_ref     : (1, 2, 2, TH*W, Cout)   output phases (a, b) for this row tile
    # shift_ref : (3, TH+2, W, C)         column-shifted (dj=0,1,2), row-haloed tile
    # acc_ref   : (TH*W, Cout) f32        accumulator
    t = pl.program_id(1)
    nt = pl.num_programs(1)
    dt = x_ref.dtype

    # ---- Build the three column-shifted copies of the zero-padded row tile. ----
    # shift_ref[dj, r, j, :] == padded_x[input row t*TH + r - 1, input col j + dj - 1]
    zcol = jnp.zeros((TH + 2, 1, C), dt)
    shift_ref[0, :, 0:1, :] = zcol            # left-shifted buffer: padded column
    shift_ref[2, :, W - 1:W, :] = zcol        # right-shifted buffer: padded column

    start = pl.multiple_of(t * TH, TH)
    rows = x_ref[0, pl.ds(start, TH), :, :]   # (TH, W, C)
    shift_ref[1, 1:TH + 1, :, :] = rows
    shift_ref[0, 1:TH + 1, 1:W, :] = rows[:, 0:W - 1, :]
    shift_ref[2, 1:TH + 1, 0:W - 1, :] = rows[:, 1:W, :]

    # Row halos: only the 1-row border is touched (never a full-buffer zero fill).
    zrow = jnp.zeros((1, W, C), dt)

    @pl.when(t == 0)
    def _():
        for dj in range(3):
            shift_ref[dj, 0:1, :, :] = zrow

    @pl.when(t > 0)
    def _():
        top = x_ref[0, pl.ds(t * TH - 1, 1), :, :]        # (1, W, C)
        shift_ref[1, 0:1, :, :] = top
        shift_ref[0, 0:1, 1:W, :] = top[:, 0:W - 1, :]
        shift_ref[2, 0:1, 0:W - 1, :] = top[:, 1:W, :]

    @pl.when(t == nt - 1)
    def _():
        for dj in range(3):
            shift_ref[dj, TH + 1:TH + 2, :, :] = zrow

    @pl.when(t < nt - 1)
    def _():
        bot = x_ref[0, pl.ds((t + 1) * TH, 1), :, :]      # (1, W, C)
        shift_ref[1, TH + 1:TH + 2, :, :] = bot
        shift_ref[0, TH + 1:TH + 2, 1:W, :] = bot[:, 0:W - 1, :]
        shift_ref[2, TH + 1:TH + 2, 0:W - 1, :] = bot[:, 1:W, :]

    bias = b_ref[...]                                     # (1, Cout) f32, loaded once

    # ---- 4 output phases x 4 folded taps (9 -> 4 MXU dots per phase). ----
    for a in range(2):
        for b in range(2):
            for sh in range(2):
                for sw in range(2):
                    # Aligned, contiguous slice of the pre-shifted buffer.
                    patch = shift_ref[b + sw, a + sh:a + sh + TH, :, :]  # (TH, W, C)
                    contrib = jnp.dot(
                        patch.reshape(TH * W, C),
                        w_ref[a, b, sh, sw],
                        preferred_element_type=jnp.float32,
                    )
                    if sh == 0 and sw == 0:
                        acc_ref[...] = contrib
                    else:
                        acc_ref[...] += contrib
            o_ref[0, a, b] = (acc_ref[...] + bias).astype(o_ref.dtype)


def upsample2d_3daware(x_nchw, w_oihw, bias):
    """Nearest 2x upsample + 3x3 same conv.  x: (B, C, H, W) -> (B, Cout, 2H, 2W)."""
    B, C, H, W = x_nchw.shape
    Cout = w_oihw.shape[0]
    dtype = x_nchw.dtype
    itemsize = jnp.dtype(dtype).itemsize

    TH = _pick_tile_rows(H, W, C, Cout, itemsize)
    n_tiles = H // TH

    x_nhwc = jnp.transpose(x_nchw, (0, 2, 3, 1))          # (B, H, W, C)
    wf = _fold_weights(w_oihw, dtype)                     # (2, 2, 2, 2, C, Cout), x dtype
    b2 = bias.reshape(1, Cout).astype(jnp.float32)

    kernel = partial(_upsample_conv_kernel, TH=TH, W=W, C=C, Cout=Cout)

    y5 = pl.pallas_call(
        kernel,
        out_shape=jax.ShapeDtypeStruct((B, 2, 2, H * W, Cout), dtype),
        grid_spec=pltpu.PrefetchScalarGridSpec(
            num_scalar_prefetch=0,
            grid=(B, n_tiles),
            in_specs=[
                # Full image resident per batch element (fetched once per b).
                pl.BlockSpec((1, H, W, C), lambda bi, t: (bi, 0, 0, 0)),
                # Folded weights + bias stay resident across the whole grid.
                pl.BlockSpec((2, 2, 2, 2, C, Cout),
                             lambda bi, t: (0, 0, 0, 0, 0, 0)),
                pl.BlockSpec((1, Cout), lambda bi, t: (0, 0)),
            ],
            out_specs=pl.BlockSpec(
                (1, 2, 2, TH * W, Cout), lambda bi, t: (bi, 0, 0, t, 0)
            ),
            scratch_shapes=[
                pltpu.VMEM((3, TH + 2, W, C), dtype),      # column-shifted tile copies
                pltpu.VMEM((TH * W, Cout), jnp.float32),   # f32 accumulator
            ],
        ),
        compiler_params=pltpu.CompilerParams(
            dimension_semantics=("parallel", "parallel"),
            vmem_limit_bytes=64 * 1024 * 1024,
        ),
    )(x_nhwc, wf, b2)

    # (b, a, bb, i*W+j, f) -> (b, f, 2i+a, 2j+bb): ONE fused transpose + reshape.
    y6 = y5.reshape(B, 2, 2, H, W, Cout)
    return y6.transpose(0, 5, 3, 1, 4, 2).reshape(B, Cout, 2 * H, 2 * W)


def _reference(x_nchw, w_oihw, bias):
    """Pure-JAX reference: nearest 2x upsample + 3x3 conv (pad=1)."""
    up = jnp.repeat(jnp.repeat(x_nchw, 2, axis=2), 2, axis=3)
    y = jax.lax.conv_general_dilated(
        up, w_oihw, window_strides=(1, 1), padding=((1, 1), (1, 1)),
        dimension_numbers=("NCHW", "OIHW", "NCHW"),
    )
    return y + bias[None, :, None, None]


if __name__ == "__main__":
    B, C, H, W = 2, 4, 16, 16
    Cout = C  # out_channels defaults to channels

    key = jax.random.PRNGKey(0)
    kx, kw, kb = jax.random.split(key, 3)
    x = jax.random.normal(kx, (B, C, H, W), dtype=jnp.float32)
    # Deterministic synthetic parameters (Conv2d(C, Cout, 3, padding=1) shapes).
    weight = jax.random.normal(kw, (Cout, C, 3, 3), dtype=jnp.float32) * 0.1
    bias = jax.random.normal(kb, (Cout,), dtype=jnp.float32) * 0.1

    fwd = jax.jit(upsample2d_3daware)
    y = jax.block_until_ready(fwd(x, weight, bias))
    y_ref = jax.block_until_ready(_reference(x, weight, bias))

    assert y.shape == (B, Cout, 2 * H, 2 * W), y.shape
    np.testing.assert_allclose(np.asarray(y), np.asarray(y_ref), rtol=1e-4, atol=1e-4)

    print("KERNEL_OK")
</pallas_src>

<mosaic_0001>
module attributes {stable_mosaic.version = 11 : i64} {
  func.func @_upsample_conv_kernel(%arg0: i32, %arg1: i32, %arg2: memref<1x16x16x4xf32, #tpu.memory_space<vmem>>, %arg3: memref<2x2x2x2x4x4xf32, #tpu.memory_space<vmem>>, %arg4: memref<1x4xf32, #tpu.memory_space<vmem>>, %arg5: memref<1x2x2x128x4xf32, #tpu.memory_space<vmem>>, %arg6: memref<3x10x16x4xf32, #tpu.memory_space<vmem>>, %arg7: memref<128x4xf32, #tpu.memory_space<vmem>>) attributes {dimension_semantics = [#tpu.dimension_semantics<parallel>, #tpu.dimension_semantics<parallel>], iteration_bounds = array<i64: 2, 2>, scalar_prefetch = 0 : i64, scratch_operands = 2 : i64, tpu.core_type = #tpu.core_type<tc>, window_params = [{transform_indices = @transform_0, window_bounds = array<i64: 1, 16, 16, 4>}, {pipeline_mode = #tpu.pipeline_mode<synchronous>, transform_indices = @transform_1, window_bounds = array<i64: 2, 2, 2, 2, 4, 4>}, {pipeline_mode = #tpu.pipeline_mode<synchronous>, transform_indices = @transform_2, window_bounds = array<i64: 1, 4>}, {transform_indices = @transform_3, window_bounds = array<i64: 1, 2, 2, 128, 4>}]} {
    %cst = arith.constant 0.000000e+00 : f32
    %0 = vector.broadcast %cst : f32 to vector<10x1x4xf32>
    %c0 = arith.constant 0 : index
    %c0_0 = arith.constant 0 : index
    %c0_1 = arith.constant 0 : index
    %c0_2 = arith.constant 0 : index
    %1 = vector.load %arg6[%c0, %c0_0, %c0_1, %c0_2] : memref<3x10x16x4xf32, #tpu.memory_space<vmem>>, vector<1x10x1x4xf32>
    %2 = vector.shape_cast %1 : vector<1x10x1x4xf32> to vector<10x1x4xf32>
    %3 = vector.shape_cast %0 : vector<10x1x4xf32> to vector<1x10x1x4xf32>
    tpu.vector_store %arg6[%c0, %c0_0, %c0_1, %c0_2], %3 {strides = array<i32>} : memref<3x10x16x4xf32, #tpu.memory_space<vmem>>, vector<1x10x1x4xf32>,
    %c2 = arith.constant 2 : index
    %c0_3 = arith.constant 0 : index
    %c15 = arith.constant 15 : index
    %c0_4 = arith.constant 0 : index
    %4 = vector.load %arg6[%c2, %c0_3, %c15, %c0_4] : memref<3x10x16x4xf32, #tpu.memory_space<vmem>>, vector<1x10x1x4xf32>
    %5 = vector.shape_cast %4 : vector<1x10x1x4xf32> to vector<10x1x4xf32>
    %6 = vector.shape_cast %0 : vector<10x1x4xf32> to vector<1x10x1x4xf32>
    tpu.vector_store %arg6[%c2, %c0_3, %c15, %c0_4], %6 {strides = array<i32>} : memref<3x10x16x4xf32, #tpu.memory_space<vmem>>, vector<1x10x1x4xf32>,
    %c8_i32 = arith.constant 8 : i32
    %7 = arith.muli %arg1, %c8_i32 : i32
    %8 = tpu.assume_multiple %7, 8 : i32
    %c0_5 = arith.constant 0 : index
    %9 = arith.index_cast %8 : i32 to index
    %c0_6 = arith.constant 0 : index
    %c0_7 = arith.constant 0 : index
    %10 = vector.load %arg2[%c0_5, %9, %c0_6, %c0_7] : memref<1x16x16x4xf32, #tpu.memory_space<vmem>>, vector<1x8x16x4xf32>
    %11 = vector.shape_cast %10 : vector<1x8x16x4xf32> to vector<8x16x4xf32>
    %c1 = arith.constant 1 : index
    %c1_8 = arith.constant 1 : index
    %c0_9 = arith.constant 0 : index
    %c0_10 = arith.constant 0 : index
    %12 = vector.load %arg6[%c1, %c1_8, %c0_9, %c0_10] : memref<3x10x16x4xf32, #tpu.memory_space<vmem>>, vector<1x8x16x4xf32>
    %13 = vector.shape_cast %12 : vector<1x8x16x4xf32> to vector<8x16x4xf32>
    %14 = vector.shape_cast %11 : vector<8x16x4xf32> to vector<1x8x16x4xf32>
    tpu.vector_store %arg6[%c1, %c1_8, %c0_9, %c0_10], %14 {strides = array<i32>} : memref<3x10x16x4xf32, #tpu.memory_space<vmem>>, vector<1x8x16x4xf32>,
    %15 = vector.extract_strided_slice %11 {offsets = [0, 0, 0], sizes = [8, 15, 4], strides = [1, 1, 1]} : vector<8x16x4xf32> to vector<8x15x4xf32>
    %c0_11 = arith.constant 0 : index
    %c1_12 = arith.constant 1 : index
    %c1_13 = arith.constant 1 : index
    %c0_14 = arith.constant 0 : index
    %16 = vector.load %arg6[%c0_11, %c1_12, %c1_13, %c0_14] : memref<3x10x16x4xf32, #tpu.memory_space<vmem>>, vector<1x8x15x4xf32>
    %17 = vector.shape_cast %16 : vector<1x8x15x4xf32> to vector<8x15x4xf32>
    %18 = vector.shape_cast %15 : vector<8x15x4xf32> to vector<1x8x15x4xf32>
    tpu.vector_store %arg6[%c0_11, %c1_12, %c1_13, %c0_14], %18 {strides = array<i32>} : memref<3x10x16x4xf32, #tpu.memory_space<vmem>>, vector<1x8x15x4xf32>,
    %19 = vector.extract_strided_slice %11 {offsets = [0, 1, 0], sizes = [8, 15, 4], strides = [1, 1, 1]} : vector<8x16x4xf32> to vector<8x15x4xf32>
    %c2_15 = arith.constant 2 : index
    %c1_16 = arith.constant 1 : index
    %c0_17 = arith.constant 0 : index
    %c0_18 = arith.constant 0 : index
    %20 = vector.load %arg6[%c2_15, %c1_16, %c0_17, %c0_18] : memref<3x10x16x4xf32, #tpu.memory_space<vmem>>, vector<1x8x15x4xf32>
    %21 = vector.shape_cast %20 : vector<1x8x15x4xf32> to vector<8x15x4xf32>
    %22 = vector.shape_cast %19 : vector<8x15x4xf32> to vector<1x8x15x4xf32>
    tpu.vector_store %arg6[%c2_15, %c1_16, %c0_17, %c0_18], %22 {strides = array<i32>} : memref<3x10x16x4xf32, #tpu.memory_space<vmem>>, vector<1x8x15x4xf32>,
    %cst_19 = arith.constant 0.000000e+00 : f32
    %23 = vector.broadcast %cst_19 : f32 to vector<1x16x4xf32>
    %c0_i32 = arith.constant 0 : i32
    %24 = arith.cmpi eq, %arg1, %c0_i32 : i32
    %25 = arith.extui %24 : i1 to i32
    %c0_i32_20 = arith.constant 0 : i32
    %26 = arith.cmpi ne, %25, %c0_i32_20 : i32
    scf.if %26 {
      %c0_288 = arith.constant 0 : index
      %c0_289 = arith.constant 0 : index
      %c0_290 = arith.constant 0 : index
      %c0_291 = arith.constant 0 : index
      %197 = vector.load %arg6[%c0_288, %c0_289, %c0_290, %c0_291] : memref<3x10x16x4xf32, #tpu.memory_space<vmem>>, vector<1x1x16x4xf32>
      %198 = vector.shape_cast %197 : vector<1x1x16x4xf32> to vector<1x16x4xf32>
      %199 = vector.shape_cast %23 : vector<1x16x4xf32> to vector<1x1x16x4xf32>
      tpu.vector_store %arg6[%c0_288, %c0_289, %c0_290, %c0_291], %199 {strides = array<i32>} : memref<3x10x16x4xf32, #tpu.memory_space<vmem>>, vector<1x1x16x4xf32>,
      %c1_292 = arith.constant 1 : index
      %c0_293 = arith.constant 0 : index
      %c0_294 = arith.constant 0 : index
      %c0_295 = arith.constant 0 : index
      %200 = vector.load %arg6[%c1_292, %c0_293, %c0_294, %c0_295] : memref<3x10x16x4xf32, #tpu.memory_space<vmem>>, vector<1x1x16x4xf32>
      %201 = vector.shape_cast %200 : vector<1x1x16x4xf32> to vector<1x16x4xf32>
      %202 = vector.shape_cast %23 : vector<1x16x4xf32> to vector<1x1x16x4xf32>
      tpu.vector_store %arg6[%c1_292, %c0_293, %c0_294, %c0_295], %202 {strides = array<i32>} : memref<3x10x16x4xf32, #tpu.memory_space<vmem>>, vector<1x1x16x4xf32>,
      %c2_296 = arith.constant 2 : index
      %c0_297 = arith.constant 0 : index
      %c0_298 = arith.constant 0 : index
      %c0_299 = arith.constant 0 : index
      %203 = vector.load %arg6[%c2_296, %c0_297, %c0_298, %c0_299] : memref<3x10x16x4xf32, #tpu.memory_space<vmem>>, vector<1x1x16x4xf32>
      %204 = vector.shape_cast %203 : vector<1x1x16x4xf32> to vector<1x16x4xf32>
      %205 = vector.shape_cast %23 : vector<1x16x4xf32> to vector<1x1x16x4xf32>
      tpu.vector_store %arg6[%c2_296, %c0_297, %c0_298, %c0_299], %205 {strides = array<i32>} : memref<3x10x16x4xf32, #tpu.memory_space<vmem>>, vector<1x1x16x4xf32>,
    } else {
    }
    %c0_i32_21 = arith.constant 0 : i32
    %27 = arith.cmpi sgt, %arg1, %c0_i32_21 : i32
    %28 = arith.extui %27 : i1 to i32
    %c0_i32_22 = arith.constant 0 : i32
    %29 = arith.cmpi ne, %28, %c0_i32_22 : i32
    scf.if %29 {
      %c8_i32_288 = arith.constant 8 : i32
      %197 = arith.muli %arg1, %c8_i32_288 : i32
      %c1_i32_289 = arith.constant 1 : i32
      %198 = arith.subi %197, %c1_i32_289 : i32
      %c0_290 = arith.constant 0 : index
      %199 = arith.index_cast %198 : i32 to index
      %c0_291 = arith.constant 0 : index
      %c0_292 = arith.constant 0 : index
      %200 = vector.load %arg2[%c0_290, %199, %c0_291, %c0_292] : memref<1x16x16x4xf32, #tpu.memory_space<vmem>>, vector<1x1x16x4xf32>
      %201 = vector.shape_cast %200 : vector<1x1x16x4xf32> to vector<1x16x4xf32>
      %c1_293 = arith.constant 1 : index
      %c0_294 = arith.constant 0 : index
      %c0_295 = arith.constant 0 : index
      %c0_296 = arith.constant 0 : index
      %202 = vector.load %arg6[%c1_293, %c0_294, %c0_295, %c0_296] : memref<3x10x16x4xf32, #tpu.memory_space<vmem>>, vector<1x1x16x4xf32>
      %203 = vector.shape_cast %202 : vector<1x1x16x4xf32> to vector<1x16x4xf32>
      %204 = vector.shape_cast %201 : vector<1x16x4xf32> to vector<1x1x16x4xf32>
      tpu.vector_store %arg6[%c1_293, %c0_294, %c0_295, %c0_296], %204 {strides = array<i32>} : memref<3x10x16x4xf32, #tpu.memory_space<vmem>>, vector<1x1x16x4xf32>,
      %205 = vector.extract_strided_slice %201 {offsets = [0, 0, 0], sizes = [1, 15, 4], strides = [1, 1, 1]} : vector<1x16x4xf32> to vector<1x15x4xf32>
      %c0_297 = arith.constant 0 : index
      %c0_298 = arith.constant 0 : index
      %c1_299 = arith.constant 1 : index
      %c0_300 = arith.constant 0 : index
      %206 = vector.load %arg6[%c0_297, %c0_298, %c1_299, %c0_300] : memref<3x10x16x4xf32, #tpu.memory_space<vmem>>, vector<1x1x15x4xf32>
      %207 = vector.shape_cast %206 : vector<1x1x15x4xf32> to vector<1x15x4xf32>
      %208 = vector.shape_cast %205 : vector<1x15x4xf32> to vector<1x1x15x4xf32>
      tpu.vector_store %arg6[%c0_297, %c0_298, %c1_299, %c0_300], %208 {strides = array<i32>} : memref<3x10x16x4xf32, #tpu.memory_space<vmem>>, vector<1x1x15x4xf32>,
      %209 = vector.extract_strided_slice %201 {offsets = [0, 1, 0], sizes = [1, 15, 4], strides = [1, 1, 1]} : vector<1x16x4xf32> to vector<1x15x4xf32>
      %c2_301 = arith.constant 2 : index
      %c0_302 = arith.constant 0 : index
      %c0_303 = arith.constant 0 : index
      %c0_304 = arith.constant 0 : index
      %210 = vector.load %arg6[%c2_301, %c0_302, %c0_303, %c0_304] : memref<3x10x16x4xf32, #tpu.memory_space<vmem>>, vector<1x1x15x4xf32>
      %211 = vector.shape_cast %210 : vector<1x1x15x4xf32> to vector<1x15x4xf32>
      %212 = vector.shape_cast %209 : vector<1x15x4xf32> to vector<1x1x15x4xf32>
      tpu.vector_store %arg6[%c2_301, %c0_302, %c0_303, %c0_304], %212 {strides = array<i32>} : memref<3x10x16x4xf32, #tpu.memory_space<vmem>>, vector<1x1x15x4xf32>,
    } else {
    }
    %c1_i32 = arith.constant 1 : i32
    %30 = arith.cmpi eq, %arg1, %c1_i32 : i32
    %31 = arith.extui %30 : i1 to i32
    %c0_i32_23 = arith.constant 0 : i32
    %32 = arith.cmpi ne, %31, %c0_i32_23 : i32
    scf.if %32 {
      %c0_288 = arith.constant 0 : index
      %c9 = arith.constant 9 : index
      %c0_289 = arith.constant 0 : index
      %c0_290 = arith.constant 0 : index
      %197 = vector.load %arg6[%c0_288, %c9, %c0_289, %c0_290] : memref<3x10x16x4xf32, #tpu.memory_space<vmem>>, vector<1x1x16x4xf32>
      %198 = vector.shape_cast %197 : vector<1x1x16x4xf32> to vector<1x16x4xf32>
      %199 = vector.shape_cast %23 : vector<1x16x4xf32> to vector<1x1x16x4xf32>
      tpu.vector_store %arg6[%c0_288, %c9, %c0_289, %c0_290], %199 {strides = array<i32>} : memref<3x10x16x4xf32, #tpu.memory_space<vmem>>, vector<1x1x16x4xf32>,
      %c1_291 = arith.constant 1 : index
      %c9_292 = arith.constant 9 : index
      %c0_293 = arith.constant 0 : index
      %c0_294 = arith.constant 0 : index
      %200 = vector.load %arg6[%c1_291, %c9_292, %c0_293, %c0_294] : memref<3x10x16x4xf32, #tpu.memory_space<vmem>>, vector<1x1x16x4xf32>
      %201 = vector.shape_cast %200 : vector<1x1x16x4xf32> to vector<1x16x4xf32>
      %202 = vector.shape_cast %23 : vector<1x16x4xf32> to vector<1x1x16x4xf32>
      tpu.vector_store %arg6[%c1_291, %c9_292, %c0_293, %c0_294], %202 {strides = array<i32>} : memref<3x10x16x4xf32, #tpu.memory_space<vmem>>, vector<1x1x16x4xf32>,
      %c2_295 = arith.constant 2 : index
      %c9_296 = arith.constant 9 : index
      %c0_297 = arith.constant 0 : index
      %c0_298 = arith.constant 0 : index
      %203 = vector.load %arg6[%c2_295, %c9_296, %c0_297, %c0_298] : memref<3x10x16x4xf32, #tpu.memory_space<vmem>>, vector<1x1x16x4xf32>
      %204 = vector.shape_cast %203 : vector<1x1x16x4xf32> to vector<1x16x4xf32>
      %205 = vector.shape_cast %23 : vector<1x16x4xf32> to vector<1x1x16x4xf32>
      tpu.vector_store %arg6[%c2_295, %c9_296, %c0_297, %c0_298], %205 {strides = array<i32>} : memref<3x10x16x4xf32, #tpu.memory_space<vmem>>, vector<1x1x16x4xf32>,
    } else {
    }
    %c1_i32_24 = arith.constant 1 : i32
    %33 = arith.cmpi slt, %arg1, %c1_i32_24 : i32
    %34 = arith.extui %33 : i1 to i32
    %c0_i32_25 = arith.constant 0 : i32
    %35 = arith.cmpi ne, %34, %c0_i32_25 : i32
    scf.if %35 {
      %c1_i32_288 = arith.constant 1 : i32
      %197 = arith.addi %arg1, %c1_i32_288 : i32
      %c8_i32_289 = arith.constant 8 : i32
      %198 = arith.muli %197, %c8_i32_289 : i32
      %c0_290 = arith.constant 0 : index
      %199 = arith.index_cast %198 : i32 to index
      %c0_291 = arith.constant 0 : index
      %c0_292 = arith.constant 0 : index
      %200 = vector.load %arg2[%c0_290, %199, %c0_291, %c0_292] : memref<1x16x16x4xf32, #tpu.memory_space<vmem>>, vector<1x1x16x4xf32>
      %201 = vector.shape_cast %200 : vector<1x1x16x4xf32> to vector<1x16x4xf32>
      %c1_293 = arith.constant 1 : index
      %c9 = arith.constant 9 : index
      %c0_294 = arith.constant 0 : index
      %c0_295 = arith.constant 0 : index
      %202 = vector.load %arg6[%c1_293, %c9, %c0_294, %c0_295] : memref<3x10x16x4xf32, #tpu.memory_space<vmem>>, vector<1x1x16x4xf32>
      %203 = vector.shape_cast %202 : vector<1x1x16x4xf32> to vector<1x16x4xf32>
      %204 = vector.shape_cast %201 : vector<1x16x4xf32> to vector<1x1x16x4xf32>
      tpu.vector_store %arg6[%c1_293, %c9, %c0_294, %c0_295], %204 {strides = array<i32>} : memref<3x10x16x4xf32, #tpu.memory_space<vmem>>, vector<1x1x16x4xf32>,
      %205 = vector.extract_strided_slice %201 {offsets = [0, 0, 0], sizes = [1, 15, 4], strides = [1, 1, 1]} : vector<1x16x4xf32> to vector<1x15x4xf32>
      %c0_296 = arith.constant 0 : index
      %c9_297 = arith.constant 9 : index
      %c1_298 = arith.constant 1 : index
      %c0_299 = arith.constant 0 : index
      %206 = vector.load %arg6[%c0_296, %c9_297, %c1_298, %c0_299] : memref<3x10x16x4xf32, #tpu.memory_space<vmem>>, vector<1x1x15x4xf32>
      %207 = vector.shape_cast %206 : vector<1x1x15x4xf32> to vector<1x15x4xf32>
      %208 = vector.shape_cast %205 : vector<1x15x4xf32> to vector<1x1x15x4xf32>
      tpu.vector_store %arg6[%c0_296, %c9_297, %c1_298, %c0_299], %208 {strides = array<i32>} : memref<3x10x16x4xf32, #tpu.memory_space<vmem>>, vector<1x1x15x4xf32>,
      %209 = vector.extract_strided_slice %201 {offsets = [0, 1, 0], sizes = [1, 15, 4], strides = [1, 1, 1]} : vector<1x16x4xf32> to vector<1x15x4xf32>
      %c2_300 = arith.constant 2 : index
      %c9_301 = arith.constant 9 : index
      %c0_302 = arith.constant 0 : index
      %c0_303 = arith.constant 0 : index
      %210 = vector.load %arg6[%c2_300, %c9_301, %c0_302, %c0_303] : memref<3x10x16x4xf32, #tpu.memory_space<vmem>>, vector<1x1x15x4xf32>
      %211 = vector.shape_cast %210 : vector<1x1x15x4xf32> to vector<1x15x4xf32>
      %212 = vector.shape_cast %209 : vector<1x15x4xf32> to vector<1x1x15x4xf32>
      tpu.vector_store %arg6[%c2_300, %c9_301, %c0_302, %c0_303], %212 {strides = array<i32>} : memref<3x10x16x4xf32, #tpu.memory_space<vmem>>, vector<1x1x15x4xf32>,
    } else {
    }
    %c0_26 = arith.constant 0 : index
    %c0_27 = arith.constant 0 : index
    %36 = vector.load %arg4[%c0_26, %c0_27] : memref<1x4xf32, #tpu.memory_space<vmem>>, vector<1x4xf32>
    %c0_28 = arith.constant 0 : index
    %c0_29 = arith.constant 0 : index
    %c0_30 = arith.constant 0 : index
    %c0_31 = arith.constant 0 : index
    %37 = vector.load %arg6[%c0_28, %c0_29, %c0_30, %c0_31] : memref<3x10x16x4xf32, #tpu.memory_space<vmem>>, vector<1x8x16x4xf32>
    %38 = vector.shape_cast %37 : vector<1x8x16x4xf32> to vector<8x16x4xf32>
    %39 = vector.shape_cast %38 : vector<8x16x4xf32> to vector<128x4xf32>
    %c0_32 = arith.constant 0 : index
    %c0_33 = arith.constant 0 : index
    %c0_34 = arith.constant 0 : index
    %c0_35 = arith.constant 0 : index
    %c0_36 = arith.constant 0 : index
    %c0_37 = arith.constant 0 : index
    %40 = vector.load %arg3[%c0_32, %c0_33, %c0_34, %c0_35, %c0_36, %c0_37] : memref<2x2x2x2x4x4xf32, #tpu.memory_space<vmem>>, vector<1x1x1x1x4x4xf32>
    %41 = vector.shape_cast %40 : vector<1x1x1x1x4x4xf32> to vector<4x4xf32>
    %cst_38 = arith.constant dense<0.000000e+00> : vector<128x4xf32>
    %42 = tpu.matmul %39, %41, %cst_38 {dimension_numbers = #tpu.dot_dimension_numbers<[1], [0], [0], [1], [0, 0, 1, 1], [], []>} : vector<128x4xf32>, vector<4x4xf32>, vector<128x4xf32> -> vector<128x4xf32>
    %c0_39 = arith.constant 0 : index
    %c0_40 = arith.constant 0 : index
    %43 = vector.load %arg7[%c0_39, %c0_40] : memref<128x4xf32, #tpu.memory_space<vmem>>, vector<128x4xf32>
    tpu.vector_store %arg7[%c0_39, %c0_40], %42 {strides = array<i32>} : memref<128x4xf32, #tpu.memory_space<vmem>>, vector<128x4xf32>,
    %c1_41 = arith.constant 1 : index
    %c0_42 = arith.constant 0 : index
    %c0_43 = arith.constant 0 : index
    %c0_44 = arith.constant 0 : index
    %44 = vector.load %arg6[%c1_41, %c0_42, %c0_43, %c0_44] : memref<3x10x16x4xf32, #tpu.memory_space<vmem>>, vector<1x8x16x4xf32>
    %45 = vector.shape_cast %44 : vector<1x8x16x4xf32> to vector<8x16x4xf32>
    %46 = vector.shape_cast %45 : vector<8x16x4xf32> to vector<128x4xf32>
    %c0_45 = arith.constant 0 : index
    %c0_46 = arith.constant 0 : index
    %c0_47 = arith.constant 0 : index
    %c1_48 = arith.constant 1 : index
    %c0_49 = arith.constant 0 : index
    %c0_50 = arith.constant 0 : index
    %47 = vector.load %arg3[%c0_45, %c0_46, %c0_47, %c1_48, %c0_49, %c0_50] : memref<2x2x2x2x4x4xf32, #tpu.memory_space<vmem>>, vector<1x1x1x1x4x4xf32>
    %48 = vector.shape_cast %47 : vector<1x1x1x1x4x4xf32> to vector<4x4xf32>
    %cst_51 = arith.constant dense<0.000000e+00> : vector<128x4xf32>
    %49 = tpu.matmul %46, %48, %cst_51 {dimension_numbers = #tpu.dot_dimension_numbers<[1], [0], [0], [1], [0, 0, 1, 1], [], []>} : vector<128x4xf32>, vector<4x4xf32>, vector<128x4xf32> -> vector<128x4xf32>
    %c0_52 = arith.constant 0 : index
    %c0_53 = arith.constant 0 : index
    %50 = vector.load %arg7[%c0_52, %c0_53] : memref<128x4xf32, #tpu.memory_space<vmem>>, vector<128x4xf32>
    %51 = arith.addf %50, %49 : vector<128x4xf32>
    %c0_54 = arith.constant 0 : index
    %c0_55 = arith.constant 0 : index
    %52 = vector.load %arg7[%c0_54, %c0_55] : memref<128x4xf32, #tpu.memory_space<vmem>>, vector<128x4xf32>
    tpu.vector_store %arg7[%c0_54, %c0_55], %51 {strides = array<i32>} : memref<128x4xf32, #tpu.memory_space<vmem>>, vector<128x4xf32>,
    %c0_56 = arith.constant 0 : index
    %c1_57 = arith.constant 1 : index
    %c0_58 = arith.constant 0 : index
    %c0_59 = arith.constant 0 : index
    %53 = vector.load %arg6[%c0_56, %c1_57, %c0_58, %c0_59] : memref<3x10x16x4xf32, #tpu.memory_space<vmem>>, vector<1x8x16x4xf32>
    %54 = vector.shape_cast %53 : vector<1x8x16x4xf32> to vector<8x16x4xf32>
    %55 = vector.shape_cast %54 : vector<8x16x4xf32> to vector<128x4xf32>
    %c0_60 = arith.constant 0 : index
    %c0_61 = arith.constant 0 : index
    %c1_62 = arith.constant 1 : index
    %c0_63 = arith.constant 0 : index
    %c0_64 = arith.constant 0 : index
    %c0_65 = arith.constant 0 : index
    %56 = vector.load %arg3[%c0_60, %c0_61, %c1_62, %c0_63, %c0_64, %c0_65] : memref<2x2x2x2x4x4xf32, #tpu.memory_space<vmem>>, vector<1x1x1x1x4x4xf32>
    %57 = vector.shape_cast %56 : vector<1x1x1x1x4x4xf32> to vector<4x4xf32>
    %cst_66 = arith.constant dense<0.000000e+00> : vector<128x4xf32>
    %58 = tpu.matmul %55, %57, %cst_66 {dimension_numbers = #tpu.dot_dimension_numbers<[1], [0], [0], [1], [0, 0, 1, 1], [], []>} : vector<128x4xf32>, vector<4x4xf32>, vector<128x4xf32> -> vector<128x4xf32>
    %c0_67 = arith.constant 0 : index
    %c0_68 = arith.constant 0 : index
    %59 = vector.load %arg7[%c0_67, %c0_68] : memref<128x4xf32, #tpu.memory_space<vmem>>, vector<128x4xf32>
    %60 = arith.addf %59, %58 : vector<128x4xf32>
    %c0_69 = arith.constant 0 : index
    %c0_70 = arith.constant 0 : index
    %61 = vector.load %arg7[%c0_69, %c0_70] : memref<128x4xf32, #tpu.memory_space<vmem>>, vector<128x4xf32>
    tpu.vector_store %arg7[%c0_69, %c0_70], %60 {strides = array<i32>} : memref<128x4xf32, #tpu.memory_space<vmem>>, vector<128x4xf32>,
    %c1_71 = arith.constant 1 : index
    %c1_72 = arith.constant 1 : index
    %c0_73 = arith.constant 0 : index
    %c0_74 = arith.constant 0 : index
    %62 = vector.load %arg6[%c1_71, %c1_72, %c0_73, %c0_74] : memref<3x10x16x4xf32, #tpu.memory_space<vmem>>, vector<1x8x16x4xf32>
    %63 = vector.shape_cast %62 : vector<1x8x16x4xf32> to vector<8x16x4xf32>
    %64 = vector.shape_cast %63 : vector<8x16x4xf32> to vector<128x4xf32>
    %c0_75 = arith.constant 0 : index
    %c0_76 = arith.constant 0 : index
    %c1_77 = arith.constant 1 : index
    %c1_78 = arith.constant 1 : index
    %c0_79 = arith.constant 0 : index
    %c0_80 = arith.constant 0 : index
    %65 = vector.load %arg3[%c0_75, %c0_76, %c1_77, %c1_78, %c0_79, %c0_80] : memref<2x2x2x2x4x4xf32, #tpu.memory_space<vmem>>, vector<1x1x1x1x4x4xf32>
    %66 = vector.shape_cast %65 : vector<1x1x1x1x4x4xf32> to vector<4x4xf32>
    %cst_81 = arith.constant dense<0.000000e+00> : vector<128x4xf32>
    %67 = tpu.matmul %64, %66, %cst_81 {dimension_numbers = #tpu.dot_dimension_numbers<[1], [0], [0], [1], [0, 0, 1, 1], [], []>} : vector<128x4xf32>, vector<4x4xf32>, vector<128x4xf32> -> vector<128x4xf32>
    %c0_82 = arith.constant 0 : index
    %c0_83 = arith.constant 0 : index
    %68 = vector.load %arg7[%c0_82, %c0_83] : memref<128x4xf32, #tpu.memory_space<vmem>>, vector<128x4xf32>
    %69 = arith.addf %68, %67 : vector<128x4xf32>
    %c0_84 = arith.constant 0 : index
    %c0_85 = arith.constant 0 : index
    %70 = vector.load %arg7[%c0_84, %c0_85] : memref<128x4xf32, #tpu.memory_space<vmem>>, vector<128x4xf32>
    tpu.vector_store %arg7[%c0_84, %c0_85], %69 {strides = array<i32>} : memref<128x4xf32, #tpu.memory_space<vmem>>, vector<128x4xf32>,
    %c0_86 = arith.constant 0 : index
    %c0_87 = arith.constant 0 : index
    %71 = vector.load %arg7[%c0_86, %c0_87] : memref<128x4xf32, #tpu.memory_space<vmem>>, vector<128x4xf32>
    %72 = vector.broadcast %36 : vector<1x4xf32> to vector<128x4xf32>
    %73 = arith.addf %71, %72 : vector<128x4xf32>
    %c0_88 = arith.constant 0 : index
    %c0_89 = arith.constant 0 : index
    %c0_90 = arith.constant 0 : index
    %c0_91 = arith.constant 0 : index
    %c0_92 = arith.constant 0 : index
    %74 = vector.load %arg5[%c0_88, %c0_89, %c0_90, %c0_91, %c0_92] : memref<1x2x2x128x4xf32, #tpu.memory_space<vmem>>, vector<1x1x1x128x4xf32>
    %75 = vector.shape_cast %74 : vector<1x1x1x128x4xf32> to vector<128x4xf32>
    %76 = vector.shape_cast %73 : vector<128x4xf32> to vector<1x1x1x128x4xf32>
    tpu.vector_store %arg5[%c0_88, %c0_89, %c0_90, %c0_91, %c0_92], %76 {strides = array<i32>} : memref<1x2x2x128x4xf32, #tpu.memory_space<vmem>>, vector<1x1x1x128x4xf32>,
    %c1_93 = arith.constant 1 : index
    %c0_94 = arith.constant 0 : index
    %c0_95 = arith.constant 0 : index
    %c0_96 = arith.constant 0 : index
    %77 = vector.load %arg6[%c1_93, %c0_94, %c0_95, %c0_96] : memref<3x10x16x4xf32, #tpu.memory_space<vmem>>, vector<1x8x16x4xf32>
    %78 = vector.shape_cast %77 : vector<1x8x16x4xf32> to vector<8x16x4xf32>
    %79 = vector.shape_cast %78 : vector<8x16x4xf32> to vector<128x4xf32>
    %c0_97 = arith.constant 0 : index
    %c1_98 = arith.constant 1 : index
    %c0_99 = arith.constant 0 : index
    %c0_100 = arith.constant 0 : index
    %c0_101 = arith.constant 0 : index
    %c0_102 = arith.constant 0 : index
    %80 = vector.load %arg3[%c0_97, %c1_98, %c0_99, %c0_100, %c0_101, %c0_102] : memref<2x2x2x2x4x4xf32, #tpu.memory_space<vmem>>, vector<1x1x1x1x4x4xf32>
    %81 = vector.shape_cast %80 : vector<1x1x1x1x4x4xf32> to vector<4x4xf32>
    %cst_103 = arith.constant dense<0.000000e+00> : vector<128x4xf32>
    %82 = tpu.matmul %79, %81, %cst_103 {dimension_numbers = #tpu.dot_dimension_numbers<[1], [0], [0], [1], [0, 0, 1, 1], [], []>} : vector<128x4xf32>, vector<4x4xf32>, vector<128x4xf32> -> vector<128x4xf32>
    %c0_104 = arith.constant 0 : index
    %c0_105 = arith.constant 0 : index
    %83 = vector.load %arg7[%c0_104, %c0_105] : memref<128x4xf32, #tpu.memory_space<vmem>>, vector<128x4xf32>
    tpu.vector_store %arg7[%c0_104, %c0_105], %82 {strides = array<i32>} : memref<128x4xf32, #tpu.memory_space<vmem>>, vector<128x4xf32>,
    %c2_106 = arith.constant 2 : index
    %c0_107 = arith.constant 0 : index
    %c0_108 = arith.constant 0 : index
    %c0_109 = arith.constant 0 : index
    %84 = vector.load %arg6[%c2_106, %c0_107, %c0_108, %c0_109] : memref<3x10x16x4xf32, #tpu.memory_space<vmem>>, vector<1x8x16x4xf32>
    %85 = vector.shape_cast %84 : vector<1x8x16x4xf32> to vector<8x16x4xf32>
    %86 = vector.shape_cast %85 : vector<8x16x4xf32> to vector<128x4xf32>
    %c0_110 = arith.constant 0 : index
    %c1_111 = arith.constant 1 : index
    %c0_112 = arith.constant 0 : index
    %c1_113 = arith.constant 1 : index
    %c0_114 = arith.constant 0 : index
    %c0_115 = arith.constant 0 : index
    %87 = vector.load %arg3[%c0_110, %c1_111, %c0_112, %c1_113, %c0_114, %c0_115] : memref<2x2x2x2x4x4xf32, #tpu.memory_space<vmem>>, vector<1x1x1x1x4x4xf32>
    %88 = vector.shape_cast %87 : vector<1x1x1x1x4x4xf32> to vector<4x4xf32>
    %cst_116 = arith.constant dense<0.000000e+00> : vector<128x4xf32>
    %89 = tpu.matmul %86, %88, %cst_116 {dimension_numbers = #tpu.dot_dimension_numbers<[1], [0], [0], [1], [0, 0, 1, 1], [], []>} : vector<128x4xf32>, vector<4x4xf32>, vector<128x4xf32> -> vector<128x4xf32>
    %c0_117 = arith.constant 0 : index
    %c0_118 = arith.constant 0 : index
    %90 = vector.load %arg7[%c0_117, %c0_118] : memref<128x4xf32, #tpu.memory_space<vmem>>, vector<128x4xf32>
    %91 = arith.addf %90, %89 : vector<128x4xf32>
    %c0_119 = arith.constant 0 : index
    %c0_120 = arith.constant 0 : index
    %92 = vector.load %arg7[%c0_119, %c0_120] : memref<128x4xf32, #tpu.memory_space<vmem>>, vector<128x4xf32>
    tpu.vector_store %arg7[%c0_119, %c0_120], %91 {strides = array<i32>} : memref<128x4xf32, #tpu.memory_space<vmem>>, vector<128x4xf32>,
    %c1_121 = arith.constant 1 : index
    %c1_122 = arith.constant 1 : index
    %c0_123 = arith.constant 0 : index
    %c0_124 = arith.constant 0 : index
    %93 = vector.load %arg6[%c1_121, %c1_122, %c0_123, %c0_124] : memref<3x10x16x4xf32, #tpu.memory_space<vmem>>, vector<1x8x16x4xf32>
    %94 = vector.shape_cast %93 : vector<1x8x16x4xf32> to vector<8x16x4xf32>
    %95 = vector.shape_cast %94 : vector<8x16x4xf32> to vector<128x4xf32>
    %c0_125 = arith.constant 0 : index
    %c1_126 = arith.constant 1 : index
    %c1_127 = arith.constant 1 : index
    %c0_128 = arith.constant 0 : index
    %c0_129 = arith.constant 0 : index
    %c0_130 = arith.constant 0 : index
    %96 = vector.load %arg3[%c0_125, %c1_126, %c1_127, %c0_128, %c0_129, %c0_130] : memref<2x2x2x2x4x4xf32, #tpu.memory_space<vmem>>, vector<1x1x1x1x4x4xf32>
    %97 = vector.shape_cast %96 : vector<1x1x1x1x4x4xf32> to vector<4x4xf32>
    %cst_131 = arith.constant dense<0.000000e+00> : vector<128x4xf32>
    %98 = tpu.matmul %95, %97, %cst_131 {dimension_numbers = #tpu.dot_dimension_numbers<[1], [0], [0], [1], [0, 0, 1, 1], [], []>} : vector<128x4xf32>, vector<4x4xf32>, vector<128x4xf32> -> vector<128x4xf32>
    %c0_132 = arith.constant 0 : index
    %c0_133 = arith.constant 0 : index
    %99 = vector.load %arg7[%c0_132, %c0_133] : memref<128x4xf32, #tpu.memory_space<vmem>>, vector<128x4xf32>
    %100 = arith.addf %99, %98 : vector<128x4xf32>
    %c0_134 = arith.constant 0 : index
    %c0_135 = arith.constant 0 : index
    %101 = vector.load %arg7[%c0_134, %c0_135] : memref<128x4xf32, #tpu.memory_space<vmem>>, vector<128x4xf32>
    tpu.vector_store %arg7[%c0_134, %c0_135], %100 {strides = array<i32>} : memref<128x4xf32, #tpu.memory_space<vmem>>, vector<128x4xf32>,
    %c2_136 = arith.constant 2 : index
    %c1_137 = arith.constant 1 : index
    %c0_138 = arith.constant 0 : index
    %c0_139 = arith.constant 0 : index
    %102 = vector.load %arg6[%c2_136, %c1_137, %c0_138, %c0_139] : memref<3x10x16x4xf32, #tpu.memory_space<vmem>>, vector<1x8x16x4xf32>
    %103 = vector.shape_cast %102 : vector<1x8x16x4xf32> to vector<8x16x4xf32>
    %104 = vector.shape_cast %103 : vector<8x16x4xf32> to vector<128x4xf32>
    %c0_140 = arith.constant 0 : index
    %c1_141 = arith.constant 1 : index
    %c1_142 = arith.constant 1 : index
    %c1_143 = arith.constant 1 : index
    %c0_144 = arith.constant 0 : index
    %c0_145 = arith.constant 0 : index
    %105 = vector.load %arg3[%c0_140, %c1_141, %c1_142, %c1_143, %c0_144, %c0_145] : memref<2x2x2x2x4x4xf32, #tpu.memory_space<vmem>>, vector<1x1x1x1x4x4xf32>
    %106 = vector.shape_cast %105 : vector<1x1x1x1x4x4xf32> to vector<4x4xf32>
    %cst_146 = arith.constant dense<0.000000e+00> : vector<128x4xf32>
    %107 = tpu.matmul %104, %106, %cst_146 {dimension_numbers = #tpu.dot_dimension_numbers<[1], [0], [0], [1], [0, 0, 1, 1], [], []>} : vector<128x4xf32>, vector<4x4xf32>, vector<128x4xf32> -> vector<128x4xf32>
    %c0_147 = arith.constant 0 : index
    %c0_148 = arith.constant 0 : index
    %108 = vector.load %arg7[%c0_147, %c0_148] : memref<128x4xf32, #tpu.memory_space<vmem>>, vector<128x4xf32>
    %109 = arith.addf %108, %107 : vector<128x4xf32>
    %c0_149 = arith.constant 0 : index
    %c0_150 = arith.constant 0 : index
    %110 = vector.load %arg7[%c0_149, %c0_150] : memref<128x4xf32, #tpu.memory_space<vmem>>, vector<128x4xf32>
    tpu.vector_store %arg7[%c0_149, %c0_150], %109 {strides = array<i32>} : memref<128x4xf32, #tpu.memory_space<vmem>>, vector<128x4xf32>,
    %c0_151 = arith.constant 0 : index
    %c0_152 = arith.constant 0 : index
    %111 = vector.load %arg7[%c0_151, %c0_152] : memref<128x4xf32, #tpu.memory_space<vmem>>, vector<128x4xf32>
    %112 = vector.broadcast %36 : vector<1x4xf32> to vector<128x4xf32>
    %113 = arith.addf %111, %112 : vector<128x4xf32>
    %c0_153 = arith.constant 0 : index
    %c0_154 = arith.constant 0 : index
    %c1_155 = arith.constant 1 : index
    %c0_156 = arith.constant 0 : index
    %c0_157 = arith.constant 0 : index
    %114 = vector.load %arg5[%c0_153, %c0_154, %c1_155, %c0_156, %c0_157] : memref<1x2x2x128x4xf32, #tpu.memory_space<vmem>>, vector<1x1x1x128x4xf32>
    %115 = vector.shape_cast %114 : vector<1x1x1x128x4xf32> to vector<128x4xf32>
    %116 = vector.shape_cast %113 : vector<128x4xf32> to vector<1x1x1x128x4xf32>
    tpu.vector_store %arg5[%c0_153, %c0_154, %c1_155, %c0_156, %c0_157], %116 {strides = array<i32>} : memref<1x2x2x128x4xf32, #tpu.memory_space<vmem>>, vector<1x1x1x128x4xf32>,
    %c0_158 = arith.constant 0 : index
    %c1_159 = arith.constant 1 : index
    %c0_160 = arith.constant 0 : index
    %c0_161 = arith.constant 0 : index
    %117 = vector.load %arg6[%c0_158, %c1_159, %c0_160, %c0_161] : memref<3x10x16x4xf32, #tpu.memory_space<vmem>>, vector<1x8x16x4xf32>
    %118 = vector.shape_cast %117 : vector<1x8x16x4xf32> to vector<8x16x4xf32>
    %119 = vector.shape_cast %118 : vector<8x16x4xf32> to vector<128x4xf32>
    %c1_162 = arith.constant 1 : index
    %c0_163 = arith.constant 0 : index
    %c0_164 = arith.constant 0 : index
    %c0_165 = arith.constant 0 : index
    %c0_166 = arith.constant 0 : index
    %c0_167 = arith.constant 0 : index
    %120 = vector.load %arg3[%c1_162, %c0_163, %c0_164, %c0_165, %c0_166, %c0_167] : memref<2x2x2x2x4x4xf32, #tpu.memory_space<vmem>>, vector<1x1x1x1x4x4xf32>
    %121 = vector.shape_cast %120 : vector<1x1x1x1x4x4xf32> to vector<4x4xf32>
    %cst_168 = arith.constant dense<0.000000e+00> : vector<128x4xf32>
    %122 = tpu.matmul %119, %121, %cst_168 {dimension_numbers = #tpu.dot_dimension_numbers<[1], [0], [0], [1], [0, 0, 1, 1], [], []>} : vector<128x4xf32>, vector<4x4xf32>, vector<128x4xf32> -> vector<128x4xf32>
    %c0_169 = arith.constant 0 : index
    %c0_170 = arith.constant 0 : index
    %123 = vector.load %arg7[%c0_169, %c0_170] : memref<128x4xf32, #tpu.memory_space<vmem>>, vector<128x4xf32>
    tpu.vector_store %arg7[%c0_169, %c0_170], %122 {strides = array<i32>} : memref<128x4xf32, #tpu.memory_space<vmem>>, vector<128x4xf32>,
    %c1_171 = arith.constant 1 : index
    %c1_172 = arith.constant 1 : index
    %c0_173 = arith.constant 0 : index
    %c0_174 = arith.constant 0 : index
    %124 = vector.load %arg6[%c1_171, %c1_172, %c0_173, %c0_174] : memref<3x10x16x4xf32, #tpu.memory_space<vmem>>, vector<1x8x16x4xf32>
    %125 = vector.shape_cast %124 : vector<1x8x16x4xf32> to vector<8x16x4xf32>
    %126 = vector.shape_cast %125 : vector<8x16x4xf32> to vector<128x4xf32>
    %c1_175 = arith.constant 1 : index
    %c0_176 = arith.constant 0 : index
    %c0_177 = arith.constant 0 : index
    %c1_178 = arith.constant 1 : index
    %c0_179 = arith.constant 0 : index
    %c0_180 = arith.constant 0 : index
    %127 = vector.load %arg3[%c1_175, %c0_176, %c0_177, %c1_178, %c0_179, %c0_180] : memref<2x2x2x2x4x4xf32, #tpu.memory_space<vmem>>, vector<1x1x1x1x4x4xf32>
    %128 = vector.shape_cast %127 : vector<1x1x1x1x4x4xf32> to vector<4x4xf32>
    %cst_181 = arith.constant dense<0.000000e+00> : vector<128x4xf32>
    %129 = tpu.matmul %126, %128, %cst_181 {dimension_numbers = #tpu.dot_dimension_numbers<[1], [0], [0], [1], [0, 0, 1, 1], [], []>} : vector<128x4xf32>, vector<4x4xf32>, vector<128x4xf32> -> vector<128x4xf32>
    %c0_182 = arith.constant 0 : index
    %c0_183 = arith.constant 0 : index
    %130 = vector.load %arg7[%c0_182, %c0_183] : memref<128x4xf32, #tpu.memory_space<vmem>>, vector<128x4xf32>
    %131 = arith.addf %130, %129 : vector<128x4xf32>
    %c0_184 = arith.constant 0 : index
    %c0_185 = arith.constant 0 : index
    %132 = vector.load %arg7[%c0_184, %c0_185] : memref<128x4xf32, #tpu.memory_space<vmem>>, vector<128x4xf32>
    tpu.vector_store %arg7[%c0_184, %c0_185], %131 {strides = array<i32>} : memref<128x4xf32, #tpu.memory_space<vmem>>, vector<128x4xf32>,
    %c0_186 = arith.constant 0 : index
    %c2_187 = arith.constant 2 : index
    %c0_188 = arith.constant 0 : index
    %c0_189 = arith.constant 0 : index
    %133 = vector.load %arg6[%c0_186, %c2_187, %c0_188, %c0_189] : memref<3x10x16x4xf32, #tpu.memory_space<vmem>>, vector<1x8x16x4xf32>
    %134 = vector.shape_cast %133 : vector<1x8x16x4xf32> to vector<8x16x4xf32>
    %135 = vector.shape_cast %134 : vector<8x16x4xf32> to vector<128x4xf32>
    %c1_190 = arith.constant 1 : index
    %c0_191 = arith.constant 0 : index
    %c1_192 = arith.constant 1 : index
    %c0_193 = arith.constant 0 : index
    %c0_194 = arith.constant 0 : index
    %c0_195 = arith.constant 0 : index
    %136 = vector.load %arg3[%c1_190, %c0_191, %c1_192, %c0_193, %c0_194, %c0_195] : memref<2x2x2x2x4x4xf32, #tpu.memory_space<vmem>>, vector<1x1x1x1x4x4xf32>
    %137 = vector.shape_cast %136 : vector<1x1x1x1x4x4xf32> to vector<4x4xf32>
    %cst_196 = arith.constant dense<0.000000e+00> : vector<128x4xf32>
    %138 = tpu.matmul %135, %137, %cst_196 {dimension_numbers = #tpu.dot_dimension_numbers<[1], [0], [0], [1], [0, 0, 1, 1], [], []>} : vector<128x4xf32>, vector<4x4xf32>, vector<128x4xf32> -> vector<128x4xf32>
    %c0_197 = arith.constant 0 : index
    %c0_198 = arith.constant 0 : index
    %139 = vector.load %arg7[%c0_197, %c0_198] : memref<128x4xf32, #tpu.memory_space<vmem>>, vector<128x4xf32>
    %140 = arith.addf %139, %138 : vector<128x4xf32>
    %c0_199 = arith.constant 0 : index
    %c0_200 = arith.constant 0 : index
    %141 = vector.load %arg7[%c0_199, %c0_200] : memref<128x4xf32, #tpu.memory_space<vmem>>, vector<128x4xf32>
    tpu.vector_store %arg7[%c0_199, %c0_200], %140 {strides = array<i32>} : memref<128x4xf32, #tpu.memory_space<vmem>>, vector<128x4xf32>,
    %c1_201 = arith.constant 1 : index
    %c2_202 = arith.constant 2 : index
    %c0_203 = arith.constant 0 : index
    %c0_204 = arith.constant 0 : index
    %142 = vector.load %arg6[%c1_201, %c2_202, %c0_203, %c0_204] : memref<3x10x16x4xf32, #tpu.memory_space<vmem>>, vector<1x8x16x4xf32>
    %143 = vector.shape_cast %142 : vector<1x8x16x4xf32> to vector<8x16x4xf32>
    %144 = vector.shape_cast %143 : vector<8x16x4xf32> to vector<128x4xf32>
    %c1_205 = arith.constant 1 : index
    %c0_206 = arith.constant 0 : index
    %c1_207 = arith.constant 1 : index
    %c1_208 = arith.constant 1 : index
    %c0_209 = arith.constant 0 : index
    %c0_210 = arith.constant 0 : index
    %145 = vector.load %arg3[%c1_205, %c0_206, %c1_207, %c1_208, %c0_209, %c0_210] : memref<2x2x2x2x4x4xf32, #tpu.memory_space<vmem>>, vector<1x1x1x1x4x4xf32>
    %146 = vector.shape_cast %145 : vector<1x1x1x1x4x4xf32> to vector<4x4xf32>
    %cst_211 = arith.constant dense<0.000000e+00> : vector<128x4xf32>
    %147 = tpu.matmul %144, %146, %cst_211 {dimension_numbers = #tpu.dot_dimension_numbers<[1], [0], [0], [1], [0, 0, 1, 1], [], []>} : vector<128x4xf32>, vector<4x4xf32>, vector<128x4xf32> -> vector<128x4xf32>
    %c0_212 = arith.constant 0 : index
    %c0_213 = arith.constant 0 : index
    %148 = vector.load %arg7[%c0_212, %c0_213] : memref<128x4xf32, #tpu.memory_space<vmem>>, vector<128x4xf32>
    %149 = arith.addf %148, %147 : vector<128x4xf32>
    %c0_214 = arith.constant 0 : index
    %c0_215 = arith.constant 0 : index
    %150 = vector.load %arg7[%c0_214, %c0_215] : memref<128x4xf32, #tpu.memory_space<vmem>>, vector<128x4xf32>
    tpu.vector_store %arg7[%c0_214, %c0_215], %149 {strides = array<i32>} : memref<128x4xf32, #tpu.memory_space<vmem>>, vector<128x4xf32>,
    %c0_216 = arith.constant 0 : index
    %c0_217 = arith.constant 0 : index
    %151 = vector.load %arg7[%c0_216, %c0_217] : memref<128x4xf32, #tpu.memory_space<vmem>>, vector<128x4xf32>
    %152 = vector.broadcast %36 : vector<1x4xf32> to vector<128x4xf32>
    %153 = arith.addf %151, %152 : vector<128x4xf32>
    %c0_218 = arith.constant 0 : index
    %c1_219 = arith.constant 1 : index
    %c0_220 = arith.constant 0 : index
    %c0_221 = arith.constant 0 : index
    %c0_222 = arith.constant 0 : index
    %154 = vector.load %arg5[%c0_218, %c1_219, %c0_220, %c0_221, %c0_222] : memref<1x2x2x128x4xf32, #tpu.memory_space<vmem>>, vector<1x1x1x128x4xf32>
    %155 = vector.shape_cast %154 : vector<1x1x1x128x4xf32> to vector<128x4xf32>
    %156 = vector.shape_cast %153 : vector<128x4xf32> to vector<1x1x1x128x4xf32>
    tpu.vector_store %arg5[%c0_218, %c1_219, %c0_220, %c0_221, %c0_222], %156 {strides = array<i32>} : memref<1x2x2x128x4xf32, #tpu.memory_space<vmem>>, vector<1x1x1x128x4xf32>,
    %c1_223 = arith.constant 1 : index
    %c1_224 = arith.constant 1 : index
    %c0_225 = arith.constant 0 : index
    %c0_226 = arith.constant 0 : index
    %157 = vector.load %arg6[%c1_223, %c1_224, %c0_225, %c0_226] : memref<3x10x16x4xf32, #tpu.memory_space<vmem>>, vector<1x8x16x4xf32>
    %158 = vector.shape_cast %157 : vector<1x8x16x4xf32> to vector<8x16x4xf32>
    %159 = vector.shape_cast %158 : vector<8x16x4xf32> to vector<128x4xf32>
    %c1_227 = arith.constant 1 : index
    %c1_228 = arith.constant 1 : index
    %c0_229 = arith.constant 0 : index
    %c0_230 = arith.constant 0 : index
    %c0_231 = arith.constant 0 : index
    %c0_232 = arith.constant 0 : index
    %160 = vector.load %arg3[%c1_227, %c1_228, %c0_229, %c0_230, %c0_231, %c0_232] : memref<2x2x2x2x4x4xf32, #tpu.memory_space<vmem>>, vector<1x1x1x1x4x4xf32>
    %161 = vector.shape_cast %160 : vector<1x1x1x1x4x4xf32> to vector<4x4xf32>
    %cst_233 = arith.constant dense<0.000000e+00> : vector<128x4xf32>
    %162 = tpu.matmul %159, %161, %cst_233 {dimension_numbers = #tpu.dot_dimension_numbers<[1], [0], [0], [1], [0, 0, 1, 1], [], []>} : vector<128x4xf32>, vector<4x4xf32>, vector<128x4xf32> -> vector<128x4xf32>
    %c0_234 = arith.constant 0 : index
    %c0_235 = arith.constant 0 : index
    %163 = vector.load %arg7[%c0_234, %c0_235] : memref<128x4xf32, #tpu.memory_space<vmem>>, vector<128x4xf32>
    tpu.vector_store %arg7[%c0_234, %c0_235], %162 {strides = array<i32>} : memref<128x4xf32, #tpu.memory_space<vmem>>, vector<128x4xf32>,
    %c2_236 = arith.constant 2 : index
    %c1_237 = arith.constant 1 : index
    %c0_238 = arith.constant 0 : index
    %c0_239 = arith.constant 0 : index
    %164 = vector.load %arg6[%c2_236, %c1_237, %c0_238, %c0_239] : memref<3x10x16x4xf32, #tpu.memory_space<vmem>>, vector<1x8x16x4xf32>
    %165 = vector.shape_cast %164 : vector<1x8x16x4xf32> to vector<8x16x4xf32>
    %166 = vector.shape_cast %165 : vector<8x16x4xf32> to vector<128x4xf32>
    %c1_240 = arith.constant 1 : index
    %c1_241 = arith.constant 1 : index
    %c0_242 = arith.constant 0 : index
    %c1_243 = arith.constant 1 : index
    %c0_244 = arith.constant 0 : index
    %c0_245 = arith.constant 0 : index
    %167 = vector.load %arg3[%c1_240, %c1_241, %c0_242, %c1_243, %c0_244, %c0_245] : memref<2x2x2x2x4x4xf32, #tpu.memory_space<vmem>>, vector<1x1x1x1x4x4xf32>
    %168 = vector.shape_cast %167 : vector<1x1x1x1x4x4xf32> to vector<4x4xf32>
    %cst_246 = arith.constant dense<0.000000e+00> : vector<128x4xf32>
    %169 = tpu.matmul %166, %168, %cst_246 {dimension_numbers = #tpu.dot_dimension_numbers<[1], [0], [0], [1], [0, 0, 1, 1], [], []>} : vector<128x4xf32>, vector<4x4xf32>, vector<128x4xf32> -> vector<128x4xf32>
    %c0_247 = arith.constant 0 : index
    %c0_248 = arith.constant 0 : index
    %170 = vector.load %arg7[%c0_247, %c0_248] : memref<128x4xf32, #tpu.memory_space<vmem>>, vector<128x4xf32>
    %171 = arith.addf %170, %169 : vector<128x4xf32>
    %c0_249 = arith.constant 0 : index
    %c0_250 = arith.constant 0 : index
    %172 = vector.load %arg7[%c0_249, %c0_250] : memref<128x4xf32, #tpu.memory_space<vmem>>, vector<128x4xf32>
    tpu.vector_store %arg7[%c0_249, %c0_250], %171 {strides = array<i32>} : memref<128x4xf32, #tpu.memory_space<vmem>>, vector<128x4xf32>,
    %c1_251 = arith.constant 1 : index
    %c2_252 = arith.constant 2 : index
    %c0_253 = arith.constant 0 : index
    %c0_254 = arith.constant 0 : index
    %173 = vector.load %arg6[%c1_251, %c2_252, %c0_253, %c0_254] : memref<3x10x16x4xf32, #tpu.memory_space<vmem>>, vector<1x8x16x4xf32>
    %174 = vector.shape_cast %173 : vector<1x8x16x4xf32> to vector<8x16x4xf32>
    %175 = vector.shape_cast %174 : vector<8x16x4xf32> to vector<128x4xf32>
    %c1_255 = arith.constant 1 : index
    %c1_256 = arith.constant 1 : index
    %c1_257 = arith.constant 1 : index
    %c0_258 = arith.constant 0 : index
    %c0_259 = arith.constant 0 : index
    %c0_260 = arith.constant 0 : index
    %176 = vector.load %arg3[%c1_255, %c1_256, %c1_257, %c0_258, %c0_259, %c0_260] : memref<2x2x2x2x4x4xf32, #tpu.memory_space<vmem>>, vector<1x1x1x1x4x4xf32>
    %177 = vector.shape_cast %176 : vector<1x1x1x1x4x4xf32> to vector<4x4xf32>
    %cst_261 = arith.constant dense<0.000000e+00> : vector<128x4xf32>
    %178 = tpu.matmul %175, %177, %cst_261 {dimension_numbers = #tpu.dot_dimension_numbers<[1], [0], [0], [1], [0, 0, 1, 1], [], []>} : vector<128x4xf32>, vector<4x4xf32>, vector<128x4xf32> -> vector<128x4xf32>
    %c0_262 = arith.constant 0 : index
    %c0_263 = arith.constant 0 : index
    %179 = vector.load %arg7[%c0_262, %c0_263] : memref<128x4xf32, #tpu.memory_space<vmem>>, vector<128x4xf32>
    %180 = arith.addf %179, %178 : vector<128x4xf32>
    %c0_264 = arith.constant 0 : index
    %c0_265 = arith.constant 0 : index
    %181 = vector.load %arg7[%c0_264, %c0_265] : memref<128x4xf32, #tpu.memory_space<vmem>>, vector<128x4xf32>
    tpu.vector_store %arg7[%c0_264, %c0_265], %180 {strides = array<i32>} : memref<128x4xf32, #tpu.memory_space<vmem>>, vector<128x4xf32>,
    %c2_266 = arith.constant 2 : index
    %c2_267 = arith.constant 2 : index
    %c0_268 = arith.constant 0 : index
    %c0_269 = arith.constant 0 : index
    %182 = vector.load %arg6[%c2_266, %c2_267, %c0_268, %c0_269] : memref<3x10x16x4xf32, #tpu.memory_space<vmem>>, vector<1x8x16x4xf32>
    %183 = vector.shape_cast %182 : vector<1x8x16x4xf32> to vector<8x16x4xf32>
    %184 = vector.shape_cast %183 : vector<8x16x4xf32> to vector<128x4xf32>
    %c1_270 = arith.constant 1 : index
    %c1_271 = arith.constant 1 : index
    %c1_272 = arith.constant 1 : index
    %c1_273 = arith.constant 1 : index
    %c0_274 = arith.constant 0 : index
    %c0_275 = arith.constant 0 : index
    %185 = vector.load %arg3[%c1_270, %c1_271, %c1_272, %c1_273, %c0_274, %c0_275] : memref<2x2x2x2x4x4xf32, #tpu.memory_space<vmem>>, vector<1x1x1x1x4x4xf32>
    %186 = vector.shape_cast %185 : vector<1x1x1x1x4x4xf32> to vector<4x4xf32>
    %cst_276 = arith.constant dense<0.000000e+00> : vector<128x4xf32>
    %187 = tpu.matmul %184, %186, %cst_276 {dimension_numbers = #tpu.dot_dimension_numbers<[1], [0], [0], [1], [0, 0, 1, 1], [], []>} : vector<128x4xf32>, vector<4x4xf32>, vector<128x4xf32> -> vector<128x4xf32>
    %c0_277 = arith.constant 0 : index
    %c0_278 = arith.constant 0 : index
    %188 = vector.load %arg7[%c0_277, %c0_278] : memref<128x4xf32, #tpu.memory_space<vmem>>, vector<128x4xf32>
    %189 = arith.addf %188, %187 : vector<128x4xf32>
    %c0_279 = arith.constant 0 : index
    %c0_280 = arith.constant 0 : index
    %190 = vector.load %arg7[%c0_279, %c0_280] : memref<128x4xf32, #tpu.memory_space<vmem>>, vector<128x4xf32>
    tpu.vector_store %arg7[%c0_279, %c0_280], %189 {strides = array<i32>} : memref<128x4xf32, #tpu.memory_space<vmem>>, vector<128x4xf32>,
    %c0_281 = arith.constant 0 : index
    %c0_282 = arith.constant 0 : index
    %191 = vector.load %arg7[%c0_281, %c0_282] : memref<128x4xf32, #tpu.memory_space<vmem>>, vector<128x4xf32>
    %192 = vector.broadcast %36 : vector<1x4xf32> to vector<128x4xf32>
    %193 = arith.addf %191, %192 : vector<128x4xf32>
    %c0_283 = arith.constant 0 : index
    %c1_284 = arith.constant 1 : index
    %c1_285 = arith.constant 1 : index
    %c0_286 = arith.constant 0 : index
    %c0_287 = arith.constant 0 : index
    %194 = vector.load %arg5[%c0_283, %c1_284, %c1_285, %c0_286, %c0_287] : memref<1x2x2x128x4xf32, #tpu.memory_space<vmem>>, vector<1x1x1x128x4xf32>
    %195 = vector.shape_cast %194 : vector<1x1x1x128x4xf32> to vector<128x4xf32>
    %196 = vector.shape_cast %193 : vector<128x4xf32> to vector<1x1x1x128x4xf32>
    tpu.vector_store %arg5[%c0_283, %c1_284, %c1_285, %c0_286, %c0_287], %196 {strides = array<i32>} : memref<1x2x2x128x4xf32, #tpu.memory_space<vmem>>, vector<1x1x1x128x4xf32>,
    return
  }
  func.func @transform_0(%arg0: i32, %arg1: i32) -> (i32, i32, i32, i32) {
    %c0_i32 = arith.constant 0 : i32
    %c0_i32_0 = arith.constant 0 : i32
    %c0_i32_1 = arith.constant 0 : i32
    %c0_i32_2 = arith.constant 0 : i32
    return %arg0, %c0_i32, %c0_i32_0, %c0_i32_1 : i32, i32, i32, i32
  }
  func.func @transform_1(%arg0: i32, %arg1: i32) -> (i32, i32, i32, i32, i32, i32) {
    %c0_i32 = arith.constant 0 : i32
    %c0_i32_0 = arith.constant 0 : i32
    %c0_i32_1 = arith.constant 0 : i32
    %c0_i32_2 = arith.constant 0 : i32
    %c0_i32_3 = arith.constant 0 : i32
    %c0_i32_4 = arith.constant 0 : i32
    %c0_i32_5 = arith.constant 0 : i32
    return %c0_i32, %c0_i32_0, %c0_i32_1, %c0_i32_2, %c0_i32_3, %c0_i32_4 : i32, i32, i32, i32, i32, i32
  }
  func.func @transform_2(%arg0: i32, %arg1: i32) -> (i32, i32) {
    %c0_i32 = arith.constant 0 : i32
    %c0_i32_0 = arith.constant 0 : i32
    %c0_i32_1 = arith.constant 0 : i32
    return %c0_i32, %c0_i32_0 : i32, i32
  }
  func.func @transform_3(%arg0: i32, %arg1: i32) -> (i32, i32, i32, i32, i32) {
    %c0_i32 = arith.constant 0 : i32
    %c0_i32_0 = arith.constant 0 : i32
    %c0_i32_1 = arith.constant 0 : i32
    %c0_i32_2 = arith.constant 0 : i32
    return %arg0, %c0_i32, %c0_i32_0, %arg1, %c0_i32_1 : i32, i32, i32, i32, i32
  }
}

</mosaic_0001>

<bundles_post_ra>
// kernel: upsample2d_3daware.1
= control target key start
LH: loop header
LB: loop body
LE: loop exit
PB: predicated region body
PF: predicated region fallthrough
CT: control target
= control target key end

     0   :  { %s6163_s12 = smov 0   ;;  %s6165_s13 = smov 0   ;;  %s7643_s0 = inlined_call_operand.vmem [shape: f32[2,16,16,4], index: 0, kind: input, shape index: {}]   ;;  %s7644_s1 = inlined_call_operand.vmem [shape: f32[2,2,2,2,4,4], index: 1, kind: input, shape index: {}]   ;;  %s7645_s2 = inlined_call_operand.vmem [shape: f32[1,4], index: 2, kind: input, shape index: {}]   ;;  %s7646_s3 = inlined_call_operand.vmem [shape: f32[2,2,2,256,4], index: 3, kind: output, shape index: {}]  }
   0x1   :  { %s6167_s14 = smov 0   ;;  %s6169_s15 = smov 0  }
   0x2   :  { %s6171_s16 = smov 0   ;;  %s6173_s17 = smov 0  }
   0x3   :  { %s6175_s18 = smov 0  }
   0x4 LB: > { %s22_s19 = sadd.s32 1, %s6130_s16  ;;  %s25_s20 = sadd.s32 1, %s6134_s17  ;;  %s6138_s18 = sphi %s6175_s18, %s13_s18   ;;  %s6134_s17 = sphi %s6173_s17, %s7653_s17   ;;  %s6130_s16 = sphi %s6171_s16, %s7652_s16   ;;  %s6126_s15 = sphi %s6169_s15, %s7651_s15   ;;  %s6122_s14 = sphi %s6167_s14, %s7650_s14   ;;  %s6118_s13 = sphi %s6165_s13, %s7649_s13   ;;  %s6114_s12 = sphi %s6163_s12, %s7648_s12  }
   0x5   : > { %p23_p0 = scmp.ge.s32.totalorder %s22_s19, 2  ;;  %s4973_s21 = sadd.s32 4294967295, %s6138_s18  }
   0x6   : > { %p112_p1 = scmp.ne.s32.totalorder %s6118_s13, %s6114_s12  ;;  %p113_p2 = scmp.eq.s32.totalorder %s4973_s21, 3 }
   0x7   : > { %s7655_s19 = smov (%p23_p0, %s22_s19), 0  ;;  %s7657_s20 = smov (!%p23_p0, %s25_s20), %s6134_s17 }
   0x8   : > { %s98_s22 = ssub.s32 %s6130_s16, %s7655_s19  ;;  %p27_p3 = scmp.ge.s32.totalorder %s7657_s20, 2 }
   0x9   : > { %p4977_p4 = scmp.ge.s32.totalorder %s6138_s18, 1  ;;  %p6209_p5 = por %p113_p2, %p112_p1 }
   0xa   : > { %p151_p6 = scmp.lt.s32.totalorder %s6138_s18, 5  ;;  %s7659_s20 = smov (%p27_p3, %s7657_s20), 0 }
   0xb   : > { %s97_s24 = ssub.s32 %s6134_s17, %s7659_s20  ;;  %s102_s26 = sadd.s32 1, %s6118_s13 }
   0xc   : > { %p152_p7 = pnand %p4977_p4, %p151_p6  ;;  %s99_s25 = sor.u32 %s98_s22, %s97_s24 }
   0xd   : > { %p100_p8 = scmp.eq.s32.totalorder %s99_s25, 0  ;;  %s171_s28 = sand.u32 (!%p152_p7), 1, %s6114_s12  }
   0xe   : > { %155 = sbr.rel (%p152_p7) target bundleno = 586 (0x24a), region = 32  ;;  %s4981_s29 = sshll.u32 (!%p152_p7), %s6122_s14, 3 }
   0xf   : > { %s6220_s27 = scalar_select %p100_p8, %s6118_s13, %s102_s26  }
  0x10   : > { %s6224_s30 = sshll.u32 (!%p152_p7), %s171_s28, 9  ;;  %p174_p9 = scmp.lt.s32.totalorder (!%p152_p7), %s6126_s15, 1 }
  0x11   : > { %s5335_s5 = sshll.u32 (!%p152_p7), %s6122_s14, 7  ;;  %s6322_s11 = scalar_lea.vmem (!%p152_p7), [#allocation4], %s6224_s30 }
  0x12   : > { %p4983_p10 = scmp.ne.s32.totalorder (!%p152_p7), %s6122_s14, 0 }
  0x13   : > { %vm180_vm0 = vcmask 24576   ;;  %v6140_v0 = vmov 0.0   ;;  %s175_s4 = scalar_select %p174_p9, %s6126_s15, 1  ;;  %vm222_vm1 = vcmask 31744   ;;  %vm241_vm2 = vcmask 30720  }
  0x14   : > { %181 = vst.msk [vmem:[#allocation2] sm:$0x1] %vm180_vm0, %v6140_v0  ;;  %182 = vst.msk [vmem:[#allocation2 + $0x10] sm:$0x1] %vm180_vm0, %v6140_v0  ;;  %vm258_vm3 = vcmask 31745  }
  0x15   : > { %183 = vst.msk [vmem:[#allocation2 + $0x20] sm:$0x1] %vm180_vm0, %v6140_v0  ;;  %184 = vst.msk [vmem:[#allocation2 + $0x30] sm:$0x1] %vm180_vm0, %v6140_v0  ;;  %s5334_s6 = sshll.u32 %s175_s4, 8 }
  0x16   : > { %185 = vst.msk [vmem:[#allocation2 + $0x40] sm:$0x1] %vm180_vm0, %v6140_v0  ;;  %186 = vst.msk [vmem:[#allocation2 + $0x50] sm:$0x1] %vm180_vm0, %v6140_v0  ;;  %s6252_s9 = scalar_lea.vmem %s7643_s0, %s5334_s6 }
  0x17   : > { %187 = vst.msk [vmem:[#allocation2 + $0x60] sm:$0x1] %vm180_vm0, %v6140_v0  ;;  %188 = vst.msk [vmem:[#allocation2 + $0x70] sm:$0x1] %vm180_vm0, %v6140_v0  ;;  %s6255_s10 = scalar_lea.vmem %s6252_s9, %s5335_s5 }
  0x18   : > { %189 = vst.msk [vmem:[#allocation2 + $0x80] sm:$0x1] %vm180_vm0, %v6140_v0  ;;  %190 = vst.msk [vmem:[#allocation2 + $0x90] sm:$0x1] %vm180_vm0, %v6140_v0  ;;  %v205_v1 = vld [vmem:[%s6255_s10] sm:$0xff]  ;;  %v206_v2 = vld [vmem:[%s6255_s10 + $0x8] sm:$0xff] }
  0x19   : > { %192 = vst.msk [vmem:[#allocation2 + $0x14f] sm:$0x1] %vm180_vm0, %v6140_v0  ;;  %193 = vst.msk [vmem:[#allocation2 + $0x15f] sm:$0x1] %vm180_vm0, %v6140_v0  ;;  %v207_v3 = vld [vmem:[%s6255_s10 + $0x10] sm:$0xff]  ;;  %v208_v4 = vld [vmem:[%s6255_s10 + $0x18] sm:$0xff] }
  0x1a   : > { %194 = vst.msk [vmem:[#allocation2 + $0x16f] sm:$0x1] %vm180_vm0, %v6140_v0  ;;  %195 = vst.msk [vmem:[#allocation2 + $0x17f] sm:$0x1] %vm180_vm0, %v6140_v0  ;;  %v209_v5 = vld [vmem:[%s6255_s10 + $0x20] sm:$0xff]  ;;  %v210_v6 = vld [vmem:[%s6255_s10 + $0x28] sm:$0xff] }
  0x1b   : > { %196 = vst.msk [vmem:[#allocation2 + $0x18f] sm:$0x1] %vm180_vm0, %v6140_v0  ;;  %197 = vst.msk [vmem:[#allocation2 + $0x19f] sm:$0x1] %vm180_vm0, %v6140_v0  ;;  %v211_v7 = vld [vmem:[%s6255_s10 + $0x30] sm:$0xff]  ;;  %v212_v8 = vld [vmem:[%s6255_s10 + $0x38] sm:$0xff] }
  0x1c   : > { %198 = vst.msk [vmem:[#allocation2 + $0x1af] sm:$0x1] %vm180_vm0, %v6140_v0  ;;  %199 = vst.msk [vmem:[#allocation2 + $0x1bf] sm:$0x1] %vm180_vm0, %v6140_v0  ;;  %v213_v9 = vld [vmem:[%s6255_s10 + $0x40] sm:$0xff]  ;;  %v214_v10 = vld [vmem:[%s6255_s10 + $0x48] sm:$0xff] }
  0x1d   : > { %200 = vst.msk [vmem:[#allocation2 + $0x1cf] sm:$0x1] %vm180_vm0, %v6140_v0  ;;  %201 = vst.msk [vmem:[#allocation2 + $0x1df] sm:$0x1] %vm180_vm0, %v6140_v0  ;;  %v215_v11 = vld [vmem:[%s6255_s10 + $0x50] sm:$0xff]  ;;  %v216_v12 = vld [vmem:[%s6255_s10 + $0x58] sm:$0xff] }
  0x1e   : > { %223 = vst.msk [vmem:[#allocation2 + $0xb0] sm:$0xff] %vm222_vm1, %v205_v1  ;;  %240 = vst.msk [vmem:[#allocation2 + $0x11] sm:$0xff] %vm222_vm1, %v205_v1  ;;  %v217_v13 = vld [vmem:[%s6255_s10 + $0x60] sm:$0xff]  ;;  %v218_v14 = vld [vmem:[%s6255_s10 + $0x68] sm:$0xff] }
  0x1f   : > { %224 = vst.msk [vmem:[#allocation2 + $0xb8] sm:$0xff] %vm222_vm1, %v206_v2  ;;  %260 = vst.msk [vmem:[#allocation2 + $0x157] sm:$0xff] %vm222_vm1, %v206_v2  ;;  %v219_v15 = vld [vmem:[%s6255_s10 + $0x70] sm:$0xff]  ;;  %v220_v16 = vld [vmem:[%s6255_s10 + $0x78] sm:$0xff] }
  0x20   : > { %225 = vst.msk [vmem:[#allocation2 + $0xc0] sm:$0xff] %vm222_vm1, %v207_v3  ;;  %243 = vst.msk [vmem:[#allocation2 + $0x21] sm:$0xff] %vm222_vm1, %v207_v3 }
  0x21   : > { %242 = vst.msk [vmem:[#allocation2 + $0x19] sm:$0x7f] %vm241_vm2, %v206_v2  ;;  %244 = vst.msk [vmem:[#allocation2 + $0x29] sm:$0x7f] %vm241_vm2, %v208_v4 }
  0x22   : > { %259 = vst.msk [vmem:[#allocation2 + $0x14f] sm:$0xfe] %vm258_vm3, %v205_v1  ;;  %261 = vst.msk [vmem:[#allocation2 + $0x15f] sm:$0xfe] %vm258_vm3, %v207_v3 }
  0x23   : > { %226 = vst.msk [vmem:[#allocation2 + $0xc8] sm:$0xff] %vm222_vm1, %v208_v4  ;;  %262 = vst.msk [vmem:[#allocation2 + $0x167] sm:$0xff] %vm222_vm1, %v208_v4 }
  0x24   : > { %227 = vst.msk [vmem:[#allocation2 + $0xd0] sm:$0xff] %vm222_vm1, %v209_v5  ;;  %245 = vst.msk [vmem:[#allocation2 + $0x31] sm:$0xff] %vm222_vm1, %v209_v5 }
  0x25   : > { %228 = vst.msk [vmem:[#allocation2 + $0xd8] sm:$0xff] %vm222_vm1, %v210_v6  ;;  %264 = vst.msk [vmem:[#allocation2 + $0x177] sm:$0xff] %vm222_vm1, %v210_v6 }
  0x26   : > { %246 = vst.msk [vmem:[#allocation2 + $0x39] sm:$0x7f] %vm241_vm2, %v210_v6  ;;  %248 = vst.msk [vmem:[#allocation2 + $0x49] sm:$0x7f] %vm241_vm2, %v212_v8 }
  0x27   : > { %263 = vst.msk [vmem:[#allocation2 + $0x16f] sm:$0xfe] %vm258_vm3, %v209_v5  ;;  %265 = vst.msk [vmem:[#allocation2 + $0x17f] sm:$0xfe] %vm258_vm3, %v211_v7 }
  0x28   : > { %229 = vst.msk [vmem:[#allocation2 + $0xe0] sm:$0xff] %vm222_vm1, %v211_v7  ;;  %247 = vst.msk [vmem:[#allocation2 + $0x41] sm:$0xff] %vm222_vm1, %v211_v7 }
  0x29   : > { %230 = vst.msk [vmem:[#allocation2 + $0xe8] sm:$0xff] %vm222_vm1, %v212_v8  ;;  %266 = vst.msk [vmem:[#allocation2 + $0x187] sm:$0xff] %vm222_vm1, %v212_v8 }
  0x2a   : > { %231 = vst.msk [vmem:[#allocation2 + $0xf0] sm:$0xff] %vm222_vm1, %v213_v9  ;;  %249 = vst.msk [vmem:[#allocation2 + $0x51] sm:$0xff] %vm222_vm1, %v213_v9 }
  0x2b   : > { %267 = vst.msk [vmem:[#allocation2 + $0x18f] sm:$0xfe] %vm258_vm3, %v213_v9  ;;  %269 = vst.msk [vmem:[#allocation2 + $0x19f] sm:$0xfe] %vm258_vm3, %v215_v11 }
  0x2c   : > { %232 = vst.msk [vmem:[#allocation2 + $0xf8] sm:$0xff] %vm222_vm1, %v214_v10  ;;  %268 = vst.msk [vmem:[#allocation2 + $0x197] sm:$0xff] %vm222_vm1, %v214_v10 }
  0x2d   : > { %233 = vst.msk [vmem:[#allocation2 + $0x100] sm:$0xff] %vm222_vm1, %v215_v11  ;;  %251 = vst.msk [vmem:[#allocation2 + $0x61] sm:$0xff] %vm222_vm1, %v215_v11 }
  0x2e   : > { %234 = vst.msk [vmem:[#allocation2 + $0x108] sm:$0xff] %vm222_vm1, %v216_v12  ;;  %270 = vst.msk [vmem:[#allocation2 + $0x1a7] sm:$0xff] %vm222_vm1, %v216_v12 }
  0x2f   : > { %250 = vst.msk [vmem:[#allocation2 + $0x59] sm:$0x7f] %vm241_vm2, %v214_v10  ;;  %252 = vst.msk [vmem:[#allocation2 + $0x69] sm:$0x7f] %vm241_vm2, %v216_v12 }
  0x30   : > { %235 = vst.msk [vmem:[#allocation2 + $0x110] sm:$0xff] %vm222_vm1, %v217_v13  ;;  %253 = vst.msk [vmem:[#allocation2 + $0x71] sm:$0xff] %vm222_vm1, %v217_v13 }
  0x31   : > { %236 = vst.msk [vmem:[#allocation2 + $0x118] sm:$0xff] %vm222_vm1, %v218_v14  ;;  %272 = vst.msk [vmem:[#allocation2 + $0x1b7] sm:$0xff] %vm222_vm1, %v218_v14  ;;  %278 = sbr.rel (%p4983_p10) target bundleno = 58 (0x3a), region = 36 }
  0x32   : > { %237 = vst.msk [vmem:[#allocation2 + $0x120] sm:$0xff] %vm222_vm1, %v219_v15  ;;  %255 = vst.msk [vmem:[#allocation2 + $0x81] sm:$0xff] %vm222_vm1, %v219_v15 }
  0x33   : > { %254 = vst.msk [vmem:[#allocation2 + $0x79] sm:$0x7f] %vm241_vm2, %v218_v14  ;;  %256 = vst.msk [vmem:[#allocation2 + $0x89] sm:$0x7f] %vm241_vm2, %v220_v16 }
  0x34   : > { %271 = vst.msk [vmem:[#allocation2 + $0x1af] sm:$0xfe] %vm258_vm3, %v217_v13  ;;  %273 = vst.msk [vmem:[#allocation2 + $0x1bf] sm:$0xfe] %vm258_vm3, %v219_v15 }
  0x35   : > { %238 = vst.msk [vmem:[#allocation2 + $0x128] sm:$0xff] %vm222_vm1, %v220_v16  ;;  %274 = vst.msk [vmem:[#allocation2 + $0x1c7] sm:$0xff] %vm222_vm1, %v220_v16 }
  0x36   : > { %v6141_v17 = vmov 0.0  }
  0x37   : > { %279 = vst.msk [vmem:[#allocation2] sm:$0xff] %vm222_vm1, %v6141_v17  ;;  %280 = vst.msk [vmem:[#allocation2 + $0x8] sm:$0xff] %vm222_vm1, %v6141_v17 }
  0x38   : > { %282 = vst.msk [vmem:[#allocation2 + $0xa0] sm:$0xff] %vm222_vm1, %v6141_v17  ;;  %283 = vst.msk [vmem:[#allocation2 + $0xa8] sm:$0xff] %vm222_vm1, %v6141_v17 }
  0x39   : > { %284 = vst.msk [vmem:[#allocation2 + $0x140] sm:$0xff] %vm222_vm1, %v6141_v17  ;;  %285 = vst.msk [vmem:[#allocation2 + $0x148] sm:$0xff] %vm222_vm1, %v6141_v17 }
  0x3a PF: > { %p4984_p11 = scmp.le.s32.totalorder %s6122_s14, 0 }
  0x3b   : > { %s4985_s12 = sadd.s32 (!%p4984_p11), 4294967295, %s4981_s29 }
  0x3c   : > { %289 = sbr.rel (%p4984_p11) target bundleno = 70 (0x46), region = 40  ;;  %s4986_s21 = sshll.u32 (!%p4984_p11), %s4985_s12, 4 }
  0x3d   : > { %s292_s22 = scalar_lea.vmem (!%p4984_p11), %s6252_s9, %s4986_s21 }
  0x41   : > { %v293_v18 = vld [vmem:[%s292_s22] sm:$0xff]  ;;  %v294_v19 = vld [vmem:[%s292_s22 + $0x8] sm:$0xff] }
  0x42   : > { %296 = vst.msk [vmem:[#allocation2 + $0xa0] sm:$0xff] %vm222_vm1, %v293_v18  ;;  %298 = vst.msk [vmem:[#allocation2 + $0x1] sm:$0xff] %vm222_vm1, %v293_v18 }
  0x43   : > { %300 = vst.msk [vmem:[#allocation2 + $0x13f] sm:$0xfe] %vm258_vm3, %v293_v18 }
  0x44   : > { %297 = vst.msk [vmem:[#allocation2 + $0xa8] sm:$0xff] %vm222_vm1, %v294_v19  ;;  %301 = vst.msk [vmem:[#allocation2 + $0x147] sm:$0xff] %vm222_vm1, %v294_v19 }
  0x45   : > { %299 = vst.msk [vmem:[#allocation2 + $0x9] sm:$0x7f] %vm241_vm2, %v294_v19 }
  0x46 PF: > { %p4987_p12 = scmp.ne.s32.totalorder %s6122_s14, 1 }
  0x48   : > { %305 = sbr.rel (%p4987_p12) target bundleno = 81 (0x51), region = 44 }
  0x4d   : > { %v6142_v20 = vmov 0.0  }
  0x4e   : > { %307 = vst.msk [vmem:[#allocation2 + $0x90] sm:$0xff] %vm222_vm1, %v6142_v20  ;;  %308 = vst.msk [vmem:[#allocation2 + $0x98] sm:$0xff] %vm222_vm1, %v6142_v20 }
  0x4f   : > { %310 = vst.msk [vmem:[#allocation2 + $0x130] sm:$0xff] %vm222_vm1, %v6142_v20  ;;  %311 = vst.msk [vmem:[#allocation2 + $0x138] sm:$0xff] %vm222_vm1, %v6142_v20 }
  0x50   : > { %313 = vst.msk [vmem:[#allocation2 + $0x1d0] sm:$0xff] %vm222_vm1, %v6142_v20  ;;  %314 = vst.msk [vmem:[#allocation2 + $0x1d8] sm:$0xff] %vm222_vm1, %v6142_v20 }
  0x51 PF: > { %p4988_p13 = scmp.ge.s32.totalorder %s6122_s14, 1 }
  0x53   : > { %318 = sbr.rel (%p4988_p13) target bundleno = 93 (0x5d), region = 48 }
  0x58   : > { %v4990_v21 = vld [vmem:[%s6255_s10 + $0x80] sm:$0xff]  ;;  %v4991_v22 = vld [vmem:[%s6255_s10 + $0x88] sm:$0xff] }
  0x59   : > { %326 = vst.msk [vmem:[#allocation2 + $0x130] sm:$0xff] %vm222_vm1, %v4990_v21  ;;  %329 = vst.msk [vmem:[#allocation2 + $0x91] sm:$0xff] %vm222_vm1, %v4990_v21 }
  0x5a   : > { %332 = vst.msk [vmem:[#allocation2 + $0x1cf] sm:$0xfe] %vm258_vm3, %v4990_v21 }
  0x5b   : > { %327 = vst.msk [vmem:[#allocation2 + $0x138] sm:$0xff] %vm222_vm1, %v4991_v22  ;;  %333 = vst.msk [vmem:[#allocation2 + $0x1d7] sm:$0xff] %vm222_vm1, %v4991_v22 }
  0x5c   : > { %330 = vst.msk [vmem:[#allocation2 + $0x99] sm:$0x7f] %vm241_vm2, %v4991_v22 }
  0x5d PF: > { %v351_v23 = vld [vmem:[%s7644_s1] sm:$0xf]  ;;  %vm400_vm4 = vcmask 1043456   ;;  %v336_v25 = vld [vmem:[#allocation2 + $0x8] sm:$0xff]  ;;  %v6365_v27 = vld [vmem:[#allocation2 + $0x10] sm:$0xff]  ;;  %s5329_s29 = sshll.u32 (%p6209_p5), %s6122_s14, 4 }
  0x5e   : > { %v335_v24 = vld [vmem:[#allocation2] sm:$0xff]  ;;  %5608 = vmatprep.subr.msk.mxu0 %vm400_vm4, %v351_v23  ;;  %v5027_v26 = vld [vmem:[%s7644_s1 + $0x8] sm:$0xf]  ;;  %v6378_v30 = vld [vmem:[#allocation2 + $0x18] sm:$0xff]  ;;  %s5330_s30 = sshll.u32 (%p6209_p5), %s6126_s15, 7 }
  0x5f   : > { %5610 = vmatprep.mubr.msk.f32.mxu0 %vm222_vm1, %v335_v24  ;;  %5609 = vmatpush3.msk.msra.mxu0 %vm400_vm4, %v351_v23  ;;  %v5009_v28 = vld [vmem:[%s7644_s1 + $0x4] sm:$0xf]  ;;  %v6380_v31 = vld [vmem:[#allocation2 + $0xa8] sm:$0xff]  ;;  %v6391_v34 = vld [vmem:[#allocation2 + $0xb0] sm:$0xff]  ;;  %s4613_s23 = sadd.s32 (%p6209_p5), %s5330_s30, %s5329_s29 }
  0x60   : > { %v6371_v29 = vld [vmem:[#allocation2 + $0xa0] sm:$0xff]  ;;  %5611 = vmatmul.mubr.msk.f32.vlgmr.msra.gmra.mxu0 %vm222_vm1, %v336_v25  ;;  %5660 = vmatprep.subr.msk.mxu0 %vm400_vm4, %v5027_v26  ;;  %v5045_v33 = vld [vmem:[%s7644_s1 + $0xc] sm:$0xf]  ;;  %v6402_v36 = vld [vmem:[#allocation2 + $0xb8] sm:$0xff]  ;;  %s5331_s4 = sshll.u32 (%p6209_p5), %s4613_s23, 3 }
  0x61   : > { %5661 = vmatpush3.msk.msra.mxu0 %vm400_vm4, %v5027_v26  ;;  %5613 = vmatprep.mubr.msk.f32.mxu0 %vm222_vm1, %v6365_v27  ;;  %v6383_v32 = vld [vmem:[#allocation2 + $0x20] sm:$0xff]  ;;  %v6399_v35 = vld [vmem:[#allocation2 + $0x28] sm:$0xff]  ;;  %v6404_v37 = vld [vmem:[#allocation2 + $0x30] sm:$0xff]  ;;  %s7501_s7 = scalar_lea.vmem (%p6209_p5), %s7646_s3, %s5331_s4 }
  0x62   : > { %5634 = vmatprep.subr.msk.mxu1 %vm400_vm4, %v5009_v28  ;;  %5636 = vmatprep.mubr.msk.f32.mxu1 %vm222_vm1, %v6371_v29  ;;  %v6409_v38 = vld [vmem:[#allocation2 + $0xc0] sm:$0xff]  ;;  %v5064_v39 = vld [vmem:[%s7644_s1 + $0x10] sm:$0xf]  ;;  %v6420_v40 = vld [vmem:[#allocation2 + $0x38] sm:$0xff] }
  0x63   : > { %5635 = vmatpush3.msk.msra.mxu1 %vm400_vm4, %v5009_v28  ;;  %v6424_v41 = vld [vmem:[#allocation2 + $0xc8] sm:$0xff]  ;;  %v5082_v42 = vld [vmem:[%s7644_s1 + $0x14] sm:$0xf]  ;;  %v6429_v43 = vld [vmem:[#allocation2 + $0x40] sm:$0xff]  ;;  %5712 = vmatprep.subr.msk.mxu0 %vm400_vm4, %v5064_v39 }
  0x64   : > { %5614 = vmatmul.mubr.msk.f32.gmra.mxu0 %vm222_vm1, %v6378_v30  ;;  %5637 = vmatmul.mubr.msk.f32.vlgmr.msra.gmra.mxu1 %vm222_vm1, %v6380_v31  ;;  %v6431_v44 = vld [vmem:[#allocation2 + $0xd0] sm:$0xff]  ;;  %v6441_v45 = vld [vmem:[#allocation2 + $0x48] sm:$0xff]  ;;  %v6445_v46 = vld [vmem:[#allocation2 + $0xd8] sm:$0xff] }
  0x65   : > { %5616 = vmatprep.mubr.msk.f32.mxu0 %vm222_vm1, %v6383_v32  ;;  %5686 = vmatprep.subr.msk.mxu1 %vm400_vm4, %v5045_v33  ;;  %v6447_v47 = vld [vmem:[#allocation2 + $0x50] sm:$0xff]  ;;  %v6449_v48 = vld [vmem:[#allocation2 + $0xe0] sm:$0xff]  ;;  %v6457_v49 = vld [vmem:[#allocation2 + $0x58] sm:$0xff] }
  0x66   : > { %5639 = vmatprep.mubr.msk.f32.mxu1 %vm222_vm1, %v6391_v34  ;;  %5687 = vmatpush3.msk.msra.mxu1 %vm400_vm4, %v5045_v33  ;;  %v6461_v50 = vld [vmem:[#allocation2 + $0xe8] sm:$0xff]  ;;  %v6463_v51 = vld [vmem:[#allocation2 + $0x60] sm:$0xff]  ;;  %v6465_v52 = vld [vmem:[#allocation2 + $0xf0] sm:$0xff] }
  0x67   : > { %5738 = vmatprep.subr.msk.mxu1 %vm400_vm4, %v5082_v42  ;;  %v6473_v53 = vld [vmem:[#allocation2 + $0x68] sm:$0xff]  ;;  %v6477_v54 = vld [vmem:[#allocation2 + $0xf8] sm:$0xff]  ;;  %v6479_v55 = vld [vmem:[#allocation2 + $0x70] sm:$0xff] }
  0x68   : > { %5617 = vmatmul.mubr.msk.f32.gmra.mxu0 %vm222_vm1, %v6399_v35  ;;  %5640 = vmatmul.mubr.msk.f32.gmra.mxu1 %vm222_vm1, %v6402_v36  ;;  %v6481_v56 = vld [vmem:[#allocation2 + $0x100] sm:$0xff]  ;;  %v6489_v57 = vld [vmem:[#allocation2 + $0x78] sm:$0xff]  ;;  %v6493_v58 = vld [vmem:[#allocation2 + $0x108] sm:$0xff] }
  0x69   : > { %5619 = vmatprep.mubr.msk.f32.mxu0 %vm222_vm1, %v6404_v37  ;;  %5642 = vmatprep.mubr.msk.f32.mxu1 %vm222_vm1, %v6409_v38  ;;  %v6495_v59 = vld [vmem:[#allocation2 + $0x110] sm:$0xff]  ;;  %v6505_v60 = vld [vmem:[#allocation2 + $0x118] sm:$0xff]  ;;  %v6565_v63 = vld [vmem:[#allocation2 + $0x80] sm:$0xff] }
  0x6a   : > { %v5100_v61 = vld [vmem:[%s7644_s1 + $0x18] sm:$0xf]  ;;  %v5118_v62 = vld [vmem:[%s7644_s1 + $0x1c] sm:$0xf]  ;;  %v6573_v0 = vld [vmem:[#allocation2 + $0x88] sm:$0xff] }
  0x6b   : > { %v6577_v1 = vld [vmem:[#allocation2 + $0x120] sm:$0xff]  ;;  %v6587_v2 = vld [vmem:[#allocation2 + $0x128] sm:$0xff]  ;;  %v6600_v6 = vld [vmem:[#allocation2 + $0x150] sm:$0xff] }
  0x6c   : > { %5620 = vmatmul.mubr.msk.f32.gmra.mxu0 %vm222_vm1, %v6420_v40  ;;  %5643 = vmatmul.mubr.msk.f32.gmra.mxu1 %vm222_vm1, %v6424_v41  ;;  %v1636_v3 = vld [vmem:[#allocation2 + $0x140] sm:$0xff]  ;;  %v1637_v5 = vld [vmem:[#allocation2 + $0x148] sm:$0xff]  ;;  %v6613_v8 = vld [vmem:[#allocation2 + $0x158] sm:$0xff] }
  0x6d   : > { %5622 = vmatprep.mubr.msk.f32.mxu0 %vm222_vm1, %v6429_v43  ;;  %5645 = vmatprep.mubr.msk.f32.mxu1 %vm222_vm1, %v6431_v44  ;;  %v5152_v4 = vld [vmem:[%s7644_s1 + $0x20] sm:$0xf]  ;;  %v5170_v7 = vld [vmem:[%s7644_s1 + $0x24] sm:$0xf]  ;;  %v6627_v10 = vld [vmem:[#allocation2 + $0x168] sm:$0xff] }
  0x6e   : > { %v6616_v9 = vld [vmem:[#allocation2 + $0x160] sm:$0xff]  ;;  %v6629_v11 = vld [vmem:[#allocation2 + $0x170] sm:$0xff]  ;;  %v6639_v12 = vld [vmem:[#allocation2 + $0x178] sm:$0xff] }
  0x6f   : > { %v6641_v13 = vld [vmem:[#allocation2 + $0x180] sm:$0xff]  ;;  %v6651_v14 = vld [vmem:[#allocation2 + $0x188] sm:$0xff]  ;;  %v6653_v15 = vld [vmem:[#allocation2 + $0x190] sm:$0xff] }
  0x70   : > { %5623 = vmatmul.mubr.msk.f32.gmra.mxu0 %vm222_vm1, %v6441_v45  ;;  %5646 = vmatmul.mubr.msk.f32.gmra.mxu1 %vm222_vm1, %v6445_v46  ;;  %v6663_v16 = vld [vmem:[#allocation2 + $0x198] sm:$0xff]  ;;  %v6665_v17 = vld [vmem:[#allocation2 + $0x1a0] sm:$0xff]  ;;  %v6675_v18 = vld [vmem:[#allocation2 + $0x1a8] sm:$0xff] }
  0x71   : > { %5625 = vmatprep.mubr.msk.f32.mxu0 %vm222_vm1, %v6447_v47  ;;  %5648 = vmatprep.mubr.msk.f32.mxu1 %vm222_vm1, %v6449_v48  ;;  %v6677_v19 = vld [vmem:[#allocation2 + $0x1b0] sm:$0xff]  ;;  %v6687_v20 = vld [vmem:[#allocation2 + $0x1b8] sm:$0xff]  ;;  %v5188_v21 = vld [vmem:[%s7644_s1 + $0x28] sm:$0xf] }
  0x72   : > { %v5206_v22 = vld [vmem:[%s7644_s1 + $0x2c] sm:$0xf]  ;;  %v6755_v23 = vld [vmem:[#allocation2 + $0x1c0] sm:$0xff]  ;;  %v5240_v25 = vld [vmem:[%s7644_s1 + $0x30] sm:$0xf] }
  0x73   : > { %v6765_v24 = vld [vmem:[#allocation2 + $0x1c8] sm:$0xff]  ;;  %v5258_v26 = vld [vmem:[%s7644_s1 + $0x34] sm:$0xf]  ;;  %v5294_v28 = vld [vmem:[%s7644_s1 + $0x3c] sm:$0xf] }
  0x74   : > { %5626 = vmatmul.mubr.msk.f32.gmra.mxu0 %vm222_vm1, %v6457_v49  ;;  %5649 = vmatmul.mubr.msk.f32.gmra.mxu1 %vm222_vm1, %v6461_v50 }
  0x75   : > { %5628 = vmatprep.mubr.msk.f32.mxu0 %vm222_vm1, %v6463_v51  ;;  %5651 = vmatprep.mubr.msk.f32.mxu1 %vm222_vm1, %v6465_v52 }
  0x78   : > { %5629 = vmatmul.mubr.msk.f32.gmra.mxu0 %vm222_vm1, %v6473_v53  ;;  %5652 = vmatmul.mubr.msk.f32.gmra.mxu1 %vm222_vm1, %v6477_v54 }
  0x79   : > { %5631 = vmatprep.mubr.msk.f32.mxu0 %vm222_vm1, %v6479_v55  ;;  %5654 = vmatprep.mubr.msk.f32.mxu1 %vm222_vm1, %v6481_v56 }
  0x7c   : > { %5632 = vmatmul.mubr.msk.f32.gmra.mxu0 %vm222_vm1, %v6489_v57  ;;  %5655 = vmatmul.mubr.msk.f32.gmra.mxu1 %vm222_vm1, %v6493_v58 }
  0x7d   : > { %5662 = vmatprep.mubr.msk.f32.mxu0 %vm222_vm1, %v6365_v27  ;;  %5657 = vmatprep.mubr.msk.f32.mxu1 %vm222_vm1, %v6495_v59 }
  0x80   : > { %5663 = vmatmul.mubr.msk.f32.vlgmr.msra.gmra.mxu0 %vm222_vm1, %v6378_v30  ;;  %5658 = vmatmul.mubr.msk.f32.gmra.mxu1 %vm222_vm1, %v6505_v60 }
  0x81   : > { %5713 = vmatpush3.msk.msra.mxu0 %vm400_vm4, %v5064_v39  ;;  %5665 = vmatprep.mubr.msk.f32.mxu0 %vm222_vm1, %v6383_v32 }
  0x82   : > { %5688 = vmatprep.mubr.msk.f32.mxu1 %vm222_vm1, %v6391_v34  ;;  %5764 = vmatprep.subr.msk.mxu0 %vm400_vm4, %v5100_v61 }
  0x84   : > { %5666 = vmatmul.mubr.msk.f32.gmra.mxu0 %vm222_vm1, %v6399_v35  ;;  %5689 = vmatmul.mubr.msk.f32.vlgmr.msra.gmra.mxu1 %vm222_vm1, %v6402_v36 }
  0x85   : > { %5668 = vmatprep.mubr.msk.f32.mxu0 %vm222_vm1, %v6404_v37  ;;  %5691 = vmatprep.mubr.msk.f32.mxu1 %vm222_vm1, %v6409_v38 }
  0x86   : > { %5739 = vmatpush3.msk.msra.mxu1 %vm400_vm4, %v5082_v42 }
  0x87   : > { %5790 = vmatprep.subr.msk.mxu1 %vm400_vm4, %v5118_v62 }
  0x88   : > { %5669 = vmatmul.mubr.msk.f32.gmra.mxu0 %vm222_vm1, %v6420_v40  ;;  %5692 = vmatmul.mubr.msk.f32.gmra.mxu1 %vm222_vm1, %v6424_v41 }
  0x89   : > { %5671 = vmatprep.mubr.msk.f32.mxu0 %vm222_vm1, %v6429_v43  ;;  %5694 = vmatprep.mubr.msk.f32.mxu1 %vm222_vm1, %v6431_v44 }
  0x8c   : > { %5672 = vmatmul.mubr.msk.f32.gmra.mxu0 %vm222_vm1, %v6441_v45  ;;  %5695 = vmatmul.mubr.msk.f32.gmra.mxu1 %vm222_vm1, %v6445_v46 }
  0x8d   : > { %5674 = vmatprep.mubr.msk.f32.mxu0 %vm222_vm1, %v6447_v47  ;;  %5697 = vmatprep.mubr.msk.f32.mxu1 %vm222_vm1, %v6449_v48 }
  0x90   : > { %5675 = vmatmul.mubr.msk.f32.gmra.mxu0 %vm222_vm1, %v6457_v49  ;;  %5698 = vmatmul.mubr.msk.f32.gmra.mxu1 %vm222_vm1, %v6461_v50 }
  0x91   : > { %5677 = vmatprep.mubr.msk.f32.mxu0 %vm222_vm1, %v6463_v51  ;;  %5700 = vmatprep.mubr.msk.f32.mxu1 %vm222_vm1, %v6465_v52 }
  0x94   : > { %5678 = vmatmul.mubr.msk.f32.gmra.mxu0 %vm222_vm1, %v6473_v53  ;;  %5701 = vmatmul.mubr.msk.f32.gmra.mxu1 %vm222_vm1, %v6477_v54 }
  0x95   : > { %5680 = vmatprep.mubr.msk.f32.mxu0 %vm222_vm1, %v6479_v55  ;;  %5703 = vmatprep.mubr.msk.f32.mxu1 %vm222_vm1, %v6481_v56 }
  0x98   : > { %5681 = vmatmul.mubr.msk.f32.gmra.mxu0 %vm222_vm1, %v6489_v57  ;;  %5704 = vmatmul.mubr.msk.f32.gmra.mxu1 %vm222_vm1, %v6493_v58 }
  0x99   : > { %5683 = vmatprep.mubr.msk.f32.mxu0 %vm222_vm1, %v6565_v63  ;;  %5706 = vmatprep.mubr.msk.f32.mxu1 %vm222_vm1, %v6495_v59 }
  0x9c   : > { %5684 = vmatmul.mubr.msk.f32.gmra.mxu0 %vm222_vm1, %v6573_v0  ;;  %5707 = vmatmul.mubr.msk.f32.gmra.mxu1 %vm222_vm1, %v6505_v60 }
  0x9d   : > { %5714 = vmatprep.mubr.msk.f32.mxu0 %vm222_vm1, %v6371_v29  ;;  %5709 = vmatprep.mubr.msk.f32.mxu1 %vm222_vm1, %v6577_v1  ;;  %v2978_v29 = vld [vmem:[#allocation2 + $0x90] sm:$0xff] }
  0xa0   : > { %5715 = vmatmul.mubr.msk.f32.vlgmr.msra.gmra.mxu0 %vm222_vm1, %v6380_v31  ;;  %5710 = vmatmul.mubr.msk.f32.gmra.mxu1 %vm222_vm1, %v6587_v2  ;;  %v6906_v31 = vld [vmem:[#allocation2 + $0x130] sm:$0xff] }
  0xa1   : > { %5765 = vmatpush3.msk.msra.mxu0 %vm400_vm4, %v5100_v61  ;;  %5717 = vmatprep.mubr.msk.f32.mxu0 %vm222_vm1, %v6391_v34 }
  0xa2   : > { %5740 = vmatprep.mubr.msk.f32.mxu1 %vm222_vm1, %v1636_v3  ;;  %5816 = vmatprep.subr.msk.mxu0 %vm400_vm4, %v5152_v4 }
  0xa4   : > { %5718 = vmatmul.mubr.msk.f32.gmra.mxu0 %vm222_vm1, %v6402_v36  ;;  %5741 = vmatmul.mubr.msk.f32.vlgmr.msra.gmra.mxu1 %vm222_vm1, %v1637_v5 }
  0xa5   : > { %5720 = vmatprep.mubr.msk.f32.mxu0 %vm222_vm1, %v6409_v38  ;;  %5743 = vmatprep.mubr.msk.f32.mxu1 %vm222_vm1, %v6600_v6 }
  0xa6   : > { %5791 = vmatpush3.msk.msra.mxu1 %vm400_vm4, %v5118_v62 }
  0xa7   : > { %5842 = vmatprep.subr.msk.mxu1 %vm400_vm4, %v5170_v7 }
  0xa8   : > { %5721 = vmatmul.mubr.msk.f32.gmra.mxu0 %vm222_vm1, %v6424_v41  ;;  %5744 = vmatmul.mubr.msk.f32.gmra.mxu1 %vm222_vm1, %v6613_v8 }
  0xa9   : > { %5723 = vmatprep.mubr.msk.f32.mxu0 %vm222_vm1, %v6431_v44  ;;  %5746 = vmatprep.mubr.msk.f32.mxu1 %vm222_vm1, %v6616_v9 }
  0xac   : > { %5724 = vmatmul.mubr.msk.f32.gmra.mxu0 %vm222_vm1, %v6445_v46  ;;  %5747 = vmatmul.mubr.msk.f32.gmra.mxu1 %vm222_vm1, %v6627_v10 }
  0xad   : > { %5726 = vmatprep.mubr.msk.f32.mxu0 %vm222_vm1, %v6449_v48  ;;  %5749 = vmatprep.mubr.msk.f32.mxu1 %vm222_vm1, %v6629_v11 }
  0xb0   : > { %5727 = vmatmul.mubr.msk.f32.gmra.mxu0 %vm222_vm1, %v6461_v50  ;;  %5750 = vmatmul.mubr.msk.f32.gmra.mxu1 %vm222_vm1, %v6639_v12 }
  0xb1   : > { %5729 = vmatprep.mubr.msk.f32.mxu0 %vm222_vm1, %v6465_v52  ;;  %5752 = vmatprep.mubr.msk.f32.mxu1 %vm222_vm1, %v6641_v13 }
  0xb4   : > { %5730 = vmatmul.mubr.msk.f32.gmra.mxu0 %vm222_vm1, %v6477_v54  ;;  %5753 = vmatmul.mubr.msk.f32.gmra.mxu1 %vm222_vm1, %v6651_v14 }
  0xb5   : > { %5732 = vmatprep.mubr.msk.f32.mxu0 %vm222_vm1, %v6481_v56  ;;  %5755 = vmatprep.mubr.msk.f32.mxu1 %vm222_vm1, %v6653_v15 }
  0xb8   : > { %5733 = vmatmul.mubr.msk.f32.gmra.mxu0 %vm222_vm1, %v6493_v58  ;;  %5756 = vmatmul.mubr.msk.f32.gmra.mxu1 %vm222_vm1, %v6663_v16 }
  0xb9   : > { %5735 = vmatprep.mubr.msk.f32.mxu0 %vm222_vm1, %v6495_v59  ;;  %5758 = vmatprep.mubr.msk.f32.mxu1 %vm222_vm1, %v6665_v17 }
  0xbc   : > { %5736 = vmatmul.mubr.msk.f32.gmra.mxu0 %vm222_vm1, %v6505_v60  ;;  %5759 = vmatmul.mubr.msk.f32.gmra.mxu1 %vm222_vm1, %v6675_v18 }
  0xbd   : > { %5766 = vmatprep.mubr.msk.f32.mxu0 %vm222_vm1, %v6391_v34  ;;  %5761 = vmatprep.mubr.msk.f32.mxu1 %vm222_vm1, %v6677_v19 }
  0xc0   : > { %5767 = vmatmul.mubr.msk.f32.vlgmr.msra.gmra.mxu0 %vm222_vm1, %v6402_v36  ;;  %5762 = vmatmul.mubr.msk.f32.gmra.mxu1 %vm222_vm1, %v6687_v20 }
  0xc1   : > { %5817 = vmatpush3.msk.msra.mxu0 %vm400_vm4, %v5152_v4  ;;  %5769 = vmatprep.mubr.msk.f32.mxu0 %vm222_vm1, %v6409_v38 }
  0xc2   : > { %5792 = vmatprep.mubr.msk.f32.mxu1 %vm222_vm1, %v6600_v6  ;;  %5868 = vmatprep.subr.msk.mxu0 %vm400_vm4, %v5188_v21 }
  0xc4   : > { %5770 = vmatmul.mubr.msk.f32.gmra.mxu0 %vm222_vm1, %v6424_v41  ;;  %5793 = vmatmul.mubr.msk.f32.vlgmr.msra.gmra.mxu1 %vm222_vm1, %v6613_v8 }
  0xc5   : > { %5772 = vmatprep.mubr.msk.f32.mxu0 %vm222_vm1, %v6431_v44  ;;  %5795 = vmatprep.mubr.msk.f32.mxu1 %vm222_vm1, %v6616_v9 }
  0xc6   : > { %5843 = vmatpush3.msk.msra.mxu1 %vm400_vm4, %v5170_v7 }
  0xc7   : > { %5894 = vmatprep.subr.msk.mxu1 %vm400_vm4, %v5206_v22 }
  0xc8   : > { %5773 = vmatmul.mubr.msk.f32.gmra.mxu0 %vm222_vm1, %v6445_v46  ;;  %5796 = vmatmul.mubr.msk.f32.gmra.mxu1 %vm222_vm1, %v6627_v10 }
  0xc9   : > { %5775 = vmatprep.mubr.msk.f32.mxu0 %vm222_vm1, %v6449_v48  ;;  %5798 = vmatprep.mubr.msk.f32.mxu1 %vm222_vm1, %v6629_v11 }
  0xcc   : > { %5776 = vmatmul.mubr.msk.f32.gmra.mxu0 %vm222_vm1, %v6461_v50  ;;  %5799 = vmatmul.mubr.msk.f32.gmra.mxu1 %vm222_vm1, %v6639_v12 }
  0xcd   : > { %5778 = vmatprep.mubr.msk.f32.mxu0 %vm222_vm1, %v6465_v52  ;;  %5801 = vmatprep.mubr.msk.f32.mxu1 %vm222_vm1, %v6641_v13 }
  0xd0   : > { %5779 = vmatmul.mubr.msk.f32.gmra.mxu0 %vm222_vm1, %v6477_v54  ;;  %5802 = vmatmul.mubr.msk.f32.gmra.mxu1 %vm222_vm1, %v6651_v14 }
  0xd1   : > { %5781 = vmatprep.mubr.msk.f32.mxu0 %vm222_vm1, %v6481_v56  ;;  %5804 = vmatprep.mubr.msk.f32.mxu1 %vm222_vm1, %v6653_v15 }
  0xd4   : > { %5782 = vmatmul.mubr.msk.f32.gmra.mxu0 %vm222_vm1, %v6493_v58  ;;  %5805 = vmatmul.mubr.msk.f32.gmra.mxu1 %vm222_vm1, %v6663_v16 }
  0xd5   : > { %5784 = vmatprep.mubr.msk.f32.mxu0 %vm222_vm1, %v6495_v59  ;;  %5807 = vmatprep.mubr.msk.f32.mxu1 %vm222_vm1, %v6665_v17 }
  0xd8   : > { %5785 = vmatmul.mubr.msk.f32.gmra.mxu0 %vm222_vm1, %v6505_v60  ;;  %5808 = vmatmul.mubr.msk.f32.gmra.mxu1 %vm222_vm1, %v6675_v18 }
  0xd9   : > { %5787 = vmatprep.mubr.msk.f32.mxu0 %vm222_vm1, %v6577_v1  ;;  %5810 = vmatprep.mubr.msk.f32.mxu1 %vm222_vm1, %v6677_v19 }
  0xdc   : > { %5788 = vmatmul.mubr.msk.f32.gmra.mxu0 %vm222_vm1, %v6587_v2  ;;  %5811 = vmatmul.mubr.msk.f32.gmra.mxu1 %vm222_vm1, %v6687_v20 }
  0xdd   : > { %5818 = vmatprep.mubr.msk.f32.mxu0 %vm222_vm1, %v6365_v27  ;;  %5813 = vmatprep.mubr.msk.f32.mxu1 %vm222_vm1, %v6755_v23  ;;  %v5276_v27 = vld [vmem:[%s7644_s1 + $0x38] sm:$0xf] }
  0xe0   : > { %5819 = vmatmul.mubr.msk.f32.vlgmr.msra.gmra.mxu0 %vm222_vm1, %v6378_v30  ;;  %5814 = vmatmul.mubr.msk.f32.gmra.mxu1 %vm222_vm1, %v6765_v24  ;;  %v2979_v30 = vld [vmem:[#allocation2 + $0x98] sm:$0xff] }
  0xe1   : > { %5869 = vmatpush3.msk.msra.mxu0 %vm400_vm4, %v5188_v21  ;;  %5821 = vmatprep.mubr.msk.f32.mxu0 %vm222_vm1, %v6383_v32 }
  0xe2   : > { %5844 = vmatprep.mubr.msk.f32.mxu1 %vm222_vm1, %v6391_v34  ;;  %5920 = vmatprep.subr.msk.mxu0 %vm400_vm4, %v5240_v25 }
  0xe4   : > { %5822 = vmatmul.mubr.msk.f32.gmra.mxu0 %vm222_vm1, %v6399_v35  ;;  %5845 = vmatmul.mubr.msk.f32.vlgmr.msra.gmra.mxu1 %vm222_vm1, %v6402_v36 }
  0xe5   : > { %5824 = vmatprep.mubr.msk.f32.mxu0 %vm222_vm1, %v6404_v37  ;;  %5847 = vmatprep.mubr.msk.f32.mxu1 %vm222_vm1, %v6409_v38 }
  0xe6   : > { %5895 = vmatpush3.msk.msra.mxu1 %vm400_vm4, %v5206_v22 }
  0xe7   : > { %5946 = vmatprep.subr.msk.mxu1 %vm400_vm4, %v5258_v26 }
  0xe8   : > { %5825 = vmatmul.mubr.msk.f32.gmra.mxu0 %vm222_vm1, %v6420_v40  ;;  %5848 = vmatmul.mubr.msk.f32.gmra.mxu1 %vm222_vm1, %v6424_v41 }
  0xe9   : > { %5827 = vmatprep.mubr.msk.f32.mxu0 %vm222_vm1, %v6429_v43  ;;  %5850 = vmatprep.mubr.msk.f32.mxu1 %vm222_vm1, %v6431_v44 }
  0xec   : > { %5828 = vmatmul.mubr.msk.f32.gmra.mxu0 %vm222_vm1, %v6441_v45  ;;  %5851 = vmatmul.mubr.msk.f32.gmra.mxu1 %vm222_vm1, %v6445_v46 }
  0xed   : > { %5830 = vmatprep.mubr.msk.f32.mxu0 %vm222_vm1, %v6447_v47  ;;  %5853 = vmatprep.mubr.msk.f32.mxu1 %vm222_vm1, %v6449_v48 }
  0xf0   : > { %5831 = vmatmul.mubr.msk.f32.gmra.mxu0 %vm222_vm1, %v6457_v49  ;;  %5854 = vmatmul.mubr.msk.f32.gmra.mxu1 %vm222_vm1, %v6461_v50 }
  0xf1   : > { %5833 = vmatprep.mubr.msk.f32.mxu0 %vm222_vm1, %v6463_v51  ;;  %5856 = vmatprep.mubr.msk.f32.mxu1 %vm222_vm1, %v6465_v52 }
  0xf4   : > { %5834 = vmatmul.mubr.msk.f32.gmra.mxu0 %vm222_vm1, %v6473_v53  ;;  %5857 = vmatmul.mubr.msk.f32.gmra.mxu1 %vm222_vm1, %v6477_v54 }
  0xf5   : > { %5836 = vmatprep.mubr.msk.f32.mxu0 %vm222_vm1, %v6479_v55  ;;  %5859 = vmatprep.mubr.msk.f32.mxu1 %vm222_vm1, %v6481_v56 }
  0xf8   : > { %5837 = vmatmul.mubr.msk.f32.gmra.mxu0 %vm222_vm1, %v6489_v57  ;;  %5860 = vmatmul.mubr.msk.f32.gmra.mxu1 %vm222_vm1, %v6493_v58 }
  0xf9   : > { %5839 = vmatprep.mubr.msk.f32.mxu0 %vm222_vm1, %v6565_v63  ;;  %5862 = vmatprep.mubr.msk.f32.mxu1 %vm222_vm1, %v6495_v59 }
  0xfc   : > { %5840 = vmatmul.mubr.msk.f32.gmra.mxu0 %vm222_vm1, %v6573_v0  ;;  %5863 = vmatmul.mubr.msk.f32.gmra.mxu1 %vm222_vm1, %v6505_v60 }
  0xfd   : > { %5870 = vmatprep.mubr.msk.f32.mxu0 %vm222_vm1, %v6383_v32  ;;  %5865 = vmatprep.mubr.msk.f32.mxu1 %vm222_vm1, %v6577_v1  ;;  %v6915_v32 = vld [vmem:[#allocation2 + $0x138] sm:$0xff] }
 0x100   : > { %5871 = vmatmul.mubr.msk.f32.vlgmr.msra.gmra.mxu0 %vm222_vm1, %v6399_v35  ;;  %5866 = vmatmul.mubr.msk.f32.gmra.mxu1 %vm222_vm1, %v6587_v2 }
 0x101   : > { %5921 = vmatpush3.msk.msra.mxu0 %vm400_vm4, %v5240_v25  ;;  %5873 = vmatprep.mubr.msk.f32.mxu0 %vm222_vm1, %v6404_v37 }
 0x102   : > { %5896 = vmatprep.mubr.msk.f32.mxu1 %vm222_vm1, %v6409_v38  ;;  %5972 = vmatprep.subr.msk.mxu0 %vm400_vm4, %v5276_v27 }
 0x104   : > { %5874 = vmatmul.mubr.msk.f32.gmra.mxu0 %vm222_vm1, %v6420_v40  ;;  %5897 = vmatmul.mubr.msk.f32.vlgmr.msra.gmra.mxu1 %vm222_vm1, %v6424_v41 }
 0x105   : > { %5876 = vmatprep.mubr.msk.f32.mxu0 %vm222_vm1, %v6429_v43  ;;  %5899 = vmatprep.mubr.msk.f32.mxu1 %vm222_vm1, %v6431_v44 }
 0x106   : > { %5947 = vmatpush3.msk.msra.mxu1 %vm400_vm4, %v5258_v26 }
 0x107   : > { %5998 = vmatprep.subr.msk.mxu1 %vm400_vm4, %v5294_v28 }
 0x108   : > { %5877 = vmatmul.mubr.msk.f32.gmra.mxu0 %vm222_vm1, %v6441_v45  ;;  %5900 = vmatmul.mubr.msk.f32.gmra.mxu1 %vm222_vm1, %v6445_v46 }
 0x109   : > { %5879 = vmatprep.mubr.msk.f32.mxu0 %vm222_vm1, %v6447_v47  ;;  %5902 = vmatprep.mubr.msk.f32.mxu1 %vm222_vm1, %v6449_v48 }
 0x10c   : > { %5880 = vmatmul.mubr.msk.f32.gmra.mxu0 %vm222_vm1, %v6457_v49  ;;  %5903 = vmatmul.mubr.msk.f32.gmra.mxu1 %vm222_vm1, %v6461_v50 }
 0x10d   : > { %5882 = vmatprep.mubr.msk.f32.mxu0 %vm222_vm1, %v6463_v51  ;;  %5905 = vmatprep.mubr.msk.f32.mxu1 %vm222_vm1, %v6465_v52 }
 0x110   : > { %5883 = vmatmul.mubr.msk.f32.gmra.mxu0 %vm222_vm1, %v6473_v53  ;;  %5906 = vmatmul.mubr.msk.f32.gmra.mxu1 %vm222_vm1, %v6477_v54 }
 0x111   : > { %5885 = vmatprep.mubr.msk.f32.mxu0 %vm222_vm1, %v6479_v55  ;;  %5908 = vmatprep.mubr.msk.f32.mxu1 %vm222_vm1, %v6481_v56 }
 0x114   : > { %5886 = vmatmul.mubr.msk.f32.gmra.mxu0 %vm222_vm1, %v6489_v57  ;;  %5909 = vmatmul.mubr.msk.f32.gmra.mxu1 %vm222_vm1, %v6493_v58 }
 0x115   : > { %5888 = vmatprep.mubr.msk.f32.mxu0 %vm222_vm1, %v6565_v63  ;;  %5911 = vmatprep.mubr.msk.f32.mxu1 %vm222_vm1, %v6495_v59 }
 0x118   : > { %5889 = vmatmul.mubr.msk.f32.gmra.mxu0 %vm222_vm1, %v6573_v0  ;;  %5912 = vmatmul.mubr.msk.f32.gmra.mxu1 %vm222_vm1, %v6505_v60 }
 0x119   : > { %5891 = vmatprep.mubr.msk.f32.mxu0 %vm222_vm1, %v2978_v29  ;;  %5914 = vmatprep.mubr.msk.f32.mxu1 %vm222_vm1, %v6577_v1 }
 0x11c   : > { %5892 = vmatmul.mubr.msk.f32.gmra.mxu0 %vm222_vm1, %v2979_v30  ;;  %5915 = vmatmul.mubr.msk.f32.gmra.mxu1 %vm222_vm1, %v6587_v2  ;;  %v4030_v30 = vld [vmem:[#allocation2 + $0xc0] sm:$0xff] }
 0x11d   : > { %5922 = vmatprep.mubr.msk.f32.mxu0 %vm222_vm1, %v6391_v34  ;;  %5917 = vmatprep.mubr.msk.f32.mxu1 %vm222_vm1, %v6906_v31 }
 0x120   : > { %v5612_v33 = vpop.f32.mrf.mxu0  ;;  %5923 = vmatmul.mubr.msk.f32.vlgmr.msra.gmra.mxu0 %vm222_vm1, %v6402_v36  ;;  %5918 = vmatmul.mubr.msk.f32.gmra.mxu1 %vm222_vm1, %v6915_v32 }
 0x121   : > { %550 = vst.msk [vmem:[#allocation3 + $0x8] sm:$0xff] %vm222_vm1, %v5612_v33  ;;  %5973 = vmatpush3.msk.msra.mxu0 %vm400_vm4, %v5276_v27  ;;  %5925 = vmatprep.mubr.msk.f32.mxu0 %vm222_vm1, %v6409_v38 }
 0x122   : > { %v470_v34 = vpop.f32.mrf.mxu0  ;;  %5948 = vmatprep.mubr.msk.f32.mxu1 %vm222_vm1, %v6600_v6 }
 0x123   : > { %549 = vst.msk [vmem:[#allocation3] sm:$0xff] %vm222_vm1, %v470_v34 }
 0x124   : > { %v5615_v35 = vpop.f32.mrf.mxu0  ;;  %5926 = vmatmul.mubr.msk.f32.gmra.mxu0 %vm222_vm1, %v6424_v41  ;;  %v5638_v36 = vpop.f32.mrf.mxu1  ;;  %5949 = vmatmul.mubr.msk.f32.vlgmr.msra.gmra.mxu1 %vm222_vm1, %v6613_v8 }
 0x125   : > { %552 = vst.msk [vmem:[#allocation3 + $0x18] sm:$0xff] %vm222_vm1, %v5615_v35  ;;  %5928 = vmatprep.mubr.msk.f32.mxu0 %vm222_vm1, %v6431_v44  ;;  %5951 = vmatprep.mubr.msk.f32.mxu1 %vm222_vm1, %v6616_v9 }
 0x126   : > { %v480_v37 = vpop.f32.mrf.mxu0  ;;  %v701_v38 = vpop.f32.mrf.mxu1  ;;  %5999 = vmatpush3.msk.msra.mxu1 %vm400_vm4, %v5294_v28 }
 0x127   : > { %551 = vst.msk [vmem:[#allocation3 + $0x10] sm:$0xff] %vm222_vm1, %v480_v37 }
 0x128   : > { %v5618_v39 = vpop.f32.mrf.mxu0  ;;  %v781_v40 = vld [vmem:[#allocation3 + $0x8] sm:$0xff]  ;;  %5929 = vmatmul.mubr.msk.f32.gmra.mxu0 %vm222_vm1, %v6445_v46  ;;  %v5641_v41 = vpop.f32.mrf.mxu1  ;;  %5952 = vmatmul.mubr.msk.f32.gmra.mxu1 %vm222_vm1, %v6627_v10 }
 0x129   : > { %554 = vst.msk [vmem:[#allocation3 + $0x28] sm:$0xff] %vm222_vm1, %v5618_v39  ;;  %v797_v42 = vadd.f32 %v5638_v36, %v781_v40  ;;  %5931 = vmatprep.mubr.msk.f32.mxu0 %vm222_vm1, %v6449_v48  ;;  %5954 = vmatprep.mubr.msk.f32.mxu1 %vm222_vm1, %v6629_v11 }
 0x12a   : > { %v490_v43 = vpop.f32.mrf.mxu0  ;;  %v780_v44 = vld [vmem:[#allocation3] sm:$0xff]  ;;  %v711_v45 = vpop.f32.mrf.mxu1 }
 0x12b   : > { %813 = vst.msk [vmem:[#allocation3 + $0x8] sm:$0xff] %vm222_vm1, %v797_v42  ;;  %553 = vst.msk [vmem:[#allocation3 + $0x20] sm:$0xff] %vm222_vm1, %v490_v43  ;;  %v796_v46 = vadd.f32 %v780_v44, %v701_v38  ;;  %v4032_v38 = vld [vmem:[#allocation2 + $0xd0] sm:$0xff]  ;;  %v4033_v44 = vld [vmem:[#allocation2 + $0xd8] sm:$0xff] }
 0x12c   : > { %v5621_v47 = vpop.f32.mrf.mxu0  ;;  %v783_v49 = vld [vmem:[#allocation3 + $0x18] sm:$0xff]  ;;  %5932 = vmatmul.mubr.msk.f32.gmra.mxu0 %vm222_vm1, %v6461_v50  ;;  %v5644_v51 = vpop.f32.mrf.mxu1  ;;  %5955 = vmatmul.mubr.msk.f32.gmra.mxu1 %vm222_vm1, %v6639_v12 }
 0x12d   : > { %812 = vst.msk [vmem:[#allocation3] sm:$0xff] %vm222_vm1, %v796_v46  ;;  %556 = vst.msk [vmem:[#allocation3 + $0x38] sm:$0xff] %vm222_vm1, %v5621_v47  ;;  %v799_v48 = vadd.f32 %v5641_v41, %v783_v49  ;;  %5934 = vmatprep.mubr.msk.f32.mxu0 %vm222_vm1, %v6465_v52  ;;  %5957 = vmatprep.mubr.msk.f32.mxu1 %vm222_vm1, %v6641_v13 }
 0x12e   : > { %v500_v53 = vpop.f32.mrf.mxu0  ;;  %v782_v55 = vld [vmem:[#allocation3 + $0x10] sm:$0xff]  ;;  %v721_v57 = vpop.f32.mrf.mxu1 }
 0x12f   : > { %815 = vst.msk [vmem:[#allocation3 + $0x18] sm:$0xff] %vm222_vm1, %v799_v48  ;;  %555 = vst.msk [vmem:[#allocation3 + $0x30] sm:$0xff] %vm222_vm1, %v500_v53  ;;  %v798_v50 = vadd.f32 %v782_v55, %v711_v45 }
 0x130   : > { %v5624_v61 = vpop.f32.mrf.mxu0  ;;  %v785_v62 = vld [vmem:[#allocation3 + $0x28] sm:$0xff]  ;;  %5935 = vmatmul.mubr.msk.f32.gmra.mxu0 %vm222_vm1, %v6477_v54  ;;  %v5647_v63 = vpop.f32.mrf.mxu1  ;;  %5958 = vmatmul.mubr.msk.f32.gmra.mxu1 %vm222_vm1, %v6651_v14 }
 0x131   : > { %814 = vst.msk [vmem:[#allocation3 + $0x10] sm:$0xff] %vm222_vm1, %v798_v50  ;;  %558 = vst.msk [vmem:[#allocation3 + $0x48] sm:$0xff] %vm222_vm1, %v5624_v61  ;;  %v801_v52 = vadd.f32 %v5644_v51, %v785_v62  ;;  %5937 = vmatprep.mubr.msk.f32.mxu0 %vm222_vm1, %v6481_v56  ;;  %5960 = vmatprep.mubr.msk.f32.mxu1 %vm222_vm1, %v6653_v15  ;;  %v4034_v51 = vld [vmem:[#allocation2 + $0xe0] sm:$0xff] }
 0x132   : > { %v510_v0 = vpop.f32.mrf.mxu0  ;;  %v784_v3 = vld [vmem:[#allocation3 + $0x20] sm:$0xff]  ;;  %v731_v4 = vpop.f32.mrf.mxu1  ;;  %v1043_v40 = vld [vmem:[#allocation3 + $0x8] sm:$0xff] }
 0x133   : > { %817 = vst.msk [vmem:[#allocation3 + $0x28] sm:$0xff] %vm222_vm1, %v801_v52  ;;  %557 = vst.msk [vmem:[#allocation3 + $0x40] sm:$0xff] %vm222_vm1, %v510_v0  ;;  %v800_v54 = vadd.f32 %v784_v3, %v721_v57 }
 0x134   : > { %v5627_v5 = vpop.f32.mrf.mxu0  ;;  %v787_v6 = vld [vmem:[#allocation3 + $0x38] sm:$0xff]  ;;  %5938 = vmatmul.mubr.msk.f32.gmra.mxu0 %vm222_vm1, %v6493_v58  ;;  %v5650_v7 = vpop.f32.mrf.mxu1  ;;  %5961 = vmatmul.mubr.msk.f32.gmra.mxu1 %vm222_vm1, %v6663_v16  ;;  %v1042_v47 = vld [vmem:[#allocation3] sm:$0xff] }
 0x135   : > { %816 = vst.msk [vmem:[#allocation3 + $0x20] sm:$0xff] %vm222_vm1, %v800_v54  ;;  %560 = vst.msk [vmem:[#allocation3 + $0x58] sm:$0xff] %vm222_vm1, %v5627_v5  ;;  %v803_v56 = vadd.f32 %v5647_v63, %v787_v6  ;;  %5940 = vmatprep.mubr.msk.f32.mxu0 %vm222_vm1, %v6495_v59  ;;  %5963 = vmatprep.mubr.msk.f32.mxu1 %vm222_vm1, %v6665_v17  ;;  %v4035_v63 = vld [vmem:[#allocation2 + $0xe8] sm:$0xff]  ;;  %v4036_v54 = vld [vmem:[#allocation2 + $0xf0] sm:$0xff] }
 0x136   : > { %v520_v8 = vpop.f32.mrf.mxu0  ;;  %v786_v21 = vld [vmem:[#allocation3 + $0x30] sm:$0xff]  ;;  %v741_v22 = vpop.f32.mrf.mxu1  ;;  %v1045_v50 = vld [vmem:[#allocation3 + $0x18] sm:$0xff] }
 0x137   : > { %819 = vst.msk [vmem:[#allocation3 + $0x38] sm:$0xff] %vm222_vm1, %v803_v56  ;;  %559 = vst.msk [vmem:[#allocation3 + $0x50] sm:$0xff] %vm222_vm1, %v520_v8  ;;  %v802_v58 = vadd.f32 %v786_v21, %v731_v4  ;;  %v4037_v8 = vld [vmem:[#allocation2 + $0xf8] sm:$0xff] }
 0x138   : > { %v5630_v25 = vpop.f32.mrf.mxu0  ;;  %v789_v26 = vld [vmem:[#allocation3 + $0x48] sm:$0xff]  ;;  %5941 = vmatmul.mubr.msk.f32.gmra.mxu0 %vm222_vm1, %v6505_v60  ;;  %v5653_v27 = vpop.f32.mrf.mxu1  ;;  %5964 = vmatmul.mubr.msk.f32.gmra.mxu1 %vm222_vm1, %v6675_v18  ;;  %v1044_v3 = vld [vmem:[#allocation3 + $0x10] sm:$0xff] }
 0x139   : > { %818 = vst.msk [vmem:[#allocation3 + $0x30] sm:$0xff] %vm222_vm1, %v802_v58  ;;  %562 = vst.msk [vmem:[#allocation3 + $0x68] sm:$0xff] %vm222_vm1, %v5630_v25  ;;  %v805_v59 = vadd.f32 %v5650_v7, %v789_v26  ;;  %5943 = vmatprep.mubr.msk.f32.mxu0 %vm222_vm1, %v6577_v1  ;;  %5966 = vmatprep.mubr.msk.f32.mxu1 %vm222_vm1, %v6677_v19  ;;  %v4031_v19 = vld [vmem:[#allocation2 + $0xc8] sm:$0xff]  ;;  %v4038_v26 = vld [vmem:[#allocation2 + $0x100] sm:$0xff] }
 0x13a   : > { %v530_v17 = vpop.f32.mrf.mxu0  ;;  %v788_v28 = vld [vmem:[#allocation3 + $0x40] sm:$0xff]  ;;  %v751_v29 = vpop.f32.mrf.mxu1  ;;  %v1047_v7 = vld [vmem:[#allocation3 + $0x28] sm:$0xff] }
 0x13b   : > { %821 = vst.msk [vmem:[#allocation3 + $0x48] sm:$0xff] %vm222_vm1, %v805_v59  ;;  %561 = vst.msk [vmem:[#allocation3 + $0x60] sm:$0xff] %vm222_vm1, %v530_v17  ;;  %v804_v60 = vadd.f32 %v788_v28, %v741_v22 }
 0x13c   : > { %v5633_v18 = vpop.f32.mrf.mxu0  ;;  %v791_v33 = vld [vmem:[#allocation3 + $0x58] sm:$0xff]  ;;  %5944 = vmatmul.mubr.msk.f32.gmra.mxu0 %vm222_vm1, %v6587_v2  ;;  %v5656_v34 = vpop.f32.mrf.mxu1  ;;  %5967 = vmatmul.mubr.msk.f32.gmra.mxu1 %vm222_vm1, %v6687_v20  ;;  %v1046_v58 = vld [vmem:[#allocation3 + $0x20] sm:$0xff] }
 0x13d   : > { %820 = vst.msk [vmem:[#allocation3 + $0x40] sm:$0xff] %vm222_vm1, %v804_v60  ;;  %564 = vst.msk [vmem:[#allocation3 + $0x78] sm:$0xff] %vm222_vm1, %v5633_v18  ;;  %v807_v1 = vadd.f32 %v5653_v27, %v791_v33  ;;  %5974 = vmatprep.mubr.msk.f32.mxu0 %vm222_vm1, %v4030_v30  ;;  %5969 = vmatprep.mubr.msk.f32.mxu1 %vm222_vm1, %v6755_v23  ;;  %v4039_v60 = vld [vmem:[#allocation2 + $0x108] sm:$0xff]  ;;  %v4040_v18 = vld [vmem:[#allocation2 + $0x110] sm:$0xff] }
 0x13e   : > { %v540_v35 = vpop.f32.mrf.mxu0  ;;  %v790_v36 = vld [vmem:[#allocation3 + $0x50] sm:$0xff]  ;;  %v761_v37 = vpop.f32.mrf.mxu1  ;;  %v1049_v28 = vld [vmem:[#allocation3 + $0x38] sm:$0xff] }
 0x13f   : > { %823 = vst.msk [vmem:[#allocation3 + $0x58] sm:$0xff] %vm222_vm1, %v807_v1  ;;  %563 = vst.msk [vmem:[#allocation3 + $0x70] sm:$0xff] %vm222_vm1, %v540_v35  ;;  %v806_v2 = vadd.f32 %v790_v36, %v751_v29  ;;  %v4301_v35 = vld [vmem:[#allocation2 + $0x1a0] sm:$0xff] }
 0x140   : > { %v793_v20 = vld [vmem:[#allocation3 + $0x68] sm:$0xff]  ;;  %v5664_v39 = vpop.f32.mrf.mxu0  ;;  %5975 = vmatmul.mubr.msk.f32.vlgmr.msra.gmra.mxu0 %vm222_vm1, %v4031_v19  ;;  %v5659_v41 = vpop.f32.mrf.mxu1  ;;  %5970 = vmatmul.mubr.msk.f32.gmra.mxu1 %vm222_vm1, %v6765_v24  ;;  %v1048_v1 = vld [vmem:[#allocation3 + $0x30] sm:$0xff] }
 0x141   : > { %822 = vst.msk [vmem:[#allocation3 + $0x50] sm:$0xff] %vm222_vm1, %v806_v2  ;;  %v809_v42 = vadd.f32 %v5656_v34, %v793_v20  ;;  %v1059_v43 = vadd.f32 %v5664_v39, %v1043_v40  ;;  %5977 = vmatprep.mubr.msk.f32.mxu0 %vm222_vm1, %v4032_v38  ;;  %6000 = vmatprep.mubr.msk.f32.mxu1 %vm222_vm1, %v6616_v9  ;;  %v4041_v39 = vld [vmem:[#allocation2 + $0x118] sm:$0xff] }
 0x142   : > { %v792_v45 = vld [vmem:[#allocation3 + $0x60] sm:$0xff]  ;;  %v963_v46 = vpop.f32.mrf.mxu0  ;;  %v771_v49 = vpop.f32.mrf.mxu1  ;;  %v1051_v2 = vld [vmem:[#allocation3 + $0x48] sm:$0xff] }
 0x143   : > { %825 = vst.msk [vmem:[#allocation3 + $0x68] sm:$0xff] %vm222_vm1, %v809_v42  ;;  %1075 = vst.msk [vmem:[#allocation3 + $0x8] sm:$0xff] %vm222_vm1, %v1059_v43  ;;  %v808_v48 = vadd.f32 %v792_v45, %v761_v37  ;;  %v1058_v53 = vadd.f32 %v1042_v47, %v963_v46  ;;  %v4302_v42 = vld [vmem:[#allocation2 + $0x1a8] sm:$0xff]  ;;  %v7057_v43 = vld [vmem:[%s7645_s2] ss:$0 sm:$0xff] }
 0x144   : > { %v795_v55 = vld [vmem:[#allocation3 + $0x78] sm:$0xff]  ;;  %v5667_v57 = vpop.f32.mrf.mxu0  ;;  %5978 = vmatmul.mubr.msk.f32.gmra.mxu0 %vm222_vm1, %v4033_v44  ;;  %v5690_v61 = vpop.f32.mrf.mxu1  ;;  %6001 = vmatmul.mubr.msk.f32.vlgmr.msra.gmra.mxu1 %vm222_vm1, %v6627_v10  ;;  %v4303_v47 = vld [vmem:[#allocation2 + $0x1b0] sm:$0xff] }
 0x145   : > { %824 = vst.msk [vmem:[#allocation3 + $0x60] sm:$0xff] %vm222_vm1, %v808_v48  ;;  %1074 = vst.msk [vmem:[#allocation3] sm:$0xff] %vm222_vm1, %v1058_v53  ;;  %v811_v9 = vadd.f32 %v5659_v41, %v795_v55  ;;  %v1061_v62 = vadd.f32 %v5667_v57, %v1045_v50  ;;  %5980 = vmatprep.mubr.msk.f32.mxu0 %vm222_vm1, %v4034_v51  ;;  %6003 = vmatprep.mubr.msk.f32.mxu1 %vm222_vm1, %v6629_v11  ;;  %v4042_v41 = vld [vmem:[#allocation2 + $0x120] sm:$0xff] }
 0x146   : > { %v794_v52 = vld [vmem:[#allocation3 + $0x70] sm:$0xff]  ;;  %v973_v0 = vpop.f32.mrf.mxu0  ;;  %v1225_v4 = vpop.f32.mrf.mxu1  ;;  %v1053_v55 = vld [vmem:[#allocation3 + $0x58] sm:$0xff] }
 0x147   : > { %827 = vst.msk [vmem:[#allocation3 + $0x78] sm:$0xff] %vm222_vm1, %v811_v9  ;;  %1077 = vst.msk [vmem:[#allocation3 + $0x18] sm:$0xff] %vm222_vm1, %v1061_v62  ;;  %v810_v10 = vadd.f32 %v794_v52, %v771_v49  ;;  %v1060_v5 = vadd.f32 %v1044_v3, %v973_v0  ;;  %v4043_v62 = vld [vmem:[#allocation2 + $0x128] sm:$0xff] }
 0x148   : > { %v5670_v6 = vpop.f32.mrf.mxu0  ;;  %5981 = vmatmul.mubr.msk.f32.gmra.mxu0 %vm222_vm1, %v4035_v63  ;;  %v5693_v56 = vpop.f32.mrf.mxu1  ;;  %6004 = vmatmul.mubr.msk.f32.gmra.mxu1 %vm222_vm1, %v6639_v12  ;;  %v4304_v63 = vld [vmem:[#allocation2 + $0x1b8] sm:$0xff] }
 0x149   : > { %826 = vst.msk [vmem:[#allocation3 + $0x70] sm:$0xff] %vm222_vm1, %v810_v10  ;;  %1076 = vst.msk [vmem:[#allocation3 + $0x10] sm:$0xff] %vm222_vm1, %v1060_v5  ;;  %v1063_v11 = vadd.f32 %v5670_v6, %v1047_v7  ;;  %5983 = vmatprep.mubr.msk.f32.mxu0 %vm222_vm1, %v4036_v54  ;;  %6006 = vmatprep.mubr.msk.f32.mxu1 %vm222_vm1, %v6641_v13 }
 0x14a   : > { %v1305_v21 = vld [vmem:[#allocation3 + $0x8] sm:$0xff]  ;;  %v983_v22 = vpop.f32.mrf.mxu0  ;;  %v1235_v25 = vpop.f32.mrf.mxu1 }
 0x14b   : > { %1079 = vst.msk [vmem:[#allocation3 + $0x28] sm:$0xff] %vm222_vm1, %v1063_v11  ;;  %v1321_v27 = vadd.f32 %v5690_v61, %v1305_v21  ;;  %v1062_v12 = vadd.f32 %v1046_v58, %v983_v22 }
 0x14c   : > { %v1304_v59 = vld [vmem:[#allocation3] sm:$0xff]  ;;  %v5673_v17 = vpop.f32.mrf.mxu0  ;;  %5984 = vmatmul.mubr.msk.f32.gmra.mxu0 %vm222_vm1, %v4037_v8  ;;  %v5696_v29 = vpop.f32.mrf.mxu1  ;;  %6007 = vmatmul.mubr.msk.f32.gmra.mxu1 %vm222_vm1, %v6651_v14  ;;  %v1055_v8 = vld [vmem:[#allocation3 + $0x68] sm:$0xff] }
 0x14d   : > { %1337 = vst.msk [vmem:[#allocation3 + $0x8] sm:$0xff] %vm222_vm1, %v1321_v27  ;;  %1078 = vst.msk [vmem:[#allocation3 + $0x20] sm:$0xff] %vm222_vm1, %v1062_v12  ;;  %v1320_v13 = vadd.f32 %v1304_v59, %v1225_v4  ;;  %v1065_v30 = vadd.f32 %v5673_v17, %v1049_v28  ;;  %5986 = vmatprep.mubr.msk.f32.mxu0 %vm222_vm1, %v4038_v26  ;;  %6009 = vmatprep.mubr.msk.f32.mxu1 %vm222_vm1, %v6653_v15  ;;  %v1052_v4 = vld [vmem:[#allocation3 + $0x50] sm:$0xff]  ;;  %v1054_v17 = vld [vmem:[#allocation3 + $0x60] sm:$0xff] }
 0x14e   : > { %v1307_v33 = vld [vmem:[#allocation3 + $0x18] sm:$0xff]  ;;  %v993_v34 = vpop.f32.mrf.mxu0  ;;  %v1245_v19 = vpop.f32.mrf.mxu1  ;;  %v4307_v27 = vld [vmem:[#allocation2 + $0x1d0] sm:$0xff] }
 0x14f   : > { %1336 = vst.msk [vmem:[#allocation3] sm:$0xff] %vm222_vm1, %v1320_v13  ;;  %1081 = vst.msk [vmem:[#allocation3 + $0x38] sm:$0xff] %vm222_vm1, %v1065_v30  ;;  %v1323_v14 = vadd.f32 %v5693_v56, %v1307_v33  ;;  %v1064_v36 = vadd.f32 %v1048_v1, %v993_v34 }
 0x150   : > { %v1306_v37 = vld [vmem:[#allocation3 + $0x10] sm:$0xff]  ;;  %v5676_v38 = vpop.f32.mrf.mxu0  ;;  %5987 = vmatmul.mubr.msk.f32.gmra.mxu0 %vm222_vm1, %v4039_v60  ;;  %v5699_v20 = vpop.f32.mrf.mxu1  ;;  %6010 = vmatmul.mubr.msk.f32.gmra.mxu1 %vm222_vm1, %v6663_v16  ;;  %v1050_v16 = vld [vmem:[#allocation3 + $0x40] sm:$0xff] }
 0x151   : > { %1339 = vst.msk [vmem:[#allocation3 + $0x18] sm:$0xff] %vm222_vm1, %v1323_v14  ;;  %1080 = vst.msk [vmem:[#allocation3 + $0x30] sm:$0xff] %vm222_vm1, %v1064_v36  ;;  %v1322_v15 = vadd.f32 %v1306_v37, %v1235_v25  ;;  %v1067_v40 = vadd.f32 %v5676_v38, %v1051_v2  ;;  %5989 = vmatprep.mubr.msk.f32.mxu0 %vm222_vm1, %v4040_v18  ;;  %6012 = vmatprep.mubr.msk.f32.mxu1 %vm222_vm1, %v4301_v35  ;;  %v1057_v18 = vld [vmem:[#allocation3 + $0x78] sm:$0xff]  ;;  %v1056_v37 = vld [vmem:[#allocation3 + $0x70] sm:$0xff] }
 0x152   : > { %v1309_v44 = vld [vmem:[#allocation3 + $0x28] sm:$0xff]  ;;  %v1003_v45 = vpop.f32.mrf.mxu0  ;;  %v1255_v46 = vpop.f32.mrf.mxu1  ;;  %v4308_v35 = vld [vmem:[#allocation2 + $0x1d8] sm:$0xff] }
 0x153   : > { %1338 = vst.msk [vmem:[#allocation3 + $0x10] sm:$0xff] %vm222_vm1, %v1322_v15  ;;  %1083 = vst.msk [vmem:[#allocation3 + $0x48] sm:$0xff] %vm222_vm1, %v1067_v40  ;;  %v1325_v49 = vadd.f32 %v5696_v29, %v1309_v44  ;;  %v1066_v51 = vadd.f32 %v1050_v16, %v1003_v45 }
 0x154   : > { %v1308_v48 = vld [vmem:[#allocation3 + $0x20] sm:$0xff]  ;;  %v5679_v53 = vpop.f32.mrf.mxu0  ;;  %5990 = vmatmul.mubr.msk.f32.gmra.mxu0 %vm222_vm1, %v4041_v39  ;;  %v5702_v57 = vpop.f32.mrf.mxu1  ;;  %6013 = vmatmul.mubr.msk.f32.gmra.mxu1 %vm222_vm1, %v4302_v42  ;;  %v1353_v50 = vld [vmem:[#allocation3 + $0x8] sm:$0xff] }
 0x155   : > { %1341 = vst.msk [vmem:[#allocation3 + $0x28] sm:$0xff] %vm222_vm1, %v1325_v49  ;;  %1082 = vst.msk [vmem:[#allocation3 + $0x40] sm:$0xff] %vm222_vm1, %v1066_v51  ;;  %v1324_v61 = vadd.f32 %v1308_v48, %v1245_v19  ;;  %v1069_v9 = vadd.f32 %v5679_v53, %v1053_v55  ;;  %5992 = vmatprep.mubr.msk.f32.mxu0 %vm222_vm1, %v4042_v41  ;;  %6015 = vmatprep.mubr.msk.f32.mxu1 %vm222_vm1, %v4303_v47 }
 0x156   : > { %v1375_v52 = vadd.f32 %v7057_v43, %v1353_v50  ;;  %v1311_v0 = vld [vmem:[#allocation3 + $0x38] sm:$0xff]  ;;  %v1013_v3 = vpop.f32.mrf.mxu0  ;;  %v1265_v54 = vpop.f32.mrf.mxu1  ;;  %v1352_v10 = vld [vmem:[#allocation3] sm:$0xff] }
 0x157   : > { %1340 = vst.msk [vmem:[#allocation3 + $0x20] sm:$0xff] %vm222_vm1, %v1324_v61  ;;  %1085 = vst.msk [vmem:[#allocation3 + $0x58] sm:$0xff] %vm222_vm1, %v1069_v9  ;;  %v1327_v5 = vadd.f32 %v5699_v20, %v1311_v0  ;;  %v1068_v6 = vadd.f32 %v1052_v4, %v1013_v3  ;;  %v1374_v7 = vadd.f32 %v7057_v43, %v1352_v10 }
 0x158   : > { %1391 = vst.msk [vmem:[%s6322_s11 + $0x8] sm:$0xff] %vm222_vm1, %v1375_v52  ;;  %v1310_v56 = vld [vmem:[#allocation3 + $0x30] sm:$0xff]  ;;  %v5682_v11 = vpop.f32.mrf.mxu0  ;;  %5993 = vmatmul.mubr.msk.f32.gmra.mxu0 %vm222_vm1, %v4043_v62  ;;  %v5705_v21 = vpop.f32.mrf.mxu1  ;;  %6016 = vmatmul.mubr.msk.f32.gmra.mxu1 %vm222_vm1, %v4304_v63  ;;  %v1355_v22 = vld [vmem:[#allocation3 + $0x18] sm:$0xff] }
 0x159   : > { %1343 = vst.msk [vmem:[#allocation3 + $0x38] sm:$0xff] %vm222_vm1, %v1327_v5  ;;  %1084 = vst.msk [vmem:[#allocation3 + $0x50] sm:$0xff] %vm222_vm1, %v1068_v6  ;;  %v1326_v58 = vadd.f32 %v1310_v56, %v1255_v46  ;;  %v1071_v25 = vadd.f32 %v5682_v11, %v1055_v8  ;;  %5995 = vmatprep.mubr.msk.f32.mxu0 %vm222_vm1, %v6906_v31  ;;  %6018 = vmatprep.mubr.msk.f32.mxu1 %vm222_vm1, %v6755_v23 }
 0x15a   : > { %1390 = vst.msk [vmem:[%s6322_s11] sm:$0xff] %vm222_vm1, %v1374_v7  ;;  %v1377_v26 = vadd.f32 %v7057_v43, %v1355_v22  ;;  %v1313_v12 = vld [vmem:[#allocation3 + $0x48] sm:$0xff]  ;;  %v1023_v59 = vpop.f32.mrf.mxu0  ;;  %v1275_v28 = vpop.f32.mrf.mxu1  ;;  %v1354_v29 = vld [vmem:[#allocation3 + $0x10] sm:$0xff] }
 0x15b   : > { %1342 = vst.msk [vmem:[#allocation3 + $0x30] sm:$0xff] %vm222_vm1, %v1326_v58  ;;  %1087 = vst.msk [vmem:[#allocation3 + $0x68] sm:$0xff] %vm222_vm1, %v1071_v25  ;;  %v1329_v13 = vadd.f32 %v5702_v57, %v1313_v12  ;;  %v1070_v30 = vadd.f32 %v1054_v17, %v1023_v59  ;;  %v1376_v23 = vadd.f32 %v7057_v43, %v1354_v29 }
 0x15c   : > { %1393 = vst.msk [vmem:[%s6322_s11 + $0x18] sm:$0xff] %vm222_vm1, %v1377_v26  ;;  %v1312_v31 = vld [vmem:[#allocation3 + $0x40] sm:$0xff]  ;;  %v5685_v60 = vpop.f32.mrf.mxu0  ;;  %5996 = vmatmul.mubr.msk.f32.gmra.mxu0 %vm222_vm1, %v6915_v32  ;;  %v5708_v33 = vpop.f32.mrf.mxu1  ;;  %6019 = vmatmul.mubr.msk.f32.gmra.mxu1 %vm222_vm1, %v6765_v24  ;;  %v1357_v34 = vld [vmem:[#allocation3 + $0x28] sm:$0xff] }
 0x15d   : > { %1345 = vst.msk [vmem:[#allocation3 + $0x48] sm:$0xff] %vm222_vm1, %v1329_v13  ;;  %1086 = vst.msk [vmem:[#allocation3 + $0x60] sm:$0xff] %vm222_vm1, %v1070_v30  ;;  %v1328_v1 = vadd.f32 %v1312_v31, %v1265_v54  ;;  %v1073_v19 = vadd.f32 %v5685_v60, %v1057_v18  ;;  %6021 = vmatprep.mubr.msk.f32.mxu1 %vm222_vm1, %v4307_v27  ;;  %v1379_v14 = vadd.f32 %v7057_v43, %v1357_v34 }
 0x15e   : > { %1392 = vst.msk [vmem:[%s6322_s11 + $0x10] sm:$0xff] %vm222_vm1, %v1376_v23  ;;  %v1315_v32 = vld [vmem:[#allocation3 + $0x58] sm:$0xff]  ;;  %v1033_v36 = vpop.f32.mrf.mxu0  ;;  %v1285_v38 = vpop.f32.mrf.mxu1  ;;  %v1356_v24 = vld [vmem:[#allocation3 + $0x20] sm:$0xff] }
 0x15f   : > { %1344 = vst.msk [vmem:[#allocation3 + $0x40] sm:$0xff] %vm222_vm1, %v1328_v1  ;;  %1089 = vst.msk [vmem:[#allocation3 + $0x78] sm:$0xff] %vm222_vm1, %v1073_v19  ;;  %v1331_v2 = vadd.f32 %v5705_v21, %v1315_v32  ;;  %v1072_v20 = vadd.f32 %v1056_v37, %v1033_v36  ;;  %v1378_v39 = vadd.f32 %v7057_v43, %v1356_v24 }
 0x160   : > { %1395 = vst.msk [vmem:[%s6322_s11 + $0x28] sm:$0xff] %vm222_vm1, %v1379_v14  ;;  %v1314_v15 = vld [vmem:[#allocation3 + $0x50] sm:$0xff]  ;;  %v5716_v40 = vpop.f32.mrf.mxu0  ;;  %v5711_v41 = vpop.f32.mrf.mxu1  ;;  %6022 = vmatmul.mubr.msk.f32.gmra.mxu1 %vm222_vm1, %v4308_v35  ;;  %v1359_v42 = vld [vmem:[#allocation3 + $0x38] sm:$0xff] }
 0x161   : > { %1347 = vst.msk [vmem:[#allocation3 + $0x58] sm:$0xff] %vm222_vm1, %v1331_v2  ;;  %1088 = vst.msk [vmem:[#allocation3 + $0x70] sm:$0xff] %vm222_vm1, %v1072_v20  ;;  %v1330_v44 = vadd.f32 %v1314_v15, %v1275_v28  ;;  %v1381_v45 = vadd.f32 %v7057_v43, %v1359_v42 }
 0x162   : > { %1621 = vst.msk [vmem:[#allocation3 + $0x8] sm:$0xff] %vm222_vm1, %v5716_v40  ;;  %1394 = vst.msk [vmem:[%s6322_s11 + $0x20] sm:$0xff] %vm222_vm1, %v1378_v39  ;;  %v1317_v16 = vld [vmem:[#allocation3 + $0x68] sm:$0xff]  ;;  %v1541_v46 = vpop.f32.mrf.mxu0  ;;  %v1295_v47 = vpop.f32.mrf.mxu1  ;;  %v1358_v49 = vld [vmem:[#allocation3 + $0x30] sm:$0xff] }
 0x163   : > { %1346 = vst.msk [vmem:[#allocation3 + $0x50] sm:$0xff] %vm222_vm1, %v1330_v44  ;;  %v1333_v51 = vadd.f32 %v5708_v33, %v1317_v16  ;;  %1620 = vst.msk [vmem:[#allocation3] sm:$0xff] %vm222_vm1, %v1541_v46  ;;  %v1380_v48 = vadd.f32 %v7057_v43, %v1358_v49 }
 0x164   : > { %1397 = vst.msk [vmem:[%s6322_s11 + $0x38] sm:$0xff] %vm222_vm1, %v1381_v45  ;;  %v1316_v53 = vld [vmem:[#allocation3 + $0x60] sm:$0xff]  ;;  %v5719_v55 = vpop.f32.mrf.mxu0  ;;  %v5742_v57 = vpop.f32.mrf.mxu1  ;;  %v1361_v50 = vld [vmem:[#allocation3 + $0x48] sm:$0xff] }
 0x165   : > { %1349 = vst.msk [vmem:[#allocation3 + $0x68] sm:$0xff] %vm222_vm1, %v1333_v51  ;;  %v1332_v61 = vadd.f32 %v1316_v53, %v1285_v38  ;;  %1623 = vst.msk [vmem:[#allocation3 + $0x18] sm:$0xff] %vm222_vm1, %v5719_v55  ;;  %v1383_v9 = vadd.f32 %v7057_v43, %v1361_v50 }
 0x166   : > { %1396 = vst.msk [vmem:[%s6322_s11 + $0x30] sm:$0xff] %vm222_vm1, %v1380_v48  ;;  %v1319_v62 = vld [vmem:[#allocation3 + $0x78] sm:$0xff]  ;;  %v1551_v63 = vpop.f32.mrf.mxu0  ;;  %v1771_v52 = vpop.f32.mrf.mxu1  ;;  %v1360_v0 = vld [vmem:[#allocation3 + $0x40] sm:$0xff] }
 0x167   : > { %1348 = vst.msk [vmem:[#allocation3 + $0x60] sm:$0xff] %vm222_vm1, %v1332_v61  ;;  %v1335_v3 = vadd.f32 %v5711_v41, %v1319_v62  ;;  %1622 = vst.msk [vmem:[#allocation3 + $0x10] sm:$0xff] %vm222_vm1, %v1551_v63  ;;  %v1382_v4 = vadd.f32 %v7057_v43, %v1360_v0 }
 0x168   : > { %1399 = vst.msk [vmem:[%s6322_s11 + $0x48] sm:$0xff] %vm222_vm1, %v1383_v9  ;;  %v1318_v54 = vld [vmem:[#allocation3 + $0x70] sm:$0xff]  ;;  %v5722_v10 = vpop.f32.mrf.mxu0  ;;  %v5745_v6 = vpop.f32.mrf.mxu1  ;;  %v1363_v7 = vld [vmem:[#allocation3 + $0x58] sm:$0xff] }
 0x169   : > { %v1851_v5 = vld [vmem:[#allocation3 + $0x8] sm:$0xff]  ;;  %1351 = vst.msk [vmem:[#allocation3 + $0x78] sm:$0xff] %vm222_vm1, %v1335_v3  ;;  %v1334_v56 = vadd.f32 %v1318_v54, %v1295_v47  ;;  %1625 = vst.msk [vmem:[#allocation3 + $0x28] sm:$0xff] %vm222_vm1, %v5722_v10  ;;  %v1385_v8 = vadd.f32 %v7057_v43, %v1363_v7 }
 0x16a   : > { %v1867_v11 = vadd.f32 %v5742_v57, %v1851_v5  ;;  %1398 = vst.msk [vmem:[%s6322_s11 + $0x40] sm:$0xff] %vm222_vm1, %v1382_v4  ;;  %v1561_v21 = vpop.f32.mrf.mxu0  ;;  %v1850_v22 = vld [vmem:[#allocation3] sm:$0xff]  ;;  %v1781_v58 = vpop.f32.mrf.mxu1  ;;  %v1362_v25 = vld [vmem:[#allocation3 + $0x50] sm:$0xff] }
 0x16b   : > { %1350 = vst.msk [vmem:[#allocation3 + $0x70] sm:$0xff] %vm222_vm1, %v1334_v56  ;;  %1624 = vst.msk [vmem:[#allocation3 + $0x20] sm:$0xff] %vm222_vm1, %v1561_v21  ;;  %v1866_v26 = vadd.f32 %v1850_v22, %v1771_v52  ;;  %v1384_v27 = vadd.f32 %v7057_v43, %v1362_v25 }
 0x16c   : > { %1883 = vst.msk [vmem:[#allocation3 + $0x8] sm:$0xff] %vm222_vm1, %v1867_v11  ;;  %1401 = vst.msk [vmem:[%s6322_s11 + $0x58] sm:$0xff] %vm222_vm1, %v1385_v8  ;;  %v5725_v12 = vpop.f32.mrf.mxu0  ;;  %v1853_v59 = vld [vmem:[#allocation3 + $0x18] sm:$0xff]  ;;  %v5748_v17 = vpop.f32.mrf.mxu1  ;;  %v1365_v28 = vld [vmem:[#allocation3 + $0x68] sm:$0xff] }
 0x16d   : > { %1882 = vst.msk [vmem:[#allocation3] sm:$0xff] %vm222_vm1, %v1866_v26  ;;  %1627 = vst.msk [vmem:[#allocation3 + $0x38] sm:$0xff] %vm222_vm1, %v5725_v12  ;;  %v1869_v29 = vadd.f32 %v5745_v6, %v1853_v59  ;;  %v1387_v13 = vadd.f32 %v7057_v43, %v1365_v28 }
 0x16e   : > { %1400 = vst.msk [vmem:[%s6322_s11 + $0x50] sm:$0xff] %vm222_vm1, %v1384_v27  ;;  %v1571_v30 = vpop.f32.mrf.mxu0  ;;  %v1852_v23 = vld [vmem:[#allocation3 + $0x10] sm:$0xff]  ;;  %v1791_v31 = vpop.f32.mrf.mxu1  ;;  %v1364_v60 = vld [vmem:[#allocation3 + $0x60] sm:$0xff] }
 0x16f   : > { %1885 = vst.msk [vmem:[#allocation3 + $0x18] sm:$0xff] %vm222_vm1, %v1869_v29  ;;  %1626 = vst.msk [vmem:[#allocation3 + $0x30] sm:$0xff] %vm222_vm1, %v1571_v30  ;;  %v1868_v18 = vadd.f32 %v1852_v23, %v1781_v58  ;;  %v1386_v33 = vadd.f32 %v7057_v43, %v1364_v60 }
 0x170   : > { %1403 = vst.msk [vmem:[%s6322_s11 + $0x68] sm:$0xff] %vm222_vm1, %v1387_v13  ;;  %v5728_v34 = vpop.f32.mrf.mxu0  ;;  %v1855_v1 = vld [vmem:[#allocation3 + $0x28] sm:$0xff]  ;;  %v5751_v19 = vpop.f32.mrf.mxu1  ;;  %v1367_v35 = vld [vmem:[#allocation3 + $0x78] sm:$0xff] }
 0x171   : > { %1884 = vst.msk [vmem:[#allocation3 + $0x10] sm:$0xff] %vm222_vm1, %v1868_v18  ;;  %1629 = vst.msk [vmem:[#allocation3 + $0x48] sm:$0xff] %vm222_vm1, %v5728_v34  ;;  %v1871_v14 = vadd.f32 %v5748_v17, %v1855_v1  ;;  %v1389_v32 = vadd.f32 %v7057_v43, %v1367_v35 }
 0x172   : > { %1402 = vst.msk [vmem:[%s6322_s11 + $0x60] sm:$0xff] %vm222_vm1, %v1386_v33  ;;  %v1581_v36 = vpop.f32.mrf.mxu0  ;;  %v1854_v37 = vld [vmem:[#allocation3 + $0x20] sm:$0xff]  ;;  %v1801_v38 = vpop.f32.mrf.mxu1  ;;  %v1366_v24 = vld [vmem:[#allocation3 + $0x70] sm:$0xff] }
 0x173   : > { %1887 = vst.msk [vmem:[#allocation3 + $0x28] sm:$0xff] %vm222_vm1, %v1871_v14  ;;  %1628 = vst.msk [vmem:[#allocation3 + $0x40] sm:$0xff] %vm222_vm1, %v1581_v36  ;;  %v1870_v2 = vadd.f32 %v1854_v37, %v1791_v31  ;;  %v1388_v20 = vadd.f32 %v7057_v43, %v1366_v24  ;;  %v2113_v10 = vld [vmem:[#allocation3 + $0x8] sm:$0xff] }
 0x174   : > { %1405 = vst.msk [vmem:[%s6322_s11 + $0x78] sm:$0xff] %vm222_vm1, %v1389_v32  ;;  %v5731_v39 = vpop.f32.mrf.mxu0  ;;  %v1857_v15 = vld [vmem:[#allocation3 + $0x38] sm:$0xff]  ;;  %v5754_v40 = vpop.f32.mrf.mxu1  ;;  %v2112_v8 = vld [vmem:[#allocation3] sm:$0xff] }
 0x175   : > { %1886 = vst.msk [vmem:[#allocation3 + $0x20] sm:$0xff] %vm222_vm1, %v1870_v2  ;;  %1631 = vst.msk [vmem:[#allocation3 + $0x58] sm:$0xff] %vm222_vm1, %v5731_v39  ;;  %v1873_v41 = vadd.f32 %v5751_v19, %v1857_v15 }
 0x176   : > { %1404 = vst.msk [vmem:[%s6322_s11 + $0x70] sm:$0xff] %vm222_vm1, %v1388_v20  ;;  %v1591_v42 = vpop.f32.mrf.mxu0  ;;  %v1856_v44 = vld [vmem:[#allocation3 + $0x30] sm:$0xff]  ;;  %v1811_v45 = vpop.f32.mrf.mxu1  ;;  %v2115_v27 = vld [vmem:[#allocation3 + $0x18] sm:$0xff] }
 0x177   : > { %1889 = vst.msk [vmem:[#allocation3 + $0x38] sm:$0xff] %vm222_vm1, %v1873_v41  ;;  %1630 = vst.msk [vmem:[#allocation3 + $0x50] sm:$0xff] %vm222_vm1, %v1591_v42  ;;  %v1872_v16 = vadd.f32 %v1856_v44, %v1801_v38 }
 0x178   : > { %v5734_v46 = vpop.f32.mrf.mxu0  ;;  %v1859_v47 = vld [vmem:[#allocation3 + $0x48] sm:$0xff]  ;;  %v5757_v49 = vpop.f32.mrf.mxu1  ;;  %v2114_v13 = vld [vmem:[#allocation3 + $0x10] sm:$0xff] }
 0x179   : > { %1888 = vst.msk [vmem:[#allocation3 + $0x30] sm:$0xff] %vm222_vm1, %v1872_v16  ;;  %1633 = vst.msk [vmem:[#allocation3 + $0x68] sm:$0xff] %vm222_vm1, %v5734_v46  ;;  %v1875_v51 = vadd.f32 %v5754_v40, %v1859_v47 }
 0x17a   : > { %v1601_v48 = vpop.f32.mrf.mxu0  ;;  %v1858_v53 = vld [vmem:[#allocation3 + $0x40] sm:$0xff]  ;;  %v1821_v55 = vpop.f32.mrf.mxu1  ;;  %v2117_v18 = vld [vmem:[#allocation3 + $0x28] sm:$0xff] }
 0x17b   : > { %1891 = vst.msk [vmem:[#allocation3 + $0x48] sm:$0xff] %vm222_vm1, %v1875_v51  ;;  %1632 = vst.msk [vmem:[#allocation3 + $0x60] sm:$0xff] %vm222_vm1, %v1601_v48  ;;  %v1874_v57 = vadd.f32 %v1858_v53, %v1811_v45 }
 0x17c   : > { %v5737_v50 = vpop.f32.mrf.mxu0  ;;  %v1861_v61 = vld [vmem:[#allocation3 + $0x58] sm:$0xff]  ;;  %v5760_v9 = vpop.f32.mrf.mxu1  ;;  %v2116_v35 = vld [vmem:[#allocation3 + $0x20] sm:$0xff] }
 0x17d   : > { %1890 = vst.msk [vmem:[#allocation3 + $0x40] sm:$0xff] %vm222_vm1, %v1874_v57  ;;  %1635 = vst.msk [vmem:[#allocation3 + $0x78] sm:$0xff] %vm222_vm1, %v5737_v50  ;;  %v1877_v62 = vadd.f32 %v5757_v49, %v1861_v61 }
 0x17e   : > { %v1611_v63 = vpop.f32.mrf.mxu0  ;;  %v1860_v52 = vld [vmem:[#allocation3 + $0x50] sm:$0xff]  ;;  %v1831_v0 = vpop.f32.mrf.mxu1  ;;  %v2119_v24 = vld [vmem:[#allocation3 + $0x38] sm:$0xff] }
 0x17f   : > { %1893 = vst.msk [vmem:[#allocation3 + $0x58] sm:$0xff] %vm222_vm1, %v1877_v62  ;;  %1634 = vst.msk [vmem:[#allocation3 + $0x70] sm:$0xff] %vm222_vm1, %v1611_v63  ;;  %v1876_v3 = vadd.f32 %v1860_v52, %v1821_v55 }
 0x180   : > { %v1863_v4 = vld [vmem:[#allocation3 + $0x68] sm:$0xff]  ;;  %v5768_v54 = vpop.f32.mrf.mxu0  ;;  %v5763_v5 = vpop.f32.mrf.mxu1  ;;  %v2118_v41 = vld [vmem:[#allocation3 + $0x30] sm:$0xff] }
 0x181   : > { %1892 = vst.msk [vmem:[#allocation3 + $0x50] sm:$0xff] %vm222_vm1, %v1876_v3  ;;  %v1879_v6 = vadd.f32 %v5760_v9, %v1863_v4  ;;  %v2129_v7 = vadd.f32 %v5768_v54, %v2113_v10 }
 0x182   : > { %v1862_v56 = vld [vmem:[#allocation3 + $0x60] sm:$0xff]  ;;  %v2033_v11 = vpop.f32.mrf.mxu0  ;;  %v1841_v21 = vpop.f32.mrf.mxu1  ;;  %v2121_v47 = vld [vmem:[#allocation3 + $0x48] sm:$0xff] }
 0x183   : > { %1895 = vst.msk [vmem:[#allocation3 + $0x68] sm:$0xff] %vm222_vm1, %v1879_v6  ;;  %2145 = vst.msk [vmem:[#allocation3 + $0x8] sm:$0xff] %vm222_vm1, %v2129_v7  ;;  %v1878_v22 = vadd.f32 %v1862_v56, %v1831_v0  ;;  %v2128_v58 = vadd.f32 %v2112_v8, %v2033_v11 }
 0x184   : > { %v1865_v25 = vld [vmem:[#allocation3 + $0x78] sm:$0xff]  ;;  %v5771_v26 = vpop.f32.mrf.mxu0  ;;  %v5794_v12 = vpop.f32.mrf.mxu1  ;;  %v2120_v57 = vld [vmem:[#allocation3 + $0x40] sm:$0xff] }
 0x185   : > { %1894 = vst.msk [vmem:[#allocation3 + $0x60] sm:$0xff] %vm222_vm1, %v1878_v22  ;;  %2144 = vst.msk [vmem:[#allocation3] sm:$0xff] %vm222_vm1, %v2128_v58  ;;  %v1881_v59 = vadd.f32 %v5763_v5, %v1865_v25  ;;  %v2131_v17 = vadd.f32 %v5771_v26, %v2115_v27 }
 0x186   : > { %v1864_v28 = vld [vmem:[#allocation3 + $0x70] sm:$0xff]  ;;  %v2043_v29 = vpop.f32.mrf.mxu0  ;;  %v2295_v30 = vpop.f32.mrf.mxu1  ;;  %v2123_v52 = vld [vmem:[#allocation3 + $0x58] sm:$0xff] }
 0x187   : > { %1897 = vst.msk [vmem:[#allocation3 + $0x78] sm:$0xff] %vm222_vm1, %v1881_v59  ;;  %2147 = vst.msk [vmem:[#allocation3 + $0x18] sm:$0xff] %vm222_vm1, %v2131_v17  ;;  %v1880_v23 = vadd.f32 %v1864_v28, %v1841_v21  ;;  %v2130_v31 = vadd.f32 %v2114_v13, %v2043_v29 }
 0x188   : > { %v5774_v60 = vpop.f32.mrf.mxu0  ;;  %v5797_v33 = vpop.f32.mrf.mxu1  ;;  %v2122_v7 = vld [vmem:[#allocation3 + $0x50] sm:$0xff] }
 0x189   : > { %1896 = vst.msk [vmem:[#allocation3 + $0x70] sm:$0xff] %vm222_vm1, %v1880_v23  ;;  %2146 = vst.msk [vmem:[#allocation3 + $0x10] sm:$0xff] %vm222_vm1, %v2130_v31  ;;  %v2133_v34 = vadd.f32 %v5774_v60, %v2117_v18 }
 0x18a   : > { %v2375_v1 = vld [vmem:[#allocation3 + $0x8] sm:$0xff]  ;;  %v2053_v19 = vpop.f32.mrf.mxu0  ;;  %v2305_v14 = vpop.f32.mrf.mxu1 }
 0x18b   : > { %2149 = vst.msk [vmem:[#allocation3 + $0x28] sm:$0xff] %vm222_vm1, %v2133_v34  ;;  %v2391_v32 = vadd.f32 %v5794_v12, %v2375_v1  ;;  %v2132_v36 = vadd.f32 %v2116_v35, %v2053_v19  ;;  %v2125_v26 = vld [vmem:[#allocation3 + $0x68] sm:$0xff] }
 0x18c   : > { %v2374_v37 = vld [vmem:[#allocation3] sm:$0xff]  ;;  %v5777_v38 = vpop.f32.mrf.mxu0  ;;  %v5800_v2 = vpop.f32.mrf.mxu1 }
 0x18d   : > { %2407 = vst.msk [vmem:[#allocation3 + $0x8] sm:$0xff] %vm222_vm1, %v2391_v32  ;;  %2148 = vst.msk [vmem:[#allocation3 + $0x20] sm:$0xff] %vm222_vm1, %v2132_v36  ;;  %v2390_v20 = vadd.f32 %v2374_v37, %v2295_v30  ;;  %v2135_v39 = vadd.f32 %v5777_v38, %v2119_v24  ;;  %v2124_v30 = vld [vmem:[#allocation3 + $0x60] sm:$0xff] }
 0x18e   : > { %v2377_v15 = vld [vmem:[#allocation3 + $0x18] sm:$0xff]  ;;  %v2063_v40 = vpop.f32.mrf.mxu0  ;;  %v2315_v42 = vpop.f32.mrf.mxu1 }
 0x18f   : > { %2406 = vst.msk [vmem:[#allocation3] sm:$0xff] %vm222_vm1, %v2390_v20  ;;  %2151 = vst.msk [vmem:[#allocation3 + $0x38] sm:$0xff] %vm222_vm1, %v2135_v39  ;;  %v2393_v44 = vadd.f32 %v5797_v33, %v2377_v15  ;;  %v2134_v45 = vadd.f32 %v2118_v41, %v2063_v40  ;;  %v2127_v19 = vld [vmem:[#allocation3 + $0x78] sm:$0xff] }
 0x190   : > { %v2376_v16 = vld [vmem:[#allocation3 + $0x10] sm:$0xff]  ;;  %v5780_v46 = vpop.f32.mrf.mxu0  ;;  %v5803_v49 = vpop.f32.mrf.mxu1 }
 0x191   : > { %2409 = vst.msk [vmem:[#allocation3 + $0x18] sm:$0xff] %vm222_vm1, %v2393_v44  ;;  %2150 = vst.msk [vmem:[#allocation3 + $0x30] sm:$0xff] %vm222_vm1, %v2134_v45  ;;  %v2392_v51 = vadd.f32 %v2376_v16, %v2305_v14  ;;  %v2137_v48 = vadd.f32 %v5780_v46, %v2121_v47 }
 0x192   : > { %v2379_v53 = vld [vmem:[#allocation3 + $0x28] sm:$0xff]  ;;  %v2073_v55 = vpop.f32.mrf.mxu0  ;;  %v2325_v50 = vpop.f32.mrf.mxu1 }
 0x193   : > { %2408 = vst.msk [vmem:[#allocation3 + $0x10] sm:$0xff] %vm222_vm1, %v2392_v51  ;;  %2153 = vst.msk [vmem:[#allocation3 + $0x48] sm:$0xff] %vm222_vm1, %v2137_v48  ;;  %v2395_v61 = vadd.f32 %v5800_v2, %v2379_v53  ;;  %v2136_v9 = vadd.f32 %v2120_v57, %v2073_v55  ;;  %v2126_v2 = vld [vmem:[#allocation3 + $0x70] sm:$0xff] }
 0x194   : > { %v2378_v62 = vld [vmem:[#allocation3 + $0x20] sm:$0xff]  ;;  %v5783_v63 = vpop.f32.mrf.mxu0  ;;  %v5806_v0 = vpop.f32.mrf.mxu1  ;;  %v2423_v3 = vld [vmem:[#allocation3 + $0x8] sm:$0xff] }
 0x195   : > { %2411 = vst.msk [vmem:[#allocation3 + $0x28] sm:$0xff] %vm222_vm1, %v2395_v61  ;;  %2152 = vst.msk [vmem:[#allocation3 + $0x40] sm:$0xff] %vm222_vm1, %v2136_v9  ;;  %v2394_v4 = vadd.f32 %v2378_v62, %v2315_v42  ;;  %v2139_v54 = vadd.f32 %v5783_v63, %v2123_v52  ;;  %v2439_v10 = vadd.f32 %v7057_v43, %v2423_v3 }
 0x196   : > { %v2381_v5 = vld [vmem:[#allocation3 + $0x38] sm:$0xff]  ;;  %v2083_v6 = vpop.f32.mrf.mxu0  ;;  %v2335_v56 = vpop.f32.mrf.mxu1  ;;  %v2422_v11 = vld [vmem:[#allocation3] sm:$0xff] }
 0x197   : > { %2410 = vst.msk [vmem:[#allocation3 + $0x20] sm:$0xff] %vm222_vm1, %v2394_v4  ;;  %2155 = vst.msk [vmem:[#allocation3 + $0x58] sm:$0xff] %vm222_vm1, %v2139_v54  ;;  %v2397_v8 = vadd.f32 %v5803_v49, %v2381_v5  ;;  %v2138_v21 = vadd.f32 %v2122_v7, %v2083_v6  ;;  %v2438_v22 = vadd.f32 %v7057_v43, %v2422_v11 }
 0x198   : > { %5137 = vst.msk [vmem:[%s6322_s11 + $0x88] sm:$0xff] %vm222_vm1, %v2439_v10  ;;  %v2380_v58 = vld [vmem:[#allocation3 + $0x30] sm:$0xff]  ;;  %v5786_v25 = vpop.f32.mrf.mxu0  ;;  %v5809_v27 = vpop.f32.mrf.mxu1  ;;  %v2425_v12 = vld [vmem:[#allocation3 + $0x18] sm:$0xff] }
 0x199   : > { %2413 = vst.msk [vmem:[#allocation3 + $0x38] sm:$0xff] %vm222_vm1, %v2397_v8  ;;  %2154 = vst.msk [vmem:[#allocation3 + $0x50] sm:$0xff] %vm222_vm1, %v2138_v21  ;;  %v2396_v59 = vadd.f32 %v2380_v58, %v2325_v50  ;;  %v2141_v17 = vadd.f32 %v5786_v25, %v2125_v26  ;;  %v2441_v28 = vadd.f32 %v7057_v43, %v2425_v12 }
 0x19a   : > { %5136 = vst.msk [vmem:[%s6322_s11 + $0x80] sm:$0xff] %vm222_vm1, %v2438_v22  ;;  %v2383_v29 = vld [vmem:[#allocation3 + $0x48] sm:$0xff]  ;;  %v2093_v13 = vpop.f32.mrf.mxu0  ;;  %v2345_v23 = vpop.f32.mrf.mxu1  ;;  %v2424_v31 = vld [vmem:[#allocation3 + $0x10] sm:$0xff] }
 0x19b   : > { %2412 = vst.msk [vmem:[#allocation3 + $0x30] sm:$0xff] %vm222_vm1, %v2396_v59  ;;  %2157 = vst.msk [vmem:[#allocation3 + $0x68] sm:$0xff] %vm222_vm1, %v2141_v17  ;;  %v2399_v60 = vadd.f32 %v5806_v0, %v2383_v29  ;;  %v2140_v18 = vadd.f32 %v2124_v30, %v2093_v13  ;;  %v2440_v33 = vadd.f32 %v7057_v43, %v2424_v31 }
 0x19c   : > { %5139 = vst.msk [vmem:[%s6322_s11 + $0x98] sm:$0xff] %vm222_vm1, %v2441_v28  ;;  %v2382_v34 = vld [vmem:[#allocation3 + $0x40] sm:$0xff]  ;;  %v5789_v1 = vpop.f32.mrf.mxu0  ;;  %v5812_v35 = vpop.f32.mrf.mxu1  ;;  %v2427_v14 = vld [vmem:[#allocation3 + $0x28] sm:$0xff] }
 0x19d   : > { %2415 = vst.msk [vmem:[#allocation3 + $0x48] sm:$0xff] %vm222_vm1, %v2399_v60  ;;  %2156 = vst.msk [vmem:[#allocation3 + $0x60] sm:$0xff] %vm222_vm1, %v2140_v18  ;;  %v2398_v32 = vadd.f32 %v2382_v34, %v2335_v56  ;;  %v2143_v36 = vadd.f32 %v5789_v1, %v2127_v19  ;;  %v2443_v37 = vadd.f32 %v7057_v43, %v2427_v14 }
 0x19e   : > { %5138 = vst.msk [vmem:[%s6322_s11 + $0x90] sm:$0xff] %vm222_vm1, %v2440_v33  ;;  %v2385_v38 = vld [vmem:[#allocation3 + $0x58] sm:$0xff]  ;;  %v2103_v24 = vpop.f32.mrf.mxu0  ;;  %v2355_v20 = vpop.f32.mrf.mxu1  ;;  %v2426_v39 = vld [vmem:[#allocation3 + $0x20] sm:$0xff] }
 0x19f   : > { %2414 = vst.msk [vmem:[#allocation3 + $0x40] sm:$0xff] %vm222_vm1, %v2398_v32  ;;  %2159 = vst.msk [vmem:[#allocation3 + $0x78] sm:$0xff] %vm222_vm1, %v2143_v36  ;;  %v2401_v15 = vadd.f32 %v5809_v27, %v2385_v38  ;;  %v2142_v40 = vadd.f32 %v2126_v2, %v2103_v24  ;;  %v2442_v41 = vadd.f32 %v7057_v43, %v2426_v39 }
 0x1a0   : > { %5141 = vst.msk [vmem:[%s6322_s11 + $0xa8] sm:$0xff] %vm222_vm1, %v2443_v37  ;;  %v2384_v42 = vld [vmem:[#allocation3 + $0x50] sm:$0xff]  ;;  %v5820_v44 = vpop.f32.mrf.mxu0  ;;  %v5815_v45 = vpop.f32.mrf.mxu1  ;;  %v2429_v16 = vld [vmem:[#allocation3 + $0x38] sm:$0xff] }
 0x1a1   : > { %2417 = vst.msk [vmem:[#allocation3 + $0x58] sm:$0xff] %vm222_vm1, %v2401_v15  ;;  %2158 = vst.msk [vmem:[#allocation3 + $0x70] sm:$0xff] %vm222_vm1, %v2142_v40  ;;  %v2400_v46 = vadd.f32 %v2384_v42, %v2345_v23  ;;  %v2445_v47 = vadd.f32 %v7057_v43, %v2429_v16 }
 0x1a2   : > { %2686 = vst.msk [vmem:[#allocation3 + $0x8] sm:$0xff] %vm222_vm1, %v5820_v44  ;;  %5140 = vst.msk [vmem:[%s6322_s11 + $0xa0] sm:$0xff] %vm222_vm1, %v2442_v41  ;;  %v2387_v49 = vld [vmem:[#allocation3 + $0x68] sm:$0xff]  ;;  %v2606_v51 = vpop.f32.mrf.mxu0  ;;  %v2365_v48 = vpop.f32.mrf.mxu1  ;;  %v2428_v53 = vld [vmem:[#allocation3 + $0x30] sm:$0xff] }
 0x1a3   : > { %2416 = vst.msk [vmem:[#allocation3 + $0x50] sm:$0xff] %vm222_vm1, %v2400_v46  ;;  %v2403_v55 = vadd.f32 %v5812_v35, %v2387_v49  ;;  %2685 = vst.msk [vmem:[#allocation3] sm:$0xff] %vm222_vm1, %v2606_v51  ;;  %v2444_v57 = vadd.f32 %v7057_v43, %v2428_v53 }
 0x1a4   : > { %5143 = vst.msk [vmem:[%s6322_s11 + $0xb8] sm:$0xff] %vm222_vm1, %v2445_v47  ;;  %v2386_v50 = vld [vmem:[#allocation3 + $0x60] sm:$0xff]  ;;  %v5823_v61 = vpop.f32.mrf.mxu0  ;;  %v5846_v9 = vpop.f32.mrf.mxu1  ;;  %v2431_v62 = vld [vmem:[#allocation3 + $0x48] sm:$0xff] }
 0x1a5   : > { %2419 = vst.msk [vmem:[#allocation3 + $0x68] sm:$0xff] %vm222_vm1, %v2403_v55  ;;  %v2402_v63 = vadd.f32 %v2386_v50, %v2355_v20  ;;  %2688 = vst.msk [vmem:[#allocation3 + $0x18] sm:$0xff] %vm222_vm1, %v5823_v61  ;;  %v2447_v52 = vadd.f32 %v7057_v43, %v2431_v62 }
 0x1a6   : > { %5142 = vst.msk [vmem:[%s6322_s11 + $0xb0] sm:$0xff] %vm222_vm1, %v2444_v57  ;;  %v2389_v0 = vld [vmem:[#allocation3 + $0x78] sm:$0xff]  ;;  %v2616_v3 = vpop.f32.mrf.mxu0  ;;  %v2836_v4 = vpop.f32.mrf.mxu1  ;;  %v2430_v54 = vld [vmem:[#allocation3 + $0x40] sm:$0xff] }
 0x1a7   : > { %2418 = vst.msk [vmem:[#allocation3 + $0x60] sm:$0xff] %vm222_vm1, %v2402_v63  ;;  %v2405_v10 = vadd.f32 %v5815_v45, %v2389_v0  ;;  %2687 = vst.msk [vmem:[#allocation3 + $0x10] sm:$0xff] %vm222_vm1, %v2616_v3  ;;  %v2446_v5 = vadd.f32 %v7057_v43, %v2430_v54 }
 0x1a8   : > { %5145 = vst.msk [vmem:[%s6322_s11 + $0xc8] sm:$0xff] %vm222_vm1, %v2447_v52  ;;  %v2388_v6 = vld [vmem:[#allocation3 + $0x70] sm:$0xff]  ;;  %v5826_v7 = vpop.f32.mrf.mxu0  ;;  %v5849_v11 = vpop.f32.mrf.mxu1  ;;  %v2433_v8 = vld [vmem:[#allocation3 + $0x58] sm:$0xff] }
 0x1a9   : > { %v2916_v56 = vld [vmem:[#allocation3 + $0x8] sm:$0xff]  ;;  %2421 = vst.msk [vmem:[#allocation3 + $0x78] sm:$0xff] %vm222_vm1, %v2405_v10  ;;  %v2404_v21 = vadd.f32 %v2388_v6, %v2365_v48  ;;  %2690 = vst.msk [vmem:[#allocation3 + $0x28] sm:$0xff] %vm222_vm1, %v5826_v7  ;;  %v2449_v58 = vadd.f32 %v7057_v43, %v2433_v8 }
 0x1aa   : > { %v2932_v22 = vadd.f32 %v5846_v9, %v2916_v56  ;;  %5144 = vst.msk [vmem:[%s6322_s11 + $0xc0] sm:$0xff] %vm222_vm1, %v2446_v5  ;;  %v2626_v25 = vpop.f32.mrf.mxu0  ;;  %v2915_v26 = vld [vmem:[#allocation3] sm:$0xff]  ;;  %v2846_v27 = vpop.f32.mrf.mxu1  ;;  %v2432_v12 = vld [vmem:[#allocation3 + $0x50] sm:$0xff] }
 0x1ab   : > { %2420 = vst.msk [vmem:[#allocation3 + $0x70] sm:$0xff] %vm222_vm1, %v2404_v21  ;;  %2689 = vst.msk [vmem:[#allocation3 + $0x20] sm:$0xff] %vm222_vm1, %v2626_v25  ;;  %v2931_v59 = vadd.f32 %v2915_v26, %v2836_v4  ;;  %v2448_v17 = vadd.f32 %v7057_v43, %v2432_v12 }
 0x1ac   : > { %2948 = vst.msk [vmem:[#allocation3 + $0x8] sm:$0xff] %vm222_vm1, %v2932_v22  ;;  %5147 = vst.msk [vmem:[%s6322_s11 + $0xd8] sm:$0xff] %vm222_vm1, %v2449_v58  ;;  %v5829_v28 = vpop.f32.mrf.mxu0  ;;  %v2918_v29 = vld [vmem:[#allocation3 + $0x18] sm:$0xff]  ;;  %v5852_v13 = vpop.f32.mrf.mxu1  ;;  %v2435_v30 = vld [vmem:[#allocation3 + $0x68] sm:$0xff] }
 0x1ad   : > { %2947 = vst.msk [vmem:[#allocation3] sm:$0xff] %vm222_vm1, %v2931_v59  ;;  %2692 = vst.msk [vmem:[#allocation3 + $0x38] sm:$0xff] %vm222_vm1, %v5829_v28  ;;  %v2934_v23 = vadd.f32 %v5849_v11, %v2918_v29  ;;  %v2451_v31 = vadd.f32 %v7057_v43, %v2435_v30 }
 0x1ae   : > { %5146 = vst.msk [vmem:[%s6322_s11 + $0xd0] sm:$0xff] %vm222_vm1, %v2448_v17  ;;  %v2636_v60 = vpop.f32.mrf.mxu0  ;;  %v2917_v18 = vld [vmem:[#allocation3 + $0x10] sm:$0xff]  ;;  %v2856_v33 = vpop.f32.mrf.mxu1  ;;  %v2434_v34 = vld [vmem:[#allocation3 + $0x60] sm:$0xff] }
 0x1af   : > { %2950 = vst.msk [vmem:[#allocation3 + $0x18] sm:$0xff] %vm222_vm1, %v2934_v23  ;;  %2691 = vst.msk [vmem:[#allocation3 + $0x30] sm:$0xff] %vm222_vm1, %v2636_v60  ;;  %v2933_v1 = vadd.f32 %v2917_v18, %v2846_v27  ;;  %v2450_v19 = vadd.f32 %v7057_v43, %v2434_v34 }
 0x1b0   : > { %5149 = vst.msk [vmem:[%s6322_s11 + $0xe8] sm:$0xff] %vm222_vm1, %v2451_v31  ;;  %v5832_v35 = vpop.f32.mrf.mxu0  ;;  %v2920_v14 = vld [vmem:[#allocation3 + $0x28] sm:$0xff]  ;;  %v5855_v32 = vpop.f32.mrf.mxu1  ;;  %v2437_v36 = vld [vmem:[#allocation3 + $0x78] sm:$0xff] }
 0x1b1   : > { %2949 = vst.msk [vmem:[#allocation3 + $0x10] sm:$0xff] %vm222_vm1, %v2933_v1  ;;  %2694 = vst.msk [vmem:[#allocation3 + $0x48] sm:$0xff] %vm222_vm1, %v5832_v35  ;;  %v2936_v37 = vadd.f32 %v5852_v13, %v2920_v14  ;;  %v2453_v38 = vadd.f32 %v7057_v43, %v2437_v36 }
 0x1b2   : > { %5148 = vst.msk [vmem:[%s6322_s11 + $0xe0] sm:$0xff] %vm222_vm1, %v2450_v19  ;;  %v2646_v24 = vpop.f32.mrf.mxu0  ;;  %v2919_v2 = vld [vmem:[#allocation3 + $0x20] sm:$0xff]  ;;  %v2866_v20 = vpop.f32.mrf.mxu1  ;;  %v2436_v39 = vld [vmem:[#allocation3 + $0x70] sm:$0xff] }
 0x1b3   : > { %2952 = vst.msk [vmem:[#allocation3 + $0x28] sm:$0xff] %vm222_vm1, %v2936_v37  ;;  %2693 = vst.msk [vmem:[#allocation3 + $0x40] sm:$0xff] %vm222_vm1, %v2646_v24  ;;  %v2935_v15 = vadd.f32 %v2919_v2, %v2856_v33  ;;  %v2452_v40 = vadd.f32 %v7057_v43, %v2436_v39  ;;  %v3179_v6 = vld [vmem:[#allocation3 + $0x8] sm:$0xff] }
 0x1b4   : > { %5151 = vst.msk [vmem:[%s6322_s11 + $0xf8] sm:$0xff] %vm222_vm1, %v2453_v38  ;;  %v5835_v41 = vpop.f32.mrf.mxu0  ;;  %v2922_v42 = vld [vmem:[#allocation3 + $0x38] sm:$0xff]  ;;  %v5858_v44 = vpop.f32.mrf.mxu1  ;;  %v3178_v22 = vld [vmem:[#allocation3] sm:$0xff] }
 0x1b5   : > { %2951 = vst.msk [vmem:[#allocation3 + $0x20] sm:$0xff] %vm222_vm1, %v2935_v15  ;;  %2696 = vst.msk [vmem:[#allocation3 + $0x58] sm:$0xff] %vm222_vm1, %v5835_v41  ;;  %v2938_v45 = vadd.f32 %v5855_v32, %v2922_v42 }
 0x1b6   : > { %5150 = vst.msk [vmem:[%s6322_s11 + $0xf0] sm:$0xff] %vm222_vm1, %v2452_v40  ;;  %v2656_v16 = vpop.f32.mrf.mxu0  ;;  %v2921_v46 = vld [vmem:[#allocation3 + $0x30] sm:$0xff]  ;;  %v2876_v47 = vpop.f32.mrf.mxu1  ;;  %v3181_v59 = vld [vmem:[#allocation3 + $0x18] sm:$0xff] }
 0x1b7   : > { %2954 = vst.msk [vmem:[#allocation3 + $0x38] sm:$0xff] %vm222_vm1, %v2938_v45  ;;  %2695 = vst.msk [vmem:[#allocation3 + $0x50] sm:$0xff] %vm222_vm1, %v2656_v16  ;;  %v2937_v49 = vadd.f32 %v2921_v46, %v2866_v20 }
 0x1b8   : > { %v5838_v51 = vpop.f32.mrf.mxu0  ;;  %v2924_v43 = vld [vmem:[#allocation3 + $0x48] sm:$0xff]  ;;  %v5861_v48 = vpop.f32.mrf.mxu1  ;;  %v3180_v23 = vld [vmem:[#allocation3 + $0x10] sm:$0xff] }
 0x1b9   : > { %2953 = vst.msk [vmem:[#allocation3 + $0x30] sm:$0xff] %vm222_vm1, %v2937_v49  ;;  %2698 = vst.msk [vmem:[#allocation3 + $0x68] sm:$0xff] %vm222_vm1, %v5838_v51  ;;  %v2940_v53 = vadd.f32 %v5858_v44, %v2924_v43 }
 0x1ba   : > { %v2666_v55 = vpop.f32.mrf.mxu0  ;;  %v2923_v57 = vld [vmem:[#allocation3 + $0x40] sm:$0xff]  ;;  %v2886_v50 = vpop.f32.mrf.mxu1  ;;  %v3183_v34 = vld [vmem:[#allocation3 + $0x28] sm:$0xff] }
 0x1bb   : > { %2956 = vst.msk [vmem:[#allocation3 + $0x48] sm:$0xff] %vm222_vm1, %v2940_v53  ;;  %2697 = vst.msk [vmem:[#allocation3 + $0x60] sm:$0xff] %vm222_vm1, %v2666_v55  ;;  %v2939_v61 = vadd.f32 %v2923_v57, %v2876_v47 }
 0x1bc   : > { %v5841_v9 = vpop.f32.mrf.mxu0  ;;  %v2926_v62 = vld [vmem:[#allocation3 + $0x58] sm:$0xff]  ;;  %v5864_v63 = vpop.f32.mrf.mxu1  ;;  %v3182_v32 = vld [vmem:[#allocation3 + $0x20] sm:$0xff] }
 0x1bd   : > { %2955 = vst.msk [vmem:[#allocation3 + $0x40] sm:$0xff] %vm222_vm1, %v2939_v61  ;;  %2700 = vst.msk [vmem:[#allocation3 + $0x78] sm:$0xff] %vm222_vm1, %v5841_v9  ;;  %v2942_v52 = vadd.f32 %v5861_v48, %v2926_v62 }
 0x1be   : > { %v2676_v0 = vpop.f32.mrf.mxu0  ;;  %v2925_v3 = vld [vmem:[#allocation3 + $0x50] sm:$0xff]  ;;  %v2896_v4 = vpop.f32.mrf.mxu1  ;;  %v3185_v20 = vld [vmem:[#allocation3 + $0x38] sm:$0xff] }
 0x1bf   : > { %2958 = vst.msk [vmem:[#allocation3 + $0x58] sm:$0xff] %vm222_vm1, %v2942_v52  ;;  %2699 = vst.msk [vmem:[#allocation3 + $0x70] sm:$0xff] %vm222_vm1, %v2676_v0  ;;  %v2941_v54 = vadd.f32 %v2925_v3, %v2886_v50 }
 0x1c0   : > { %v2928_v10 = vld [vmem:[#allocation3 + $0x68] sm:$0xff]  ;;  %v5872_v5 = vpop.f32.mrf.mxu0  ;;  %v5867_v7 = vpop.f32.mrf.mxu1  ;;  %v3184_v44 = vld [vmem:[#allocation3 + $0x30] sm:$0xff] }
 0x1c1   : > { %2957 = vst.msk [vmem:[#allocation3 + $0x50] sm:$0xff] %vm222_vm1, %v2941_v54  ;;  %v2944_v56 = vadd.f32 %v5864_v63, %v2928_v10  ;;  %v3195_v11 = vadd.f32 %v5872_v5, %v3179_v6  ;;  %v7306_v5 = vld [vmem:[%s7645_s2] ss:$0 sm:$0xff] }
 0x1c2   : > { %v2927_v8 = vld [vmem:[#allocation3 + $0x60] sm:$0xff]  ;;  %v3099_v21 = vpop.f32.mrf.mxu0  ;;  %v2906_v58 = vpop.f32.mrf.mxu1  ;;  %v3187_v51 = vld [vmem:[#allocation3 + $0x48] sm:$0xff] }
 0x1c3   : > { %2960 = vst.msk [vmem:[#allocation3 + $0x68] sm:$0xff] %vm222_vm1, %v2944_v56  ;;  %3211 = vst.msk [vmem:[#allocation3 + $0x8] sm:$0xff] %vm222_vm1, %v3195_v11  ;;  %v2943_v25 = vadd.f32 %v2927_v8, %v2896_v4  ;;  %v3194_v26 = vadd.f32 %v3178_v22, %v3099_v21 }
 0x1c4   : > { %v2930_v27 = vld [vmem:[#allocation3 + $0x78] sm:$0xff]  ;;  %v5875_v12 = vpop.f32.mrf.mxu0  ;;  %v5898_v17 = vpop.f32.mrf.mxu1  ;;  %v3186_v50 = vld [vmem:[#allocation3 + $0x40] sm:$0xff] }
 0x1c5   : > { %2959 = vst.msk [vmem:[#allocation3 + $0x60] sm:$0xff] %vm222_vm1, %v2943_v25  ;;  %3210 = vst.msk [vmem:[#allocation3] sm:$0xff] %vm222_vm1, %v3194_v26  ;;  %v2946_v28 = vadd.f32 %v5867_v7, %v2930_v27  ;;  %v3197_v29 = vadd.f32 %v5875_v12, %v3181_v59 }
 0x1c6   : > { %v2929_v13 = vld [vmem:[#allocation3 + $0x70] sm:$0xff]  ;;  %v3109_v30 = vpop.f32.mrf.mxu0  ;;  %v3362_v31 = vpop.f32.mrf.mxu1  ;;  %v3189_v0 = vld [vmem:[#allocation3 + $0x58] sm:$0xff] }
 0x1c7   : > { %2962 = vst.msk [vmem:[#allocation3 + $0x78] sm:$0xff] %vm222_vm1, %v2946_v28  ;;  %3213 = vst.msk [vmem:[#allocation3 + $0x18] sm:$0xff] %vm222_vm1, %v3197_v29  ;;  %v2945_v60 = vadd.f32 %v2929_v13, %v2906_v58  ;;  %v3196_v18 = vadd.f32 %v3180_v23, %v3109_v30 }
 0x1c8   : > { %v5878_v33 = vpop.f32.mrf.mxu0  ;;  %v5901_v1 = vpop.f32.mrf.mxu1  ;;  %v3188_v11 = vld [vmem:[#allocation3 + $0x50] sm:$0xff] }
 0x1c9   : > { %2961 = vst.msk [vmem:[#allocation3 + $0x70] sm:$0xff] %vm222_vm1, %v2945_v60  ;;  %3212 = vst.msk [vmem:[#allocation3 + $0x10] sm:$0xff] %vm222_vm1, %v3196_v18  ;;  %v3199_v19 = vadd.f32 %v5878_v33, %v3183_v34 }
 0x1ca   : > { %v3442_v35 = vld [vmem:[#allocation3 + $0x8] sm:$0xff]  ;;  %v3119_v14 = vpop.f32.mrf.mxu0  ;;  %v3372_v36 = vpop.f32.mrf.mxu1 }
 0x1cb   : > { %3215 = vst.msk [vmem:[#allocation3 + $0x28] sm:$0xff] %vm222_vm1, %v3199_v19  ;;  %v3458_v37 = vadd.f32 %v5898_v17, %v3442_v35  ;;  %v3198_v38 = vadd.f32 %v3182_v32, %v3119_v14  ;;  %v3191_v12 = vld [vmem:[#allocation3 + $0x68] sm:$0xff] }
 0x1cc   : > { %v3441_v24 = vld [vmem:[#allocation3] sm:$0xff]  ;;  %v5881_v2 = vpop.f32.mrf.mxu0  ;;  %v5904_v39 = vpop.f32.mrf.mxu1 }
 0x1cd   : > { %3474 = vst.msk [vmem:[#allocation3 + $0x8] sm:$0xff] %vm222_vm1, %v3458_v37  ;;  %3214 = vst.msk [vmem:[#allocation3 + $0x20] sm:$0xff] %vm222_vm1, %v3198_v38  ;;  %v3457_v15 = vadd.f32 %v3441_v24, %v3362_v31  ;;  %v3201_v40 = vadd.f32 %v5881_v2, %v3185_v20  ;;  %v3190_v31 = vld [vmem:[#allocation3 + $0x60] sm:$0xff] }
 0x1ce   : > { %v3444_v41 = vld [vmem:[#allocation3 + $0x18] sm:$0xff]  ;;  %v3129_v42 = vpop.f32.mrf.mxu0  ;;  %v3382_v45 = vpop.f32.mrf.mxu1 }
 0x1cf   : > { %3473 = vst.msk [vmem:[#allocation3] sm:$0xff] %vm222_vm1, %v3457_v15  ;;  %3217 = vst.msk [vmem:[#allocation3 + $0x38] sm:$0xff] %vm222_vm1, %v3201_v40  ;;  %v3460_v16 = vadd.f32 %v5901_v1, %v3444_v41  ;;  %v3200_v46 = vadd.f32 %v3184_v44, %v3129_v42  ;;  %v3193_v14 = vld [vmem:[#allocation3 + $0x78] sm:$0xff] }
 0x1d0   : > { %v3443_v47 = vld [vmem:[#allocation3 + $0x10] sm:$0xff]  ;;  %v5884_v49 = vpop.f32.mrf.mxu0  ;;  %v5907_v43 = vpop.f32.mrf.mxu1 }
 0x1d1   : > { %3476 = vst.msk [vmem:[#allocation3 + $0x18] sm:$0xff] %vm222_vm1, %v3460_v16  ;;  %3216 = vst.msk [vmem:[#allocation3 + $0x30] sm:$0xff] %vm222_vm1, %v3200_v46  ;;  %v3459_v48 = vadd.f32 %v3443_v47, %v3372_v36  ;;  %v3203_v53 = vadd.f32 %v5884_v49, %v3187_v51 }
 0x1d2   : > { %v3446_v55 = vld [vmem:[#allocation3 + $0x28] sm:$0xff]  ;;  %v3139_v57 = vpop.f32.mrf.mxu0  ;;  %v3392_v61 = vpop.f32.mrf.mxu1 }
 0x1d3   : > { %3475 = vst.msk [vmem:[#allocation3 + $0x10] sm:$0xff] %vm222_vm1, %v3459_v48  ;;  %3219 = vst.msk [vmem:[#allocation3 + $0x48] sm:$0xff] %vm222_vm1, %v3203_v53  ;;  %v3462_v9 = vadd.f32 %v5904_v39, %v3446_v55  ;;  %v3202_v62 = vadd.f32 %v3186_v50, %v3139_v57  ;;  %v3192_v39 = vld [vmem:[#allocation3 + $0x70] sm:$0xff] }
 0x1d4   : > { %v3445_v63 = vld [vmem:[#allocation3 + $0x20] sm:$0xff]  ;;  %v5887_v52 = vpop.f32.mrf.mxu0  ;;  %v5910_v3 = vpop.f32.mrf.mxu1  ;;  %v3490_v4 = vld [vmem:[#allocation3 + $0x8] sm:$0xff] }
 0x1d5   : > { %3478 = vst.msk [vmem:[#allocation3 + $0x28] sm:$0xff] %vm222_vm1, %v3462_v9  ;;  %3218 = vst.msk [vmem:[#allocation3 + $0x40] sm:$0xff] %vm222_vm1, %v3202_v62  ;;  %v3461_v54 = vadd.f32 %v3445_v63, %v3382_v45  ;;  %v3205_v10 = vadd.f32 %v5887_v52, %v3189_v0  ;;  %v3506_v6 = vadd.f32 %v7306_v5, %v3490_v4 }
 0x1d6   : > { %v3448_v7 = vld [vmem:[#allocation3 + $0x38] sm:$0xff]  ;;  %v3149_v56 = vpop.f32.mrf.mxu0  ;;  %v3402_v8 = vpop.f32.mrf.mxu1  ;;  %v3489_v21 = vld [vmem:[#allocation3] sm:$0xff] }
 0x1d7   : > { %3477 = vst.msk [vmem:[#allocation3 + $0x20] sm:$0xff] %vm222_vm1, %v3461_v54  ;;  %3221 = vst.msk [vmem:[#allocation3 + $0x58] sm:$0xff] %vm222_vm1, %v3205_v10  ;;  %v3464_v22 = vadd.f32 %v5907_v43, %v3448_v7  ;;  %v3204_v58 = vadd.f32 %v3188_v11, %v3149_v56  ;;  %v3505_v25 = vadd.f32 %v7306_v5, %v3489_v21 }
 0x1d8   : > { %5225 = vst.msk [vmem:[%s6322_s11 + $0x108] sm:$0xff] %vm222_vm1, %v3506_v6  ;;  %v3447_v26 = vld [vmem:[#allocation3 + $0x30] sm:$0xff]  ;;  %v5890_v27 = vpop.f32.mrf.mxu0  ;;  %v5913_v59 = vpop.f32.mrf.mxu1  ;;  %v3492_v17 = vld [vmem:[#allocation3 + $0x18] sm:$0xff] }
 0x1d9   : > { %3480 = vst.msk [vmem:[#allocation3 + $0x38] sm:$0xff] %vm222_vm1, %v3464_v22  ;;  %3220 = vst.msk [vmem:[#allocation3 + $0x50] sm:$0xff] %vm222_vm1, %v3204_v58  ;;  %v3463_v28 = vadd.f32 %v3447_v26, %v3392_v61  ;;  %v3207_v29 = vadd.f32 %v5890_v27, %v3191_v12  ;;  %v3508_v13 = vadd.f32 %v7306_v5, %v3492_v17 }
 0x1da   : > { %5224 = vst.msk [vmem:[%s6322_s11 + $0x100] sm:$0xff] %vm222_vm1, %v3505_v25  ;;  %v3450_v30 = vld [vmem:[#allocation3 + $0x48] sm:$0xff]  ;;  %v3159_v23 = vpop.f32.mrf.mxu0  ;;  %v3412_v60 = vpop.f32.mrf.mxu1  ;;  %v3491_v18 = vld [vmem:[#allocation3 + $0x10] sm:$0xff] }
 0x1db   : > { %3479 = vst.msk [vmem:[#allocation3 + $0x30] sm:$0xff] %vm222_vm1, %v3463_v28  ;;  %3223 = vst.msk [vmem:[#allocation3 + $0x68] sm:$0xff] %vm222_vm1, %v3207_v29  ;;  %v3466_v33 = vadd.f32 %v5910_v3, %v3450_v30  ;;  %v3206_v34 = vadd.f32 %v3190_v31, %v3159_v23  ;;  %v3507_v1 = vadd.f32 %v7306_v5, %v3491_v18 }
 0x1dc   : > { %5227 = vst.msk [vmem:[%s6322_s11 + $0x118] sm:$0xff] %vm222_vm1, %v3508_v13  ;;  %v3449_v19 = vld [vmem:[#allocation3 + $0x40] sm:$0xff]  ;;  %v5893_v35 = vpop.f32.mrf.mxu0  ;;  %v5916_v32 = vpop.f32.mrf.mxu1  ;;  %v3494_v36 = vld [vmem:[#allocation3 + $0x28] sm:$0xff] }
 0x1dd   : > { %3482 = vst.msk [vmem:[#allocation3 + $0x48] sm:$0xff] %vm222_vm1, %v3466_v33  ;;  %3222 = vst.msk [vmem:[#allocation3 + $0x60] sm:$0xff] %vm222_vm1, %v3206_v34  ;;  %v3465_v37 = vadd.f32 %v3449_v19, %v3402_v8  ;;  %v3209_v38 = vadd.f32 %v5893_v35, %v3193_v14  ;;  %v3510_v24 = vadd.f32 %v7306_v5, %v3494_v36 }
 0x1de   : > { %5226 = vst.msk [vmem:[%s6322_s11 + $0x110] sm:$0xff] %vm222_vm1, %v3507_v1  ;;  %v3452_v2 = vld [vmem:[#allocation3 + $0x58] sm:$0xff]  ;;  %v3169_v20 = vpop.f32.mrf.mxu0  ;;  %v3422_v15 = vpop.f32.mrf.mxu1  ;;  %v3493_v40 = vld [vmem:[#allocation3 + $0x20] sm:$0xff] }
 0x1df   : > { %3481 = vst.msk [vmem:[#allocation3 + $0x40] sm:$0xff] %vm222_vm1, %v3465_v37  ;;  %3225 = vst.msk [vmem:[#allocation3 + $0x78] sm:$0xff] %vm222_vm1, %v3209_v38  ;;  %v3468_v41 = vadd.f32 %v5913_v59, %v3452_v2  ;;  %v3208_v42 = vadd.f32 %v3192_v39, %v3169_v20  ;;  %v3509_v44 = vadd.f32 %v7306_v5, %v3493_v40 }
 0x1e0   : > { %5229 = vst.msk [vmem:[%s6322_s11 + $0x128] sm:$0xff] %vm222_vm1, %v3510_v24  ;;  %v3451_v45 = vld [vmem:[#allocation3 + $0x50] sm:$0xff]  ;;  %v5924_v16 = vpop.f32.mrf.mxu0  ;;  %v5919_v46 = vpop.f32.mrf.mxu1  ;;  %v3496_v47 = vld [vmem:[#allocation3 + $0x38] sm:$0xff] }
 0x1e1   : > { %3484 = vst.msk [vmem:[#allocation3 + $0x58] sm:$0xff] %vm222_vm1, %v3468_v41  ;;  %3224 = vst.msk [vmem:[#allocation3 + $0x70] sm:$0xff] %vm222_vm1, %v3208_v42  ;;  %v3467_v49 = vadd.f32 %v3451_v45, %v3412_v60  ;;  %v3512_v51 = vadd.f32 %v7306_v5, %v3496_v47 }
 0x1e2   : > { %3753 = vst.msk [vmem:[#allocation3 + $0x8] sm:$0xff] %vm222_vm1, %v5924_v16  ;;  %5228 = vst.msk [vmem:[%s6322_s11 + $0x120] sm:$0xff] %vm222_vm1, %v3509_v44  ;;  %v3454_v43 = vld [vmem:[#allocation3 + $0x68] sm:$0xff]  ;;  %v3673_v48 = vpop.f32.mrf.mxu0  ;;  %v3432_v53 = vpop.f32.mrf.mxu1  ;;  %v3495_v55 = vld [vmem:[#allocation3 + $0x30] sm:$0xff] }
 0x1e3   : > { %3483 = vst.msk [vmem:[#allocation3 + $0x50] sm:$0xff] %vm222_vm1, %v3467_v49  ;;  %v3470_v57 = vadd.f32 %v5916_v32, %v3454_v43  ;;  %3752 = vst.msk [vmem:[#allocation3] sm:$0xff] %vm222_vm1, %v3673_v48  ;;  %v3511_v50 = vadd.f32 %v7306_v5, %v3495_v55 }
 0x1e4   : > { %5231 = vst.msk [vmem:[%s6322_s11 + $0x138] sm:$0xff] %vm222_vm1, %v3512_v51  ;;  %v3453_v61 = vld [vmem:[#allocation3 + $0x60] sm:$0xff]  ;;  %v5927_v9 = vpop.f32.mrf.mxu0  ;;  %v5950_v62 = vpop.f32.mrf.mxu1  ;;  %v3498_v63 = vld [vmem:[#allocation3 + $0x48] sm:$0xff] }
 0x1e5   : > { %3486 = vst.msk [vmem:[#allocation3 + $0x68] sm:$0xff] %vm222_vm1, %v3470_v57  ;;  %v3469_v52 = vadd.f32 %v3453_v61, %v3422_v15  ;;  %3755 = vst.msk [vmem:[#allocation3 + $0x18] sm:$0xff] %vm222_vm1, %v5927_v9  ;;  %v3514_v0 = vadd.f32 %v7306_v5, %v3498_v63 }
 0x1e6   : > { %5230 = vst.msk [vmem:[%s6322_s11 + $0x130] sm:$0xff] %vm222_vm1, %v3511_v50  ;;  %v3456_v3 = vld [vmem:[#allocation3 + $0x78] sm:$0xff]  ;;  %v3683_v4 = vpop.f32.mrf.mxu0  ;;  %v3903_v54 = vpop.f32.mrf.mxu1  ;;  %v3497_v10 = vld [vmem:[#allocation3 + $0x40] sm:$0xff] }
 0x1e7   : > { %3485 = vst.msk [vmem:[#allocation3 + $0x60] sm:$0xff] %vm222_vm1, %v3469_v52  ;;  %v3472_v6 = vadd.f32 %v5919_v46, %v3456_v3  ;;  %3754 = vst.msk [vmem:[#allocation3 + $0x10] sm:$0xff] %vm222_vm1, %v3683_v4  ;;  %v3513_v7 = vadd.f32 %v7306_v5, %v3497_v10 }
 0x1e8   : > { %5233 = vst.msk [vmem:[%s6322_s11 + $0x148] sm:$0xff] %vm222_vm1, %v3514_v0  ;;  %v3455_v56 = vld [vmem:[#allocation3 + $0x70] sm:$0xff]  ;;  %v5930_v11 = vpop.f32.mrf.mxu0  ;;  %v5953_v21 = vpop.f32.mrf.mxu1  ;;  %v3500_v22 = vld [vmem:[#allocation3 + $0x58] sm:$0xff] }
 0x1e9   : > { %v3983_v8 = vld [vmem:[#allocation3 + $0x8] sm:$0xff]  ;;  %3488 = vst.msk [vmem:[#allocation3 + $0x78] sm:$0xff] %vm222_vm1, %v3472_v6  ;;  %v3471_v58 = vadd.f32 %v3455_v56, %v3432_v53  ;;  %3757 = vst.msk [vmem:[#allocation3 + $0x28] sm:$0xff] %vm222_vm1, %v5930_v11  ;;  %v3516_v26 = vadd.f32 %v7306_v5, %v3500_v22 }
 0x1ea   : > { %v3999_v25 = vadd.f32 %v5950_v62, %v3983_v8  ;;  %5232 = vst.msk [vmem:[%s6322_s11 + $0x140] sm:$0xff] %vm222_vm1, %v3513_v7  ;;  %v3693_v27 = vpop.f32.mrf.mxu0  ;;  %v3982_v12 = vld [vmem:[#allocation3] sm:$0xff]  ;;  %v3913_v59 = vpop.f32.mrf.mxu1  ;;  %v3499_v17 = vld [vmem:[#allocation3 + $0x50] sm:$0xff] }
 0x1eb   : > { %3487 = vst.msk [vmem:[#allocation3 + $0x70] sm:$0xff] %vm222_vm1, %v3471_v58  ;;  %3756 = vst.msk [vmem:[#allocation3 + $0x20] sm:$0xff] %vm222_vm1, %v3693_v27  ;;  %v3998_v28 = vadd.f32 %v3982_v12, %v3903_v54  ;;  %v3515_v29 = vadd.f32 %v7306_v5, %v3499_v17 }
 0x1ec   : > { %4015 = vst.msk [vmem:[#allocation3 + $0x8] sm:$0xff] %vm222_vm1, %v3999_v25  ;;  %5235 = vst.msk [vmem:[%s6322_s11 + $0x158] sm:$0xff] %vm222_vm1, %v3516_v26  ;;  %v5933_v13 = vpop.f32.mrf.mxu0  ;;  %v3985_v30 = vld [vmem:[#allocation3 + $0x18] sm:$0xff]  ;;  %v5956_v23 = vpop.f32.mrf.mxu1  ;;  %v3502_v31 = vld [vmem:[#allocation3 + $0x68] sm:$0xff] }
 0x1ed   : > { %4014 = vst.msk [vmem:[#allocation3] sm:$0xff] %vm222_vm1, %v3998_v28  ;;  %3759 = vst.msk [vmem:[#allocation3 + $0x38] sm:$0xff] %vm222_vm1, %v5933_v13  ;;  %v4001_v60 = vadd.f32 %v5953_v21, %v3985_v30  ;;  %v3518_v18 = vadd.f32 %v7306_v5, %v3502_v31 }
 0x1ee   : > { %5234 = vst.msk [vmem:[%s6322_s11 + $0x150] sm:$0xff] %vm222_vm1, %v3515_v29  ;;  %v3703_v33 = vpop.f32.mrf.mxu0  ;;  %v3984_v34 = vld [vmem:[#allocation3 + $0x10] sm:$0xff]  ;;  %v3923_v1 = vpop.f32.mrf.mxu1  ;;  %v3501_v19 = vld [vmem:[#allocation3 + $0x60] sm:$0xff] }
 0x1ef   : > { %4017 = vst.msk [vmem:[#allocation3 + $0x18] sm:$0xff] %vm222_vm1, %v4001_v60  ;;  %3758 = vst.msk [vmem:[#allocation3 + $0x30] sm:$0xff] %vm222_vm1, %v3703_v33  ;;  %v4000_v35 = vadd.f32 %v3984_v34, %v3913_v59  ;;  %v3517_v14 = vadd.f32 %v7306_v5, %v3501_v19 }
 0x1f0   : > { %5237 = vst.msk [vmem:[%s6322_s11 + $0x168] sm:$0xff] %vm222_vm1, %v3518_v18  ;;  %v5936_v32 = vpop.f32.mrf.mxu0  ;;  %v3987_v36 = vld [vmem:[#allocation3 + $0x28] sm:$0xff]  ;;  %v5959_v37 = vpop.f32.mrf.mxu1  ;;  %v3504_v38 = vld [vmem:[#allocation3 + $0x78] sm:$0xff] }
 0x1f1   : > { %4016 = vst.msk [vmem:[#allocation3 + $0x10] sm:$0xff] %vm222_vm1, %v4000_v35  ;;  %3761 = vst.msk [vmem:[#allocation3 + $0x48] sm:$0xff] %vm222_vm1, %v5936_v32  ;;  %v4003_v24 = vadd.f32 %v5956_v23, %v3987_v36  ;;  %v3520_v2 = vadd.f32 %v7306_v5, %v3504_v38 }
 0x1f2   : > { %5236 = vst.msk [vmem:[%s6322_s11 + $0x160] sm:$0xff] %vm222_vm1, %v3517_v14  ;;  %v3713_v20 = vpop.f32.mrf.mxu0  ;;  %v3986_v39 = vld [vmem:[#allocation3 + $0x20] sm:$0xff]  ;;  %v3933_v15 = vpop.f32.mrf.mxu1  ;;  %v3503_v40 = vld [vmem:[#allocation3 + $0x70] sm:$0xff] }
 0x1f3   : > { %4019 = vst.msk [vmem:[#allocation3 + $0x28] sm:$0xff] %vm222_vm1, %v4003_v24  ;;  %3760 = vst.msk [vmem:[#allocation3 + $0x40] sm:$0xff] %vm222_vm1, %v3713_v20  ;;  %v4002_v41 = vadd.f32 %v3986_v39, %v3923_v1  ;;  %v3519_v42 = vadd.f32 %v7306_v5, %v3503_v40  ;;  %v4245_v11 = vld [vmem:[#allocation3 + $0x8] sm:$0xff] }
 0x1f4   : > { %5239 = vst.msk [vmem:[%s6322_s11 + $0x178] sm:$0xff] %vm222_vm1, %v3520_v2  ;;  %v5939_v44 = vpop.f32.mrf.mxu0  ;;  %v3989_v45 = vld [vmem:[#allocation3 + $0x38] sm:$0xff]  ;;  %v5962_v16 = vpop.f32.mrf.mxu1  ;;  %v4244_v26 = vld [vmem:[#allocation3] sm:$0xff] }
 0x1f5   : > { %4018 = vst.msk [vmem:[#allocation3 + $0x20] sm:$0xff] %vm222_vm1, %v4002_v41  ;;  %3763 = vst.msk [vmem:[#allocation3 + $0x58] sm:$0xff] %vm222_vm1, %v5939_v44  ;;  %v4005_v46 = vadd.f32 %v5959_v37, %v3989_v45 }
 0x1f6   : > { %5238 = vst.msk [vmem:[%s6322_s11 + $0x170] sm:$0xff] %vm222_vm1, %v3519_v42  ;;  %v3723_v47 = vpop.f32.mrf.mxu0  ;;  %v3988_v49 = vld [vmem:[#allocation3 + $0x30] sm:$0xff]  ;;  %v3943_v51 = vpop.f32.mrf.mxu1  ;;  %v4247_v29 = vld [vmem:[#allocation3 + $0x18] sm:$0xff] }
 0x1f7   : > { %4021 = vst.msk [vmem:[#allocation3 + $0x38] sm:$0xff] %vm222_vm1, %v4005_v46  ;;  %3762 = vst.msk [vmem:[#allocation3 + $0x50] sm:$0xff] %vm222_vm1, %v3723_v47  ;;  %v4004_v43 = vadd.f32 %v3988_v49, %v3933_v15 }
 0x1f8   : > { %v5942_v48 = vpop.f32.mrf.mxu0  ;;  %v3991_v53 = vld [vmem:[#allocation3 + $0x48] sm:$0xff]  ;;  %v5965_v55 = vpop.f32.mrf.mxu1  ;;  %v4246_v18 = vld [vmem:[#allocation3 + $0x10] sm:$0xff] }
 0x1f9   : > { %4020 = vst.msk [vmem:[#allocation3 + $0x30] sm:$0xff] %vm222_vm1, %v4004_v43  ;;  %3765 = vst.msk [vmem:[#allocation3 + $0x68] sm:$0xff] %vm222_vm1, %v5942_v48  ;;  %v4007_v57 = vadd.f32 %v5962_v16, %v3991_v53 }
 0x1fa   : > { %v3733_v50 = vpop.f32.mrf.mxu0  ;;  %v3990_v61 = vld [vmem:[#allocation3 + $0x40] sm:$0xff]  ;;  %v3953_v9 = vpop.f32.mrf.mxu1  ;;  %v4249_v35 = vld [vmem:[#allocation3 + $0x28] sm:$0xff] }
 0x1fb   : > { %4023 = vst.msk [vmem:[#allocation3 + $0x48] sm:$0xff] %vm222_vm1, %v4007_v57  ;;  %3764 = vst.msk [vmem:[#allocation3 + $0x60] sm:$0xff] %vm222_vm1, %v3733_v50  ;;  %v4006_v62 = vadd.f32 %v3990_v61, %v3943_v51 }
 0x1fc   : > { %v5945_v63 = vpop.f32.mrf.mxu0  ;;  %v3993_v52 = vld [vmem:[#allocation3 + $0x58] sm:$0xff]  ;;  %v5968_v0 = vpop.f32.mrf.mxu1  ;;  %v4248_v38 = vld [vmem:[#allocation3 + $0x20] sm:$0xff] }
 0x1fd   : > { %4022 = vst.msk [vmem:[#allocation3 + $0x40] sm:$0xff] %vm222_vm1, %v4006_v62  ;;  %3767 = vst.msk [vmem:[#allocation3 + $0x78] sm:$0xff] %vm222_vm1, %v5945_v63  ;;  %v4009_v3 = vadd.f32 %v5965_v55, %v3993_v52 }
 0x1fe   : > { %v3743_v4 = vpop.f32.mrf.mxu0  ;;  %v3992_v54 = vld [vmem:[#allocation3 + $0x50] sm:$0xff]  ;;  %v3963_v10 = vpop.f32.mrf.mxu1  ;;  %v4251_v40 = vld [vmem:[#allocation3 + $0x38] sm:$0xff] }
 0x1ff   : > { %4025 = vst.msk [vmem:[#allocation3 + $0x58] sm:$0xff] %vm222_vm1, %v4009_v3  ;;  %3766 = vst.msk [vmem:[#allocation3 + $0x70] sm:$0xff] %vm222_vm1, %v3743_v4  ;;  %v4008_v6 = vadd.f32 %v3992_v54, %v3953_v9 }
 0x200   : > { %v3995_v7 = vld [vmem:[#allocation3 + $0x68] sm:$0xff]  ;;  %v5976_v56 = vpop.f32.mrf.mxu0  ;;  %v5971_v8 = vpop.f32.mrf.mxu1  ;;  %v4250_v46 = vld [vmem:[#allocation3 + $0x30] sm:$0xff] }
 0x201   : > { %4024 = vst.msk [vmem:[#allocation3 + $0x50] sm:$0xff] %vm222_vm1, %v4008_v6  ;;  %v4011_v21 = vadd.f32 %v5968_v0, %v3995_v7  ;;  %v4261_v22 = vadd.f32 %v5976_v56, %v4245_v11 }
 0x202   : > { %v3994_v58 = vld [vmem:[#allocation3 + $0x60] sm:$0xff]  ;;  %v4165_v25 = vpop.f32.mrf.mxu0  ;;  %v3973_v27 = vpop.f32.mrf.mxu1  ;;  %v4253_v53 = vld [vmem:[#allocation3 + $0x48] sm:$0xff] }
 0x203   : > { %4027 = vst.msk [vmem:[#allocation3 + $0x68] sm:$0xff] %vm222_vm1, %v4011_v21  ;;  %4277 = vst.msk [vmem:[#allocation3 + $0x8] sm:$0xff] %vm222_vm1, %v4261_v22  ;;  %v4010_v12 = vadd.f32 %v3994_v58, %v3963_v10  ;;  %v4260_v59 = vadd.f32 %v4244_v26, %v4165_v25 }
 0x204   : > { %v3997_v17 = vld [vmem:[#allocation3 + $0x78] sm:$0xff]  ;;  %v5979_v28 = vpop.f32.mrf.mxu0  ;;  %v6002_v13 = vpop.f32.mrf.mxu1  ;;  %v4252_v62 = vld [vmem:[#allocation3 + $0x40] sm:$0xff] }
 0x205   : > { %4026 = vst.msk [vmem:[#allocation3 + $0x60] sm:$0xff] %vm222_vm1, %v4010_v12  ;;  %4276 = vst.msk [vmem:[#allocation3] sm:$0xff] %vm222_vm1, %v4260_v59  ;;  %v4013_v30 = vadd.f32 %v5971_v8, %v3997_v17  ;;  %v4263_v23 = vadd.f32 %v5979_v28, %v4247_v29 }
 0x206   : > { %v3996_v31 = vld [vmem:[#allocation3 + $0x70] sm:$0xff]  ;;  %v4175_v60 = vpop.f32.mrf.mxu0  ;;  %v4428_v33 = vpop.f32.mrf.mxu1  ;;  %v4255_v10 = vld [vmem:[#allocation3 + $0x58] sm:$0xff] }
 0x207   : > { %4029 = vst.msk [vmem:[#allocation3 + $0x78] sm:$0xff] %vm222_vm1, %v4013_v30  ;;  %4279 = vst.msk [vmem:[#allocation3 + $0x18] sm:$0xff] %vm222_vm1, %v4263_v23  ;;  %v4012_v34 = vadd.f32 %v3996_v31, %v3973_v27  ;;  %v4262_v1 = vadd.f32 %v4246_v18, %v4175_v60 }
 0x208   : > { %v5982_v19 = vpop.f32.mrf.mxu0  ;;  %v6005_v14 = vpop.f32.mrf.mxu1  ;;  %v4254_v58 = vld [vmem:[#allocation3 + $0x50] sm:$0xff] }
 0x209   : > { %4028 = vst.msk [vmem:[#allocation3 + $0x70] sm:$0xff] %vm222_vm1, %v4012_v34  ;;  %4278 = vst.msk [vmem:[#allocation3 + $0x10] sm:$0xff] %vm222_vm1, %v4262_v1  ;;  %v4265_v32 = vadd.f32 %v5982_v19, %v4249_v35 }
 0x20a   : > { %v4508_v36 = vld [vmem:[#allocation3 + $0x8] sm:$0xff]  ;;  %v4185_v37 = vpop.f32.mrf.mxu0  ;;  %v4438_v24 = vpop.f32.mrf.mxu1 }
 0x20b   : > { %4281 = vst.msk [vmem:[#allocation3 + $0x28] sm:$0xff] %vm222_vm1, %v4265_v32  ;;  %v4524_v2 = vadd.f32 %v6002_v13, %v4508_v36  ;;  %v4264_v20 = vadd.f32 %v4248_v38, %v4185_v37  ;;  %v4257_v29 = vld [vmem:[#allocation3 + $0x68] sm:$0xff] }
 0x20c   : > { %v4507_v39 = vld [vmem:[#allocation3] sm:$0xff]  ;;  %v5985_v15 = vpop.f32.mrf.mxu0  ;;  %v6008_v41 = vpop.f32.mrf.mxu1 }
 0x20d   : > { %4540 = vst.msk [vmem:[#allocation3 + $0x8] sm:$0xff] %vm222_vm1, %v4524_v2  ;;  %4280 = vst.msk [vmem:[#allocation3 + $0x20] sm:$0xff] %vm222_vm1, %v4264_v20  ;;  %v4523_v42 = vadd.f32 %v4507_v39, %v4428_v33  ;;  %v4267_v44 = vadd.f32 %v5985_v15, %v4251_v40  ;;  %v4256_v34 = vld [vmem:[#allocation3 + $0x60] sm:$0xff] }
 0x20e   : > { %v4510_v45 = vld [vmem:[#allocation3 + $0x18] sm:$0xff]  ;;  %v4195_v16 = vpop.f32.mrf.mxu0  ;;  %v4448_v47 = vpop.f32.mrf.mxu1 }
 0x20f   : > { %4539 = vst.msk [vmem:[#allocation3] sm:$0xff] %vm222_vm1, %v4523_v42  ;;  %4283 = vst.msk [vmem:[#allocation3 + $0x38] sm:$0xff] %vm222_vm1, %v4267_v44  ;;  %v4526_v49 = vadd.f32 %v6005_v14, %v4510_v45  ;;  %v4266_v51 = vadd.f32 %v4250_v46, %v4195_v16  ;;  %v4259_v38 = vld [vmem:[#allocation3 + $0x78] sm:$0xff] }
 0x210   : > { %v4509_v43 = vld [vmem:[#allocation3 + $0x10] sm:$0xff]  ;;  %v5988_v48 = vpop.f32.mrf.mxu0  ;;  %v6011_v55 = vpop.f32.mrf.mxu1 }
 0x211   : > { %4542 = vst.msk [vmem:[#allocation3 + $0x18] sm:$0xff] %vm222_vm1, %v4526_v49  ;;  %4282 = vst.msk [vmem:[#allocation3 + $0x30] sm:$0xff] %vm222_vm1, %v4266_v51  ;;  %v4525_v57 = vadd.f32 %v4509_v43, %v4438_v24  ;;  %v4269_v50 = vadd.f32 %v5988_v48, %v4253_v53  ;;  %v4258_v42 = vld [vmem:[#allocation3 + $0x70] sm:$0xff] }
 0x212   : > { %v4512_v61 = vld [vmem:[#allocation3 + $0x28] sm:$0xff]  ;;  %v4205_v9 = vpop.f32.mrf.mxu0  ;;  %v4458_v63 = vpop.f32.mrf.mxu1 }
 0x213   : > { %4541 = vst.msk [vmem:[#allocation3 + $0x10] sm:$0xff] %vm222_vm1, %v4525_v57  ;;  %4285 = vst.msk [vmem:[#allocation3 + $0x48] sm:$0xff] %vm222_vm1, %v4269_v50  ;;  %v4528_v52 = vadd.f32 %v6008_v41, %v4512_v61  ;;  %v4268_v0 = vadd.f32 %v4252_v62, %v4205_v9 }
 0x214   : > { %v4556_v3 = vld [vmem:[#allocation3 + $0x8] sm:$0xff]  ;;  %v4511_v4 = vld [vmem:[#allocation3 + $0x20] sm:$0xff]  ;;  %v5991_v54 = vpop.f32.mrf.mxu0  ;;  %v6014_v6 = vpop.f32.mrf.mxu1 }
 0x215   : > { %v4572_v7 = vadd.f32 %v7306_v5, %v4556_v3  ;;  %4544 = vst.msk [vmem:[#allocation3 + $0x28] sm:$0xff] %vm222_vm1, %v4528_v52  ;;  %4284 = vst.msk [vmem:[#allocation3 + $0x40] sm:$0xff] %vm222_vm1, %v4268_v0  ;;  %v4527_v56 = vadd.f32 %v4511_v4, %v4448_v47  ;;  %v4271_v11 = vadd.f32 %v5991_v54, %v4255_v10 }
 0x216   : > { %v4555_v8 = vld [vmem:[#allocation3] sm:$0xff]  ;;  %v4514_v21 = vld [vmem:[#allocation3 + $0x38] sm:$0xff]  ;;  %v4215_v22 = vpop.f32.mrf.mxu0  ;;  %v4468_v25 = vpop.f32.mrf.mxu1 }
 0x217   : > { %5313 = vst.msk [vmem:[%s6322_s11 + $0x188] sm:$0xff] %vm222_vm1, %v4572_v7  ;;  %v4571_v26 = vadd.f32 %v7306_v5, %v4555_v8  ;;  %4543 = vst.msk [vmem:[#allocation3 + $0x20] sm:$0xff] %vm222_vm1, %v4527_v56  ;;  %v4530_v27 = vadd.f32 %v6011_v55, %v4514_v21  ;;  %v4270_v12 = vadd.f32 %v4254_v58, %v4215_v22 }
 0x218   : > { %4287 = vst.msk [vmem:[#allocation3 + $0x58] sm:$0xff] %vm222_vm1, %v4271_v11  ;;  %v4558_v59 = vld [vmem:[#allocation3 + $0x18] sm:$0xff]  ;;  %v4513_v17 = vld [vmem:[#allocation3 + $0x30] sm:$0xff]  ;;  %v5994_v28 = vpop.f32.mrf.mxu0  ;;  %v6017_v13 = vpop.f32.mrf.mxu1 }
 0x219   : > { %5312 = vst.msk [vmem:[%s6322_s11 + $0x180] sm:$0xff] %vm222_vm1, %v4571_v26  ;;  %v4574_v30 = vadd.f32 %v7306_v5, %v4558_v59  ;;  %4546 = vst.msk [vmem:[#allocation3 + $0x38] sm:$0xff] %vm222_vm1, %v4530_v27  ;;  %v4529_v23 = vadd.f32 %v4513_v17, %v4458_v63  ;;  %v4273_v31 = vadd.f32 %v5994_v28, %v4257_v29  ;;  %v4772_v17 = vld [vmem:[%s6322_s11 + $0x8] sm:$0xff] (%p6209_p5)  ;;  %v4774_v28 = vld [vmem:[%s6322_s11 + $0x10] sm:$0xff] (%p6209_p5) }
 0x21a   : > { %4286 = vst.msk [vmem:[#allocation3 + $0x50] sm:$0xff] %vm222_vm1, %v4270_v12  ;;  %v4557_v60 = vld [vmem:[#allocation3 + $0x10] sm:$0xff]  ;;  %v4516_v18 = vld [vmem:[#allocation3 + $0x48] sm:$0xff]  ;;  %v4225_v33 = vpop.f32.mrf.mxu0  ;;  %v4478_v1 = vpop.f32.mrf.mxu1  ;;  %v4776_v29 = vld [vmem:[%s6322_s11 + $0x18] sm:$0xff] (%p6209_p5) }
 0x21b   : > { %5315 = vst.msk [vmem:[%s6322_s11 + $0x198] sm:$0xff] %vm222_vm1, %v4574_v30  ;;  %v4573_v19 = vadd.f32 %v7306_v5, %v4557_v60  ;;  %4545 = vst.msk [vmem:[#allocation3 + $0x30] sm:$0xff] %vm222_vm1, %v4529_v23  ;;  %v4532_v35 = vadd.f32 %v6014_v6, %v4516_v18  ;;  %v4272_v14 = vadd.f32 %v4256_v34, %v4225_v33  ;;  %v4780_v30 = vld [vmem:[%s6322_s11 + $0x28] sm:$0xff] (%p6209_p5)  ;;  %v4782_v23 = vld [vmem:[%s6322_s11 + $0x30] sm:$0xff] (%p6209_p5) }
 0x21c   : > { %4289 = vst.msk [vmem:[#allocation3 + $0x68] sm:$0xff] %vm222_vm1, %v4273_v31  ;;  %v4560_v32 = vld [vmem:[#allocation3 + $0x28] sm:$0xff]  ;;  %v4515_v36 = vld [vmem:[#allocation3 + $0x40] sm:$0xff]  ;;  %v5997_v37 = vpop.f32.mrf.mxu0  ;;  %v6020_v24 = vpop.f32.mrf.mxu1  ;;  %v4784_v31 = vld [vmem:[%s6322_s11 + $0x38] sm:$0xff] (%p6209_p5) }
 0x21d   : > { %5314 = vst.msk [vmem:[%s6322_s11 + $0x190] sm:$0xff] %vm222_vm1, %v4573_v19  ;;  %v4576_v2 = vadd.f32 %v7306_v5, %v4560_v32  ;;  %4548 = vst.msk [vmem:[#allocation3 + $0x48] sm:$0xff] %vm222_vm1, %v4532_v35  ;;  %v4531_v20 = vadd.f32 %v4515_v36, %v4468_v25  ;;  %v4275_v39 = vadd.f32 %v5997_v37, %v4259_v38  ;;  %v4786_v60 = vld [vmem:[%s6322_s11 + $0x40] sm:$0xff] (%p6209_p5)  ;;  %v4788_v18 = vld [vmem:[%s6322_s11 + $0x48] sm:$0xff] (%p6209_p5) }
 0x21e   : > { %4288 = vst.msk [vmem:[#allocation3 + $0x60] sm:$0xff] %vm222_vm1, %v4272_v14  ;;  %v4559_v15 = vld [vmem:[#allocation3 + $0x20] sm:$0xff]  ;;  %v4235_v41 = vpop.f32.mrf.mxu0  ;;  %v4488_v49 = vpop.f32.mrf.mxu1  ;;  %v4790_v33 = vld [vmem:[%s6322_s11 + $0x50] sm:$0xff] (%p6209_p5)  ;;  %v4792_v34 = vld [vmem:[%s6322_s11 + $0x58] sm:$0xff] (%p6209_p5) }
 0x21f   : > { %v4518_v40 = vld [vmem:[#allocation3 + $0x58] sm:$0xff]  ;;  %5317 = vst.msk [vmem:[%s6322_s11 + $0x1a8] sm:$0xff] %vm222_vm1, %v4576_v2  ;;  %v4575_v44 = vadd.f32 %v7306_v5, %v4559_v15  ;;  %4547 = vst.msk [vmem:[#allocation3 + $0x40] sm:$0xff] %vm222_vm1, %v4531_v20  ;;  %v4274_v16 = vadd.f32 %v4258_v42, %v4235_v41  ;;  %v4796_v19 = vld [vmem:[%s6322_s11 + $0x68] sm:$0xff] (%p6209_p5) }
 0x220   : > { %4291 = vst.msk [vmem:[#allocation3 + $0x78] sm:$0xff] %vm222_vm1, %v4275_v39  ;;  %v4534_v45 = vadd.f32 %v6017_v13, %v4518_v40  ;;  %v4562_v46 = vld [vmem:[#allocation3 + $0x38] sm:$0xff]  ;;  %v6023_v9 = vpop.f32.mrf.mxu1  ;;  %v4778_v13 = vld [vmem:[%s6322_s11 + $0x20] sm:$0xff] (%p6209_p5)  ;;  %4773 = vst [vmem:[%s7501_s7 + $0x8] sm:$0xff] (%p6209_p5), %v4772_v17 }
 0x221   : > { %v4517_v47 = vld [vmem:[#allocation3 + $0x50] sm:$0xff]  ;;  %5316 = vst.msk [vmem:[%s6322_s11 + $0x1a0] sm:$0xff] %vm222_vm1, %v4575_v44  ;;  %v4578_v51 = vadd.f32 %v7306_v5, %v4562_v46  ;;  %4290 = vst.msk [vmem:[#allocation3 + $0x70] sm:$0xff] %vm222_vm1, %v4274_v16  ;;  %v4800_v14 = vld [vmem:[%s6322_s11 + $0x78] sm:$0xff] (%p6209_p5) }
 0x222   : > { %4550 = vst.msk [vmem:[#allocation3 + $0x58] sm:$0xff] %vm222_vm1, %v4534_v45  ;;  %v4533_v43 = vadd.f32 %v4517_v47, %v4478_v1  ;;  %v4561_v48 = vld [vmem:[#allocation3 + $0x30] sm:$0xff]  ;;  %v4498_v10 = vpop.f32.mrf.mxu1  ;;  %4775 = vst [vmem:[%s7501_s7 + $0x10] sm:$0xff] (%p6209_p5), %v4774_v28  ;;  %v4794_v1 = vld [vmem:[%s6322_s11 + $0x60] sm:$0xff] (%p6209_p5) }
 0x223   : > { %v4520_v53 = vld [vmem:[#allocation3 + $0x68] sm:$0xff]  ;;  %5319 = vst.msk [vmem:[%s6322_s11 + $0x1b8] sm:$0xff] %vm222_vm1, %v4578_v51  ;;  %v4577_v55 = vadd.f32 %v7306_v5, %v4561_v48  ;;  %4777 = vst [vmem:[%s7501_s7 + $0x18] sm:$0xff] (%p6209_p5), %v4776_v29  ;;  %v4798_v35 = vld [vmem:[%s6322_s11 + $0x70] sm:$0xff] (%p6209_p5) }
 0x224   : > { %4549 = vst.msk [vmem:[#allocation3 + $0x50] sm:$0xff] %vm222_vm1, %v4533_v43  ;;  %v4536_v57 = vadd.f32 %v6020_v24, %v4520_v53  ;;  %v4564_v50 = vld [vmem:[#allocation3 + $0x48] sm:$0xff]  ;;  %4779 = vst [vmem:[%s7501_s7 + $0x20] sm:$0xff] (%p6209_p5), %v4778_v13  ;;  %v4802_v32 = vld [vmem:[%s6322_s11 + $0x80] sm:$0xff] (%p6209_p5) }
 0x225   : > { %v4519_v61 = vld [vmem:[#allocation3 + $0x60] sm:$0xff]  ;;  %5318 = vst.msk [vmem:[%s6322_s11 + $0x1b0] sm:$0xff] %vm222_vm1, %v4577_v55  ;;  %v4580_v62 = vadd.f32 %v7306_v5, %v4564_v50  ;;  %4781 = vst [vmem:[%s7501_s7 + $0x28] sm:$0xff] (%p6209_p5), %v4780_v30  ;;  %v4804_v36 = vld [vmem:[%s6322_s11 + $0x88] sm:$0xff] (%p6209_p5) }
 0x226   : > { %4552 = vst.msk [vmem:[#allocation3 + $0x68] sm:$0xff] %vm222_vm1, %v4536_v57  ;;  %v4535_v63 = vadd.f32 %v4519_v61, %v4488_v49  ;;  %v4563_v52 = vld [vmem:[#allocation3 + $0x40] sm:$0xff]  ;;  %4783 = vst [vmem:[%s7501_s7 + $0x30] sm:$0xff] (%p6209_p5), %v4782_v23  ;;  %v4806_v37 = vld [vmem:[%s6322_s11 + $0x90] sm:$0xff] (%p6209_p5) }
 0x227   : > { %v4522_v0 = vld [vmem:[#allocation3 + $0x78] sm:$0xff]  ;;  %5321 = vst.msk [vmem:[%s6322_s11 + $0x1c8] sm:$0xff] %vm222_vm1, %v4580_v62  ;;  %v4579_v3 = vadd.f32 %v7306_v5, %v4563_v52  ;;  %4785 = vst [vmem:[%s7501_s7 + $0x38] sm:$0xff] (%p6209_p5), %v4784_v31  ;;  %v4810_v24 = vld [vmem:[%s6322_s11 + $0xa0] sm:$0xff] (%p6209_p5) }
 0x228   : > { %4551 = vst.msk [vmem:[#allocation3 + $0x60] sm:$0xff] %vm222_vm1, %v4535_v63  ;;  %v4538_v4 = vadd.f32 %v6023_v9, %v4522_v0  ;;  %v4521_v6 = vld [vmem:[#allocation3 + $0x70] sm:$0xff]  ;;  %4787 = vst [vmem:[%s7501_s7 + $0x40] sm:$0xff] (%p6209_p5), %v4786_v60  ;;  %v4808_v38 = vld [vmem:[%s6322_s11 + $0x98] sm:$0xff] (%p6209_p5) }
 0x229   : > { %v4566_v54 = vld [vmem:[#allocation3 + $0x58] sm:$0xff]  ;;  %5320 = vst.msk [vmem:[%s6322_s11 + $0x1c0] sm:$0xff] %vm222_vm1, %v4579_v3  ;;  %v4537_v56 = vadd.f32 %v4521_v6, %v4498_v10  ;;  %4789 = vst [vmem:[%s7501_s7 + $0x48] sm:$0xff] (%p6209_p5), %v4788_v18  ;;  %v4812_v2 = vld [vmem:[%s6322_s11 + $0xa8] sm:$0xff] (%p6209_p5) }
 0x22a   : > { %v4582_v7 = vadd.f32 %v7306_v5, %v4566_v54  ;;  %4554 = vst.msk [vmem:[#allocation3 + $0x78] sm:$0xff] %vm222_vm1, %v4538_v4  ;;  %4791 = vst [vmem:[%s7501_s7 + $0x50] sm:$0xff] (%p6209_p5), %v4790_v33  ;;  %v4814_v20 = vld [vmem:[%s6322_s11 + $0xb0] sm:$0xff] (%p6209_p5)  ;;  %v4816_v39 = vld [vmem:[%s6322_s11 + $0xb8] sm:$0xff] (%p6209_p5) }
 0x22b   : > { %v4565_v11 = vld [vmem:[#allocation3 + $0x50] sm:$0xff]  ;;  %4553 = vst.msk [vmem:[#allocation3 + $0x70] sm:$0xff] %vm222_vm1, %v4537_v56  ;;  %4793 = vst [vmem:[%s7501_s7 + $0x58] sm:$0xff] (%p6209_p5), %v4792_v34  ;;  %v4818_v15 = vld [vmem:[%s6322_s11 + $0xc0] sm:$0xff] (%p6209_p5) }
 0x22c   : > { %5323 = vst.msk [vmem:[%s6322_s11 + $0x1d8] sm:$0xff] %vm222_vm1, %v4582_v7  ;;  %v4581_v8 = vadd.f32 %v7306_v5, %v4565_v11  ;;  %4795 = vst [vmem:[%s7501_s7 + $0x60] sm:$0xff] (%p6209_p5), %v4794_v1  ;;  %v4820_v40 = vld [vmem:[%s6322_s11 + $0xc8] sm:$0xff] (%p6209_p5)  ;;  %v4822_v41 = vld [vmem:[%s6322_s11 + $0xd0] sm:$0xff] (%p6209_p5) }
 0x22d   : > { %v4568_v21 = vld [vmem:[#allocation3 + $0x68] sm:$0xff]  ;;  %4797 = vst [vmem:[%s7501_s7 + $0x68] sm:$0xff] (%p6209_p5), %v4796_v19  ;;  %4799 = vst [vmem:[%s7501_s7 + $0x70] sm:$0xff] (%p6209_p5), %v4798_v35  ;;  %v4824_v42 = vld [vmem:[%s6322_s11 + $0xd8] sm:$0xff] (%p6209_p5) }
 0x22e   : > { %5322 = vst.msk [vmem:[%s6322_s11 + $0x1d0] sm:$0xff] %vm222_vm1, %v4581_v8  ;;  %v4584_v22 = vadd.f32 %v7306_v5, %v4568_v21  ;;  %4801 = vst [vmem:[%s7501_s7 + $0x78] sm:$0xff] (%p6209_p5), %v4800_v14  ;;  %v4826_v44 = vld [vmem:[%s6322_s11 + $0xe0] sm:$0xff] (%p6209_p5)  ;;  %v4828_v45 = vld [vmem:[%s6322_s11 + $0xe8] sm:$0xff] (%p6209_p5) }
 0x22f   : > { %v4567_v58 = vld [vmem:[#allocation3 + $0x60] sm:$0xff]  ;;  %4803 = vst [vmem:[%s7501_s7 + $0x100] sm:$0xff] (%p6209_p5), %v4802_v32  ;;  %4805 = vst [vmem:[%s7501_s7 + $0x108] sm:$0xff] (%p6209_p5), %v4804_v36  ;;  %v4830_v16 = vld [vmem:[%s6322_s11 + $0xf0] sm:$0xff] (%p6209_p5) }
 0x230   : > { %5325 = vst.msk [vmem:[%s6322_s11 + $0x1e8] sm:$0xff] %vm222_vm1, %v4584_v22  ;;  %v4583_v25 = vadd.f32 %v7306_v5, %v4567_v58  ;;  %4807 = vst [vmem:[%s7501_s7 + $0x110] sm:$0xff] (%p6209_p5), %v4806_v37  ;;  %v4832_v46 = vld [vmem:[%s6322_s11 + $0xf8] sm:$0xff] (%p6209_p5)  ;;  %v4834_v47 = vld [vmem:[%s6322_s11 + $0x100] sm:$0xff] (%p6209_p5) }
 0x231   : > { %v4570_v26 = vld [vmem:[#allocation3 + $0x78] sm:$0xff]  ;;  %4610 = sbr.rel (!%p6209_p5) target bundleno = 586 (0x24a), region = 52  ;;  %4809 = vst [vmem:[%s7501_s7 + $0x118] sm:$0xff] (%p6209_p5), %v4808_v38  ;;  %4811 = vst [vmem:[%s7501_s7 + $0x120] sm:$0xff] (%p6209_p5), %v4810_v24  ;;  %v4836_v49 = vld [vmem:[%s6322_s11 + $0x108] sm:$0xff] (%p6209_p5) }
 0x232   : > { %5324 = vst.msk [vmem:[%s6322_s11 + $0x1e0] sm:$0xff] %vm222_vm1, %v4583_v25  ;;  %v4586_v27 = vadd.f32 %v7306_v5, %v4570_v26  ;;  %v4569_v12 = vld [vmem:[#allocation3 + $0x70] sm:$0xff]  ;;  %4813 = vst [vmem:[%s7501_s7 + $0x128] sm:$0xff] (%p6209_p5), %v4812_v2  ;;  %v4840_v43 = vld [vmem:[%s6322_s11 + $0x118] sm:$0xff] (%p6209_p5) }
 0x233   : > { %v4585_v59 = vadd.f32 %v7306_v5, %v4569_v12  ;;  %v4770_v5 = vld [vmem:[%s6322_s11] sm:$0xff] (%p6209_p5)  ;;  %4815 = vst [vmem:[%s7501_s7 + $0x130] sm:$0xff] (%p6209_p5), %v4814_v20  ;;  %4817 = vst [vmem:[%s7501_s7 + $0x138] sm:$0xff] (%p6209_p5), %v4816_v39  ;;  %v4838_v51 = vld [vmem:[%s6322_s11 + $0x110] sm:$0xff] (%p6209_p5) }
 0x234   : > { %5327 = vst.msk [vmem:[%s6322_s11 + $0x1f8] sm:$0xff] %vm222_vm1, %v4586_v27  ;;  %4771 = vst [vmem:[%s7501_s7] sm:$0xff] (%p6209_p5), %v4770_v5  ;;  %v4842_v48 = vld [vmem:[%s6322_s11 + $0x120] sm:$0xff] (%p6209_p5)  ;;  %v4844_v53 = vld [vmem:[%s6322_s11 + $0x128] sm:$0xff] (%p6209_p5) }
 0x235   : > { %5326 = vst.msk [vmem:[%s6322_s11 + $0x1f0] sm:$0xff] %vm222_vm1, %v4585_v59  ;;  %4819 = vst [vmem:[%s7501_s7 + $0x140] sm:$0xff] (%p6209_p5), %v4818_v15  ;;  %v4846_v55 = vld [vmem:[%s6322_s11 + $0x130] sm:$0xff] (%p6209_p5)  ;;  %v4848_v57 = vld [vmem:[%s6322_s11 + $0x138] sm:$0xff] (%p6209_p5) }
 0x236   : > { %4821 = vst [vmem:[%s7501_s7 + $0x148] sm:$0xff] %v4820_v40  ;;  %4823 = vst [vmem:[%s7501_s7 + $0x150] sm:$0xff] %v4822_v41  ;;  %v4850_v50 = vld [vmem:[%s6322_s11 + $0x140] sm:$0xff]  ;;  %v4852_v61 = vld [vmem:[%s6322_s11 + $0x148] sm:$0xff] }
 0x237   : > { %4825 = vst [vmem:[%s7501_s7 + $0x158] sm:$0xff] %v4824_v42  ;;  %4827 = vst [vmem:[%s7501_s7 + $0x160] sm:$0xff] %v4826_v44  ;;  %v4854_v9 = vld [vmem:[%s6322_s11 + $0x150] sm:$0xff]  ;;  %v4856_v62 = vld [vmem:[%s6322_s11 + $0x158] sm:$0xff] }
 0x238   : > { %4829 = vst [vmem:[%s7501_s7 + $0x168] sm:$0xff] %v4828_v45  ;;  %4831 = vst [vmem:[%s7501_s7 + $0x170] sm:$0xff] %v4830_v16  ;;  %v4858_v63 = vld [vmem:[%s6322_s11 + $0x160] sm:$0xff]  ;;  %v4860_v52 = vld [vmem:[%s6322_s11 + $0x168] sm:$0xff] }
 0x239   : > { %4833 = vst [vmem:[%s7501_s7 + $0x178] sm:$0xff] %v4832_v46  ;;  %4835 = vst [vmem:[%s7501_s7 + $0x200] sm:$0xff] %v4834_v47  ;;  %v4862_v0 = vld [vmem:[%s6322_s11 + $0x170] sm:$0xff]  ;;  %v4864_v3 = vld [vmem:[%s6322_s11 + $0x178] sm:$0xff] }
 0x23a   : > { %4837 = vst [vmem:[%s7501_s7 + $0x208] sm:$0xff] %v4836_v49  ;;  %4839 = vst [vmem:[%s7501_s7 + $0x210] sm:$0xff] %v4838_v51  ;;  %v4866_v4 = vld [vmem:[%s6322_s11 + $0x180] sm:$0xff]  ;;  %v4868_v54 = vld [vmem:[%s6322_s11 + $0x188] sm:$0xff] }
 0x23b   : > { %4841 = vst [vmem:[%s7501_s7 + $0x218] sm:$0xff] %v4840_v43  ;;  %4843 = vst [vmem:[%s7501_s7 + $0x220] sm:$0xff] %v4842_v48  ;;  %v4870_v10 = vld [vmem:[%s6322_s11 + $0x190] sm:$0xff]  ;;  %v4872_v6 = vld [vmem:[%s6322_s11 + $0x198] sm:$0xff] }
 0x23c   : > { %4845 = vst [vmem:[%s7501_s7 + $0x228] sm:$0xff] %v4844_v53  ;;  %4847 = vst [vmem:[%s7501_s7 + $0x230] sm:$0xff] %v4846_v55  ;;  %v4874_v7 = vld [vmem:[%s6322_s11 + $0x1a0] sm:$0xff]  ;;  %v4876_v56 = vld [vmem:[%s6322_s11 + $0x1a8] sm:$0xff] }
 0x23d   : > { %4849 = vst [vmem:[%s7501_s7 + $0x238] sm:$0xff] %v4848_v57  ;;  %4851 = vst [vmem:[%s7501_s7 + $0x240] sm:$0xff] %v4850_v50  ;;  %v4878_v11 = vld [vmem:[%s6322_s11 + $0x1b0] sm:$0xff]  ;;  %v4880_v8 = vld [vmem:[%s6322_s11 + $0x1b8] sm:$0xff] }
 0x23e   : > { %4853 = vst [vmem:[%s7501_s7 + $0x248] sm:$0xff] %v4852_v61  ;;  %4855 = vst [vmem:[%s7501_s7 + $0x250] sm:$0xff] %v4854_v9  ;;  %v4882_v21 = vld [vmem:[%s6322_s11 + $0x1c0] sm:$0xff]  ;;  %v4884_v22 = vld [vmem:[%s6322_s11 + $0x1c8] sm:$0xff] }
 0x23f   : > { %4857 = vst [vmem:[%s7501_s7 + $0x258] sm:$0xff] %v4856_v62  ;;  %4859 = vst [vmem:[%s7501_s7 + $0x260] sm:$0xff] %v4858_v63  ;;  %v4886_v58 = vld [vmem:[%s6322_s11 + $0x1d0] sm:$0xff]  ;;  %v4888_v25 = vld [vmem:[%s6322_s11 + $0x1d8] sm:$0xff] }
 0x240   : > { %4861 = vst [vmem:[%s7501_s7 + $0x268] sm:$0xff] %v4860_v52  ;;  %4863 = vst [vmem:[%s7501_s7 + $0x270] sm:$0xff] %v4862_v0  ;;  %v4890_v26 = vld [vmem:[%s6322_s11 + $0x1e0] sm:$0xff]  ;;  %v4892_v27 = vld [vmem:[%s6322_s11 + $0x1e8] sm:$0xff] }
 0x241   : > { %4865 = vst [vmem:[%s7501_s7 + $0x278] sm:$0xff] %v4864_v3  ;;  %4867 = vst [vmem:[%s7501_s7 + $0x300] sm:$0xff] %v4866_v4  ;;  %v4894_v12 = vld [vmem:[%s6322_s11 + $0x1f0] sm:$0xff]  ;;  %v4896_v59 = vld [vmem:[%s6322_s11 + $0x1f8] sm:$0xff] }
 0x242   : > { %4869 = vst [vmem:[%s7501_s7 + $0x308] sm:$0xff] %v4868_v54  ;;  %4871 = vst [vmem:[%s7501_s7 + $0x310] sm:$0xff] %v4870_v10 }
 0x243   : > { %4873 = vst [vmem:[%s7501_s7 + $0x318] sm:$0xff] %v4872_v6  ;;  %4875 = vst [vmem:[%s7501_s7 + $0x320] sm:$0xff] %v4874_v7 }
 0x244   : > { %4877 = vst [vmem:[%s7501_s7 + $0x328] sm:$0xff] %v4876_v56  ;;  %4879 = vst [vmem:[%s7501_s7 + $0x330] sm:$0xff] %v4878_v11 }
 0x245   : > { %4881 = vst [vmem:[%s7501_s7 + $0x338] sm:$0xff] %v4880_v8  ;;  %4883 = vst [vmem:[%s7501_s7 + $0x340] sm:$0xff] %v4882_v21 }
 0x246   : > { %4885 = vst [vmem:[%s7501_s7 + $0x348] sm:$0xff] %v4884_v22  ;;  %4887 = vst [vmem:[%s7501_s7 + $0x350] sm:$0xff] %v4886_v58 }
 0x247   : > { %4889 = vst [vmem:[%s7501_s7 + $0x358] sm:$0xff] %v4888_v25  ;;  %4891 = vst [vmem:[%s7501_s7 + $0x360] sm:$0xff] %v4890_v26 }
 0x248   : > { %4893 = vst [vmem:[%s7501_s7 + $0x368] sm:$0xff] %v4892_v27  ;;  %4895 = vst [vmem:[%s7501_s7 + $0x370] sm:$0xff] %v4894_v12 }
 0x249   : > { %4897 = vst [vmem:[%s7501_s7 + $0x378] sm:$0xff] %v4896_v59 }
 0x24a PF: > { %s13_s18 = sadd.s32 1, %s6138_s18   ;;  %s7648_s12 = smov %s6118_s13 }
 0x24b   : > { %p10_p0 = scmp.ge.s32.totalorder %s13_s18, 6   ;;  %s7649_s13 = smov %s6220_s27 }
 0x24c   : > { %s7650_s14 = smov %s6130_s16  ;;  %s7651_s15 = smov %s6134_s17 }
 0x24d   : > { %s7652_s16 = smov %s7655_s19  ;;  %s7653_s17 = smov %s7659_s20 }
 0x24e   :  { %12 = sbr.rel (!%p10_p0) target bundleno = 4 (0x4), region = 153 }

</bundles_post_ra>
